<compile_context>
chip_gen: v7x
topology: tpu7x:2x2x1
jax: 0.10.0
libtpu: 0.0.40
codegen_flags: <defaults>
</compile_context>

<pallas_src>
import jax
import jax.numpy as jnp
from jax import lax
from jax.experimental import pallas as pl
from jax.experimental.pallas import tpu as pltpu


def _lstm_kernel(x_ref, wih_ref, whh_ref, b_ref, wfc_ref, bfc_ref, out_ref, xp_ref):
    """One batch-block: merged input projection, recurrent chain, FC, log_softmax.

    x_ref   : (T, Bblk, I)     time-major inputs
    wih_ref : (I, 4*Hp)        transposed weight_ih, gates reordered [i,f,o,g], H padded
    whh_ref : (Hp, 4*Hp)       transposed weight_hh, same layout
    b_ref   : (1, 4*Hp)        b_ih + b_hh, same layout
    wfc_ref : (Hp, K)          transposed fc.weight, rows H..Hp zero
    bfc_ref : (1, K)           fc.bias
    out_ref : (Bblk, K)        log-probabilities
    xp_ref  : (T, Bblk, 4*Hp)  VMEM scratch for the hoisted input projection
    """
    T, Bblk, I = x_ref.shape
    Hp = whh_ref.shape[0]

    # ---- prepass: ONE merged matmul for all timesteps (off the serial recurrent chain) ----
    x_flat = x_ref[...].reshape(T * Bblk, I)                       # leading-dims collapse only
    xp = jnp.dot(x_flat, wih_ref[...],
                 preferred_element_type=jnp.float32) + b_ref[...]  # (T*Bblk, 4Hp)
    xp_ref[...] = xp.reshape(T, Bblk, 4 * Hp)

    h0 = jnp.zeros((Bblk, Hp), jnp.float32)
    c0 = jnp.zeros((Bblk, Hp), jnp.float32)

    def step(t, carry):
        h, c = carry
        gates = xp_ref[t] + jnp.dot(h, whh_ref[...],
                                    preferred_element_type=jnp.float32)   # (Bblk, 4Hp)
        # gate layout is [i | f | o | g]; each slab is a full 128-lane-aligned Hp block,
        # so the three sigmoids are a single contiguous EUP launch.
        sig = jax.nn.sigmoid(gates[:, : 3 * Hp])
        i_g = sig[:, 0 * Hp:1 * Hp]
        f_g = sig[:, 1 * Hp:2 * Hp]
        o_g = sig[:, 2 * Hp:3 * Hp]
        g_g = jnp.tanh(gates[:, 3 * Hp:])
        c = f_g * c + i_g * g_g
        h = o_g * jnp.tanh(c)
        return h, c

    if T <= 16:
        h, c = h0, c0
        for t in range(T):                      # small static T: full unroll for LLO overlap
            h, c = step(t, (h, c))
    else:
        h, c = lax.fori_loop(0, T, step, (h0, c0), unroll=2)   # bounded vreg/imem at large T

    # NOTE: padded lanes of c/h stay exactly zero ONLY because (h0, c0) are zero and the
    # padded rows/cols of W_hh, W_fc and the bias are zero; re-check if nonzero initial
    # state is ever added.
    logits = (jnp.dot(c, wfc_ref[...], preferred_element_type=jnp.float32)
              + bfc_ref[...])                                   # (Bblk, K)
    m = jnp.max(logits, axis=-1, keepdims=True)
    s = logits - m
    lse = jnp.log(jnp.sum(jnp.exp(s), axis=-1, keepdims=True))
    out_ref[...] = (s - lse).astype(out_ref.dtype)


def prepare_lstm_params(w_ih, w_hh, b_ih, b_hh, w_fc, b_fc):
    """One-time parameter massaging (keep OUTSIDE the per-call hot path):
    transpose, reorder gate blocks [i,f,g,o] -> [i,f,o,g], zero-pad H -> Hp (mult of 128)."""
    H = w_hh.shape[1]
    I = w_ih.shape[1]
    K = w_fc.shape[0]
    Hp = ((H + 127) // 128) * 128

    order = (0, 1, 3, 2)                                  # i, f, o, g (PyTorch stores i, f, g, o)

    def regroup(w):                                       # (4H, n) -> (n, 4*Hp)
        blks = [w[g * H:(g + 1) * H].T for g in order]    # each (n, H)
        blks = [jnp.pad(blk, ((0, 0), (0, Hp - H))) for blk in blks]
        return jnp.concatenate(blks, axis=1)

    wih_t = regroup(w_ih)                                 # (I, 4Hp)
    whh_t = jnp.pad(regroup(w_hh), ((0, Hp - H), (0, 0))) # (Hp, 4Hp), padded rows zero
    b = b_ih + b_hh
    bias = jnp.concatenate(
        [jnp.pad(b[g * H:(g + 1) * H], (0, Hp - H)) for g in order]).reshape(1, 4 * Hp)
    wfc_t = jnp.pad(w_fc.T, ((0, Hp - H), (0, 0)))        # (Hp, K), padded rows zero
    bfc = b_fc.reshape(1, K)
    return dict(wih_t=wih_t, whh_t=whh_t, bias=bias, wfc_t=wfc_t, bfc=bfc,
                H=H, Hp=Hp, I=I, K=K)


def _choose_bblk(B, T, I, Hp, K, vmem_budget=24 << 20):
    """Largest multiple-of-8 batch block dividing B, capped at the MXU height (256),
    leaving >=2 grid blocks when B >= 16 (v7x megacore), within a VMEM budget."""
    def fits(bblk):
        need = (4 * T * bblk * 4 * Hp        # xp scratch
                + 2 * 4 * T * bblk * I       # double-buffered x blocks
                + 2 * 4 * bblk * K)          # double-buffered out blocks
        return need <= vmem_budget

    cap = 256
    if B >= 16:
        cap = min(cap, B // 2)               # >= 2 grid blocks -> both v7x TensorCores
    best = None
    for cand in range(8, min(cap, B) + 1, 8):
        if B % cand == 0 and fits(cand):
            best = cand
    if best is None:
        best = B if fits(B) else max(8, min(8, B))
    return best


def lstm_forward(x, params, *, batch_block=None):
    """x: (B, T, I) float32 (batch_first, as in the PyTorch module)."""
    B, T, I = x.shape
    Hp, K = params["Hp"], params["K"]

    Bblk = _choose_bblk(B, T, I, Hp, K) if batch_block is None else batch_block
    if B % Bblk != 0:
        Bblk = B
    grid = (B // Bblk,)

    # Minor: a separate XLA HBM pass over x; acceptable since x is small vs LSTM compute.
    x_tm = jnp.transpose(x, (1, 0, 2))                    # (T, B, I) time-major

    flops = 2 * T * B * I * 4 * Hp + 2 * T * B * Hp * 4 * Hp + 2 * B * Hp * K
    transcendentals = 5 * T * B * Hp + B * (K + 1)
    param_bytes = 4 * (params["wih_t"].size + params["whh_t"].size + params["bias"].size
                       + params["wfc_t"].size + params["bfc"].size)
    bytes_accessed = (4 * (x.size + B * K) + param_bytes
                      + 2 * 4 * T * B * 4 * Hp)           # xp scratch write + read

    def run(single_buffer_weights):
        wkw = {}
        if single_buffer_weights and hasattr(pl, "Buffered"):
            wkw = dict(pipeline_mode=pl.Buffered(1))      # invariant operands: no double buffer
        w_bufs = 1 if wkw else 2
        needed = (4 * T * Bblk * 4 * Hp                   # xp scratch
                  + 2 * 4 * T * Bblk * I                  # double-buffered x blocks
                  + w_bufs * param_bytes                  # weights / biases
                  + 2 * 4 * Bblk * K)                     # out blocks
        vmem_limit = int(min(max(2 * needed, 8 << 20), 64 << 20))   # cap at v7x physical

        out = pl.pallas_call(
            _lstm_kernel,
            out_shape=jax.ShapeDtypeStruct((B, K), jnp.float32),
            grid_spec=pltpu.PrefetchScalarGridSpec(
                num_scalar_prefetch=0,
                grid=grid,
                in_specs=[
                    pl.BlockSpec((T, Bblk, I), lambda b: (0, b, 0)),         # x, blocked on batch
                    pl.BlockSpec((I, 4 * Hp), lambda b: (0, 0), **wkw),      # W_ih^T
                    pl.BlockSpec((Hp, 4 * Hp), lambda b: (0, 0), **wkw),     # W_hh^T
                    pl.BlockSpec((1, 4 * Hp), lambda b: (0, 0), **wkw),      # bias
                    pl.BlockSpec((Hp, K), lambda b: (0, 0), **wkw),          # W_fc^T
                    pl.BlockSpec((1, K), lambda b: (0, 0), **wkw),           # b_fc
                ],
                out_specs=pl.BlockSpec((Bblk, K), lambda b: (b, 0)),
                scratch_shapes=[pltpu.VMEM((T, Bblk, 4 * Hp), jnp.float32)],  # hoisted x-proj
            ),
            compiler_params=pltpu.CompilerParams(
                dimension_semantics=("parallel",),        # batch blocks -> both v7x TCs
                vmem_limit_bytes=vmem_limit),
            cost_estimate=pl.CostEstimate(
                flops=flops, transcendentals=transcendentals,
                bytes_accessed=bytes_accessed),
        )(x_tm, params["wih_t"], params["whh_t"], params["bias"],
          params["wfc_t"], params["bfc"])
        return jax.block_until_ready(out)

    try:
        return run(single_buffer_weights=True)
    except Exception:
        # pl.Buffered(1) single-buffering not honored by this build: default double buffering.
        return run(single_buffer_weights=False)


def _reference(x, w_ih, w_hh, b_ih, b_hh, w_fc, b_fc):
    """Pure-JAX reference of the PyTorch forward (for correctness check)."""
    B, T, I = x.shape
    H = w_hh.shape[1]
    h = jnp.zeros((B, H), jnp.float32)
    c = jnp.zeros((B, H), jnp.float32)
    for t in range(T):
        gates = x[:, t, :] @ w_ih.T + b_ih + h @ w_hh.T + b_hh
        i = jax.nn.sigmoid(gates[:, 0 * H:1 * H])
        f = jax.nn.sigmoid(gates[:, 1 * H:2 * H])
        g = jnp.tanh(gates[:, 2 * H:3 * H])
        o = jax.nn.sigmoid(gates[:, 3 * H:4 * H])
        c = f * c + i * g
        h = o * jnp.tanh(c)
    logits = c @ w_fc.T + b_fc
    return jax.nn.log_softmax(logits, axis=-1)


if __name__ == "__main__":
    # small shapes consistent with the module (scaled down from 64/50/40/64);
    # B=16 gives grid=(2,) so the v7x parallel axis is exercised.
    B, T, I, H, K = 16, 8, 40, 64, 10

    key = jax.random.PRNGKey(0)
    keys = jax.random.split(key, 7)
    bound = 1.0 / jnp.sqrt(jnp.float32(H))      # PyTorch default LSTM/Linear init scale

    x = jax.random.normal(keys[0], (B, T, I), jnp.float32)
    w_ih = jax.random.uniform(keys[1], (4 * H, I), jnp.float32, -bound, bound)
    w_hh = jax.random.uniform(keys[2], (4 * H, H), jnp.float32, -bound, bound)
    b_ih = jax.random.uniform(keys[3], (4 * H,), jnp.float32, -bound, bound)
    b_hh = jax.random.uniform(keys[4], (4 * H,), jnp.float32, -bound, bound)
    w_fc = jax.random.uniform(keys[5], (K, H), jnp.float32, -bound, bound)
    b_fc = jax.random.uniform(keys[6], (K,), jnp.float32, -bound, bound)

    # TODO(synk): dropout=0.5 in nn.LSTM is a no-op for n_layers=1 (inter-layer only), so omitted.

    # one-time parameter preparation (cached across calls in real use)
    params = prepare_lstm_params(w_ih, w_hh, b_ih, b_hh, w_fc, b_fc)

    y = lstm_forward(x, params)
    jax.block_until_ready(y)

    y_ref = _reference(x, w_ih, w_hh, b_ih, b_hh, w_fc, b_fc)
    assert y.shape == (B, K)
    assert jnp.allclose(y, y_ref, atol=1e-5, rtol=1e-5), float(jnp.abs(y - y_ref).max())

    print("KERNEL_OK")
</pallas_src>

<mosaic_0001>
module attributes {stable_mosaic.version = 11 : i64} {
  func.func @_lstm_kernel(%arg0: i32, %arg1: memref<8x8x40xf32, #tpu.memory_space<vmem>>, %arg2: memref<40x512xf32, #tpu.memory_space<vmem>>, %arg3: memref<128x512xf32, #tpu.memory_space<vmem>>, %arg4: memref<1x512xf32, #tpu.memory_space<vmem>>, %arg5: memref<128x10xf32, #tpu.memory_space<vmem>>, %arg6: memref<1x10xf32, #tpu.memory_space<vmem>>, %arg7: memref<8x10xf32, #tpu.memory_space<vmem>>, %arg8: memref<8x8x512xf32, #tpu.memory_space<vmem>>) attributes {dimension_semantics = [#tpu.dimension_semantics<parallel>], iteration_bounds = array<i64: 2>, scalar_prefetch = 0 : i64, scratch_operands = 1 : i64, tpu.core_type = #tpu.core_type<tc>, window_params = [{transform_indices = @transform_0, window_bounds = array<i64: 8, 8, 40>}, {pipeline_mode = #tpu.pipeline_mode<synchronous>, transform_indices = @transform_1, window_bounds = array<i64: 40, 512>}, {pipeline_mode = #tpu.pipeline_mode<synchronous>, transform_indices = @transform_2, window_bounds = array<i64: 128, 512>}, {pipeline_mode = #tpu.pipeline_mode<synchronous>, transform_indices = @transform_3, window_bounds = array<i64: 1, 512>}, {pipeline_mode = #tpu.pipeline_mode<synchronous>, transform_indices = @transform_4, window_bounds = array<i64: 128, 10>}, {pipeline_mode = #tpu.pipeline_mode<synchronous>, transform_indices = @transform_5, window_bounds = array<i64: 1, 10>}, {transform_indices = @transform_6, window_bounds = array<i64: 8, 10>}]} {
    %c0 = arith.constant 0 : index
    %c0_0 = arith.constant 0 : index
    %c0_1 = arith.constant 0 : index
    %0 = vector.load %arg1[%c0, %c0_0, %c0_1] : memref<8x8x40xf32, #tpu.memory_space<vmem>>, vector<8x8x40xf32>
    %1 = vector.shape_cast %0 : vector<8x8x40xf32> to vector<64x40xf32>
    %c0_2 = arith.constant 0 : index
    %c0_3 = arith.constant 0 : index
    %2 = vector.load %arg2[%c0_2, %c0_3] : memref<40x512xf32, #tpu.memory_space<vmem>>, vector<40x512xf32>
    %cst = arith.constant dense<0.000000e+00> : vector<64x512xf32>
    %3 = tpu.matmul %1, %2, %cst {dimension_numbers = #tpu.dot_dimension_numbers<[1], [0], [0], [1], [0, 0, 1, 1], [], []>} : vector<64x40xf32>, vector<40x512xf32>, vector<64x512xf32> -> vector<64x512xf32>
    %c0_4 = arith.constant 0 : index
    %c0_5 = arith.constant 0 : index
    %4 = vector.load %arg4[%c0_4, %c0_5] : memref<1x512xf32, #tpu.memory_space<vmem>>, vector<1x512xf32>
    %5 = vector.broadcast %4 : vector<1x512xf32> to vector<64x512xf32>
    %6 = arith.addf %3, %5 : vector<64x512xf32>
    %7 = vector.shape_cast %6 : vector<64x512xf32> to vector<8x8x512xf32>
    %c0_6 = arith.constant 0 : index
    %c0_7 = arith.constant 0 : index
    %c0_8 = arith.constant 0 : index
    %8 = vector.load %arg8[%c0_6, %c0_7, %c0_8] : memref<8x8x512xf32, #tpu.memory_space<vmem>>, vector<8x8x512xf32>
    tpu.vector_store %arg8[%c0_6, %c0_7, %c0_8], %7 {strides = array<i32>} : memref<8x8x512xf32, #tpu.memory_space<vmem>>, vector<8x8x512xf32>,
    %cst_9 = arith.constant 0.000000e+00 : f32
    %9 = vector.broadcast %cst_9 : f32 to vector<8x128xf32>
    %cst_10 = arith.constant 0.000000e+00 : f32
    %10 = vector.broadcast %cst_10 : f32 to vector<8x128xf32>
    %c0_11 = arith.constant 0 : index
    %c0_12 = arith.constant 0 : index
    %c0_13 = arith.constant 0 : index
    %11 = vector.load %arg8[%c0_11, %c0_12, %c0_13] : memref<8x8x512xf32, #tpu.memory_space<vmem>>, vector<1x8x512xf32>
    %12 = vector.shape_cast %11 : vector<1x8x512xf32> to vector<8x512xf32>
    %c0_14 = arith.constant 0 : index
    %c0_15 = arith.constant 0 : index
    %13 = vector.load %arg3[%c0_14, %c0_15] : memref<128x512xf32, #tpu.memory_space<vmem>>, vector<128x512xf32>
    %cst_16 = arith.constant dense<0.000000e+00> : vector<8x512xf32>
    %14 = tpu.matmul %9, %13, %cst_16 {dimension_numbers = #tpu.dot_dimension_numbers<[1], [0], [0], [1], [0, 0, 1, 1], [], []>} : vector<8x128xf32>, vector<128x512xf32>, vector<8x512xf32> -> vector<8x512xf32>
    %15 = arith.addf %12, %14 : vector<8x512xf32>
    %16 = vector.extract_strided_slice %15 {offsets = [0, 0], sizes = [8, 384], strides = [1, 1]} : vector<8x512xf32> to vector<8x384xf32>
    %17 = arith.negf %16 : vector<8x384xf32>
    %18 = math.exp %17 : vector<8x384xf32>
    %cst_17 = arith.constant 1.000000e+00 : f32
    %19 = vector.broadcast %cst_17 : f32 to vector<8x384xf32>
    %20 = arith.addf %19, %18 : vector<8x384xf32>
    %21 = arith.divf %19, %20 : vector<8x384xf32>
    %22 = vector.extract_strided_slice %21 {offsets = [0, 0], sizes = [8, 128], strides = [1, 1]} : vector<8x384xf32> to vector<8x128xf32>
    %23 = vector.extract_strided_slice %21 {offsets = [0, 128], sizes = [8, 128], strides = [1, 1]} : vector<8x384xf32> to vector<8x128xf32>
    %24 = vector.extract_strided_slice %21 {offsets = [0, 256], sizes = [8, 128], strides = [1, 1]} : vector<8x384xf32> to vector<8x128xf32>
    %25 = vector.extract_strided_slice %15 {offsets = [0, 384], sizes = [8, 128], strides = [1, 1]} : vector<8x512xf32> to vector<8x128xf32>
    %26 = math.tanh %25 : vector<8x128xf32>
    %27 = arith.mulf %23, %10 : vector<8x128xf32>
    %28 = arith.mulf %22, %26 : vector<8x128xf32>
    %29 = arith.addf %27, %28 : vector<8x128xf32>
    %30 = math.tanh %29 : vector<8x128xf32>
    %31 = arith.mulf %24, %30 : vector<8x128xf32>
    %c1 = arith.constant 1 : index
    %c0_18 = arith.constant 0 : index
    %c0_19 = arith.constant 0 : index
    %32 = vector.load %arg8[%c1, %c0_18, %c0_19] : memref<8x8x512xf32, #tpu.memory_space<vmem>>, vector<1x8x512xf32>
    %33 = vector.shape_cast %32 : vector<1x8x512xf32> to vector<8x512xf32>
    %c0_20 = arith.constant 0 : index
    %c0_21 = arith.constant 0 : index
    %34 = vector.load %arg3[%c0_20, %c0_21] : memref<128x512xf32, #tpu.memory_space<vmem>>, vector<128x512xf32>
    %cst_22 = arith.constant dense<0.000000e+00> : vector<8x512xf32>
    %35 = tpu.matmul %31, %34, %cst_22 {dimension_numbers = #tpu.dot_dimension_numbers<[1], [0], [0], [1], [0, 0, 1, 1], [], []>} : vector<8x128xf32>, vector<128x512xf32>, vector<8x512xf32> -> vector<8x512xf32>
    %36 = arith.addf %33, %35 : vector<8x512xf32>
    %37 = vector.extract_strided_slice %36 {offsets = [0, 0], sizes = [8, 384], strides = [1, 1]} : vector<8x512xf32> to vector<8x384xf32>
    %38 = arith.negf %37 : vector<8x384xf32>
    %39 = math.exp %38 : vector<8x384xf32>
    %cst_23 = arith.constant 1.000000e+00 : f32
    %40 = vector.broadcast %cst_23 : f32 to vector<8x384xf32>
    %41 = arith.addf %40, %39 : vector<8x384xf32>
    %42 = arith.divf %40, %41 : vector<8x384xf32>
    %43 = vector.extract_strided_slice %42 {offsets = [0, 0], sizes = [8, 128], strides = [1, 1]} : vector<8x384xf32> to vector<8x128xf32>
    %44 = vector.extract_strided_slice %42 {offsets = [0, 128], sizes = [8, 128], strides = [1, 1]} : vector<8x384xf32> to vector<8x128xf32>
    %45 = vector.extract_strided_slice %42 {offsets = [0, 256], sizes = [8, 128], strides = [1, 1]} : vector<8x384xf32> to vector<8x128xf32>
    %46 = vector.extract_strided_slice %36 {offsets = [0, 384], sizes = [8, 128], strides = [1, 1]} : vector<8x512xf32> to vector<8x128xf32>
    %47 = math.tanh %46 : vector<8x128xf32>
    %48 = arith.mulf %44, %29 : vector<8x128xf32>
    %49 = arith.mulf %43, %47 : vector<8x128xf32>
    %50 = arith.addf %48, %49 : vector<8x128xf32>
    %51 = math.tanh %50 : vector<8x128xf32>
    %52 = arith.mulf %45, %51 : vector<8x128xf32>
    %c2 = arith.constant 2 : index
    %c0_24 = arith.constant 0 : index
    %c0_25 = arith.constant 0 : index
    %53 = vector.load %arg8[%c2, %c0_24, %c0_25] : memref<8x8x512xf32, #tpu.memory_space<vmem>>, vector<1x8x512xf32>
    %54 = vector.shape_cast %53 : vector<1x8x512xf32> to vector<8x512xf32>
    %c0_26 = arith.constant 0 : index
    %c0_27 = arith.constant 0 : index
    %55 = vector.load %arg3[%c0_26, %c0_27] : memref<128x512xf32, #tpu.memory_space<vmem>>, vector<128x512xf32>
    %cst_28 = arith.constant dense<0.000000e+00> : vector<8x512xf32>
    %56 = tpu.matmul %52, %55, %cst_28 {dimension_numbers = #tpu.dot_dimension_numbers<[1], [0], [0], [1], [0, 0, 1, 1], [], []>} : vector<8x128xf32>, vector<128x512xf32>, vector<8x512xf32> -> vector<8x512xf32>
    %57 = arith.addf %54, %56 : vector<8x512xf32>
    %58 = vector.extract_strided_slice %57 {offsets = [0, 0], sizes = [8, 384], strides = [1, 1]} : vector<8x512xf32> to vector<8x384xf32>
    %59 = arith.negf %58 : vector<8x384xf32>
    %60 = math.exp %59 : vector<8x384xf32>
    %cst_29 = arith.constant 1.000000e+00 : f32
    %61 = vector.broadcast %cst_29 : f32 to vector<8x384xf32>
    %62 = arith.addf %61, %60 : vector<8x384xf32>
    %63 = arith.divf %61, %62 : vector<8x384xf32>
    %64 = vector.extract_strided_slice %63 {offsets = [0, 0], sizes = [8, 128], strides = [1, 1]} : vector<8x384xf32> to vector<8x128xf32>
    %65 = vector.extract_strided_slice %63 {offsets = [0, 128], sizes = [8, 128], strides = [1, 1]} : vector<8x384xf32> to vector<8x128xf32>
    %66 = vector.extract_strided_slice %63 {offsets = [0, 256], sizes = [8, 128], strides = [1, 1]} : vector<8x384xf32> to vector<8x128xf32>
    %67 = vector.extract_strided_slice %57 {offsets = [0, 384], sizes = [8, 128], strides = [1, 1]} : vector<8x512xf32> to vector<8x128xf32>
    %68 = math.tanh %67 : vector<8x128xf32>
    %69 = arith.mulf %65, %50 : vector<8x128xf32>
    %70 = arith.mulf %64, %68 : vector<8x128xf32>
    %71 = arith.addf %69, %70 : vector<8x128xf32>
    %72 = math.tanh %71 : vector<8x128xf32>
    %73 = arith.mulf %66, %72 : vector<8x128xf32>
    %c3 = arith.constant 3 : index
    %c0_30 = arith.constant 0 : index
    %c0_31 = arith.constant 0 : index
    %74 = vector.load %arg8[%c3, %c0_30, %c0_31] : memref<8x8x512xf32, #tpu.memory_space<vmem>>, vector<1x8x512xf32>
    %75 = vector.shape_cast %74 : vector<1x8x512xf32> to vector<8x512xf32>
    %c0_32 = arith.constant 0 : index
    %c0_33 = arith.constant 0 : index
    %76 = vector.load %arg3[%c0_32, %c0_33] : memref<128x512xf32, #tpu.memory_space<vmem>>, vector<128x512xf32>
    %cst_34 = arith.constant dense<0.000000e+00> : vector<8x512xf32>
    %77 = tpu.matmul %73, %76, %cst_34 {dimension_numbers = #tpu.dot_dimension_numbers<[1], [0], [0], [1], [0, 0, 1, 1], [], []>} : vector<8x128xf32>, vector<128x512xf32>, vector<8x512xf32> -> vector<8x512xf32>
    %78 = arith.addf %75, %77 : vector<8x512xf32>
    %79 = vector.extract_strided_slice %78 {offsets = [0, 0], sizes = [8, 384], strides = [1, 1]} : vector<8x512xf32> to vector<8x384xf32>
    %80 = arith.negf %79 : vector<8x384xf32>
    %81 = math.exp %80 : vector<8x384xf32>
    %cst_35 = arith.constant 1.000000e+00 : f32
    %82 = vector.broadcast %cst_35 : f32 to vector<8x384xf32>
    %83 = arith.addf %82, %81 : vector<8x384xf32>
    %84 = arith.divf %82, %83 : vector<8x384xf32>
    %85 = vector.extract_strided_slice %84 {offsets = [0, 0], sizes = [8, 128], strides = [1, 1]} : vector<8x384xf32> to vector<8x128xf32>
    %86 = vector.extract_strided_slice %84 {offsets = [0, 128], sizes = [8, 128], strides = [1, 1]} : vector<8x384xf32> to vector<8x128xf32>
    %87 = vector.extract_strided_slice %84 {offsets = [0, 256], sizes = [8, 128], strides = [1, 1]} : vector<8x384xf32> to vector<8x128xf32>
    %88 = vector.extract_strided_slice %78 {offsets = [0, 384], sizes = [8, 128], strides = [1, 1]} : vector<8x512xf32> to vector<8x128xf32>
    %89 = math.tanh %88 : vector<8x128xf32>
    %90 = arith.mulf %86, %71 : vector<8x128xf32>
    %91 = arith.mulf %85, %89 : vector<8x128xf32>
    %92 = arith.addf %90, %91 : vector<8x128xf32>
    %93 = math.tanh %92 : vector<8x128xf32>
    %94 = arith.mulf %87, %93 : vector<8x128xf32>
    %c4 = arith.constant 4 : index
    %c0_36 = arith.constant 0 : index
    %c0_37 = arith.constant 0 : index
    %95 = vector.load %arg8[%c4, %c0_36, %c0_37] : memref<8x8x512xf32, #tpu.memory_space<vmem>>, vector<1x8x512xf32>
    %96 = vector.shape_cast %95 : vector<1x8x512xf32> to vector<8x512xf32>
    %c0_38 = arith.constant 0 : index
    %c0_39 = arith.constant 0 : index
    %97 = vector.load %arg3[%c0_38, %c0_39] : memref<128x512xf32, #tpu.memory_space<vmem>>, vector<128x512xf32>
    %cst_40 = arith.constant dense<0.000000e+00> : vector<8x512xf32>
    %98 = tpu.matmul %94, %97, %cst_40 {dimension_numbers = #tpu.dot_dimension_numbers<[1], [0], [0], [1], [0, 0, 1, 1], [], []>} : vector<8x128xf32>, vector<128x512xf32>, vector<8x512xf32> -> vector<8x512xf32>
    %99 = arith.addf %96, %98 : vector<8x512xf32>
    %100 = vector.extract_strided_slice %99 {offsets = [0, 0], sizes = [8, 384], strides = [1, 1]} : vector<8x512xf32> to vector<8x384xf32>
    %101 = arith.negf %100 : vector<8x384xf32>
    %102 = math.exp %101 : vector<8x384xf32>
    %cst_41 = arith.constant 1.000000e+00 : f32
    %103 = vector.broadcast %cst_41 : f32 to vector<8x384xf32>
    %104 = arith.addf %103, %102 : vector<8x384xf32>
    %105 = arith.divf %103, %104 : vector<8x384xf32>
    %106 = vector.extract_strided_slice %105 {offsets = [0, 0], sizes = [8, 128], strides = [1, 1]} : vector<8x384xf32> to vector<8x128xf32>
    %107 = vector.extract_strided_slice %105 {offsets = [0, 128], sizes = [8, 128], strides = [1, 1]} : vector<8x384xf32> to vector<8x128xf32>
    %108 = vector.extract_strided_slice %105 {offsets = [0, 256], sizes = [8, 128], strides = [1, 1]} : vector<8x384xf32> to vector<8x128xf32>
    %109 = vector.extract_strided_slice %99 {offsets = [0, 384], sizes = [8, 128], strides = [1, 1]} : vector<8x512xf32> to vector<8x128xf32>
    %110 = math.tanh %109 : vector<8x128xf32>
    %111 = arith.mulf %107, %92 : vector<8x128xf32>
    %112 = arith.mulf %106, %110 : vector<8x128xf32>
    %113 = arith.addf %111, %112 : vector<8x128xf32>
    %114 = math.tanh %113 : vector<8x128xf32>
    %115 = arith.mulf %108, %114 : vector<8x128xf32>
    %c5 = arith.constant 5 : index
    %c0_42 = arith.constant 0 : index
    %c0_43 = arith.constant 0 : index
    %116 = vector.load %arg8[%c5, %c0_42, %c0_43] : memref<8x8x512xf32, #tpu.memory_space<vmem>>, vector<1x8x512xf32>
    %117 = vector.shape_cast %116 : vector<1x8x512xf32> to vector<8x512xf32>
    %c0_44 = arith.constant 0 : index
    %c0_45 = arith.constant 0 : index
    %118 = vector.load %arg3[%c0_44, %c0_45] : memref<128x512xf32, #tpu.memory_space<vmem>>, vector<128x512xf32>
    %cst_46 = arith.constant dense<0.000000e+00> : vector<8x512xf32>
    %119 = tpu.matmul %115, %118, %cst_46 {dimension_numbers = #tpu.dot_dimension_numbers<[1], [0], [0], [1], [0, 0, 1, 1], [], []>} : vector<8x128xf32>, vector<128x512xf32>, vector<8x512xf32> -> vector<8x512xf32>
    %120 = arith.addf %117, %119 : vector<8x512xf32>
    %121 = vector.extract_strided_slice %120 {offsets = [0, 0], sizes = [8, 384], strides = [1, 1]} : vector<8x512xf32> to vector<8x384xf32>
    %122 = arith.negf %121 : vector<8x384xf32>
    %123 = math.exp %122 : vector<8x384xf32>
    %cst_47 = arith.constant 1.000000e+00 : f32
    %124 = vector.broadcast %cst_47 : f32 to vector<8x384xf32>
    %125 = arith.addf %124, %123 : vector<8x384xf32>
    %126 = arith.divf %124, %125 : vector<8x384xf32>
    %127 = vector.extract_strided_slice %126 {offsets = [0, 0], sizes = [8, 128], strides = [1, 1]} : vector<8x384xf32> to vector<8x128xf32>
    %128 = vector.extract_strided_slice %126 {offsets = [0, 128], sizes = [8, 128], strides = [1, 1]} : vector<8x384xf32> to vector<8x128xf32>
    %129 = vector.extract_strided_slice %126 {offsets = [0, 256], sizes = [8, 128], strides = [1, 1]} : vector<8x384xf32> to vector<8x128xf32>
    %130 = vector.extract_strided_slice %120 {offsets = [0, 384], sizes = [8, 128], strides = [1, 1]} : vector<8x512xf32> to vector<8x128xf32>
    %131 = math.tanh %130 : vector<8x128xf32>
    %132 = arith.mulf %128, %113 : vector<8x128xf32>
    %133 = arith.mulf %127, %131 : vector<8x128xf32>
    %134 = arith.addf %132, %133 : vector<8x128xf32>
    %135 = math.tanh %134 : vector<8x128xf32>
    %136 = arith.mulf %129, %135 : vector<8x128xf32>
    %c6 = arith.constant 6 : index
    %c0_48 = arith.constant 0 : index
    %c0_49 = arith.constant 0 : index
    %137 = vector.load %arg8[%c6, %c0_48, %c0_49] : memref<8x8x512xf32, #tpu.memory_space<vmem>>, vector<1x8x512xf32>
    %138 = vector.shape_cast %137 : vector<1x8x512xf32> to vector<8x512xf32>
    %c0_50 = arith.constant 0 : index
    %c0_51 = arith.constant 0 : index
    %139 = vector.load %arg3[%c0_50, %c0_51] : memref<128x512xf32, #tpu.memory_space<vmem>>, vector<128x512xf32>
    %cst_52 = arith.constant dense<0.000000e+00> : vector<8x512xf32>
    %140 = tpu.matmul %136, %139, %cst_52 {dimension_numbers = #tpu.dot_dimension_numbers<[1], [0], [0], [1], [0, 0, 1, 1], [], []>} : vector<8x128xf32>, vector<128x512xf32>, vector<8x512xf32> -> vector<8x512xf32>
    %141 = arith.addf %138, %140 : vector<8x512xf32>
    %142 = vector.extract_strided_slice %141 {offsets = [0, 0], sizes = [8, 384], strides = [1, 1]} : vector<8x512xf32> to vector<8x384xf32>
    %143 = arith.negf %142 : vector<8x384xf32>
    %144 = math.exp %143 : vector<8x384xf32>
    %cst_53 = arith.constant 1.000000e+00 : f32
    %145 = vector.broadcast %cst_53 : f32 to vector<8x384xf32>
    %146 = arith.addf %145, %144 : vector<8x384xf32>
    %147 = arith.divf %145, %146 : vector<8x384xf32>
    %148 = vector.extract_strided_slice %147 {offsets = [0, 0], sizes = [8, 128], strides = [1, 1]} : vector<8x384xf32> to vector<8x128xf32>
    %149 = vector.extract_strided_slice %147 {offsets = [0, 128], sizes = [8, 128], strides = [1, 1]} : vector<8x384xf32> to vector<8x128xf32>
    %150 = vector.extract_strided_slice %147 {offsets = [0, 256], sizes = [8, 128], strides = [1, 1]} : vector<8x384xf32> to vector<8x128xf32>
    %151 = vector.extract_strided_slice %141 {offsets = [0, 384], sizes = [8, 128], strides = [1, 1]} : vector<8x512xf32> to vector<8x128xf32>
    %152 = math.tanh %151 : vector<8x128xf32>
    %153 = arith.mulf %149, %134 : vector<8x128xf32>
    %154 = arith.mulf %148, %152 : vector<8x128xf32>
    %155 = arith.addf %153, %154 : vector<8x128xf32>
    %156 = math.tanh %155 : vector<8x128xf32>
    %157 = arith.mulf %150, %156 : vector<8x128xf32>
    %c7 = arith.constant 7 : index
    %c0_54 = arith.constant 0 : index
    %c0_55 = arith.constant 0 : index
    %158 = vector.load %arg8[%c7, %c0_54, %c0_55] : memref<8x8x512xf32, #tpu.memory_space<vmem>>, vector<1x8x512xf32>
    %159 = vector.shape_cast %158 : vector<1x8x512xf32> to vector<8x512xf32>
    %c0_56 = arith.constant 0 : index
    %c0_57 = arith.constant 0 : index
    %160 = vector.load %arg3[%c0_56, %c0_57] : memref<128x512xf32, #tpu.memory_space<vmem>>, vector<128x512xf32>
    %cst_58 = arith.constant dense<0.000000e+00> : vector<8x512xf32>
    %161 = tpu.matmul %157, %160, %cst_58 {dimension_numbers = #tpu.dot_dimension_numbers<[1], [0], [0], [1], [0, 0, 1, 1], [], []>} : vector<8x128xf32>, vector<128x512xf32>, vector<8x512xf32> -> vector<8x512xf32>
    %162 = arith.addf %159, %161 : vector<8x512xf32>
    %163 = vector.extract_strided_slice %162 {offsets = [0, 0], sizes = [8, 384], strides = [1, 1]} : vector<8x512xf32> to vector<8x384xf32>
    %164 = arith.negf %163 : vector<8x384xf32>
    %165 = math.exp %164 : vector<8x384xf32>
    %cst_59 = arith.constant 1.000000e+00 : f32
    %166 = vector.broadcast %cst_59 : f32 to vector<8x384xf32>
    %167 = arith.addf %166, %165 : vector<8x384xf32>
    %168 = arith.divf %166, %167 : vector<8x384xf32>
    %169 = vector.extract_strided_slice %168 {offsets = [0, 0], sizes = [8, 128], strides = [1, 1]} : vector<8x384xf32> to vector<8x128xf32>
    %170 = vector.extract_strided_slice %168 {offsets = [0, 128], sizes = [8, 128], strides = [1, 1]} : vector<8x384xf32> to vector<8x128xf32>
    %171 = vector.extract_strided_slice %162 {offsets = [0, 384], sizes = [8, 128], strides = [1, 1]} : vector<8x512xf32> to vector<8x128xf32>
    %172 = math.tanh %171 : vector<8x128xf32>
    %173 = arith.mulf %170, %155 : vector<8x128xf32>
    %174 = arith.mulf %169, %172 : vector<8x128xf32>
    %175 = arith.addf %173, %174 : vector<8x128xf32>
    %c0_60 = arith.constant 0 : index
    %c0_61 = arith.constant 0 : index
    %176 = vector.load %arg5[%c0_60, %c0_61] : memref<128x10xf32, #tpu.memory_space<vmem>>, vector<128x10xf32>
    %cst_62 = arith.constant dense<0.000000e+00> : vector<8x10xf32>
    %177 = tpu.matmul %175, %176, %cst_62 {dimension_numbers = #tpu.dot_dimension_numbers<[1], [0], [0], [1], [0, 0, 1, 1], [], []>} : vector<8x128xf32>, vector<128x10xf32>, vector<8x10xf32> -> vector<8x10xf32>
    %c0_63 = arith.constant 0 : index
    %c0_64 = arith.constant 0 : index
    %178 = vector.load %arg6[%c0_63, %c0_64] : memref<1x10xf32, #tpu.memory_space<vmem>>, vector<1x10xf32>
    %179 = vector.broadcast %178 : vector<1x10xf32> to vector<8x10xf32>
    %180 = arith.addf %177, %179 : vector<8x10xf32>
    %cst_65 = arith.constant dense<0xFF800000> : vector<8xf32>
    %181 = vector.multi_reduction <maximumf>, %180, %cst_65 [1] : vector<8x10xf32> to vector<8xf32>
    %182 = vector.shape_cast %181 : vector<8xf32> to vector<8x1xf32>
    %183 = vector.broadcast %182 : vector<8x1xf32> to vector<8x10xf32>
    %184 = arith.subf %180, %183 : vector<8x10xf32>
    %185 = math.exp %184 : vector<8x10xf32>
    %cst_66 = arith.constant dense<0.000000e+00> : vector<8xf32>
    %186 = vector.multi_reduction <add>, %185, %cst_66 [1] : vector<8x10xf32> to vector<8xf32>
    %187 = vector.shape_cast %186 : vector<8xf32> to vector<8x1xf32>
    %188 = math.log %187 : vector<8x1xf32>
    %189 = vector.broadcast %188 : vector<8x1xf32> to vector<8x10xf32>
    %190 = arith.subf %184, %189 : vector<8x10xf32>
    %c0_67 = arith.constant 0 : index
    %c0_68 = arith.constant 0 : index
    %191 = vector.load %arg7[%c0_67, %c0_68] : memref<8x10xf32, #tpu.memory_space<vmem>>, vector<8x10xf32>
    tpu.vector_store %arg7[%c0_67, %c0_68], %190 {strides = array<i32>} : memref<8x10xf32, #tpu.memory_space<vmem>>, vector<8x10xf32>,
    return
  }
  func.func @transform_0(%arg0: i32) -> (i32, i32, i32) {
    %c0_i32 = arith.constant 0 : i32
    %c0_i32_0 = arith.constant 0 : i32
    %c0_i32_1 = arith.constant 0 : i32
    return %c0_i32, %arg0, %c0_i32_0 : i32, i32, i32
  }
  func.func @transform_1(%arg0: i32) -> (i32, i32) {
    %c0_i32 = arith.constant 0 : i32
    %c0_i32_0 = arith.constant 0 : i32
    %c0_i32_1 = arith.constant 0 : i32
    return %c0_i32, %c0_i32_0 : i32, i32
  }
  func.func @transform_2(%arg0: i32) -> (i32, i32) {
    %c0_i32 = arith.constant 0 : i32
    %c0_i32_0 = arith.constant 0 : i32
    %c0_i32_1 = arith.constant 0 : i32
    return %c0_i32, %c0_i32_0 : i32, i32
  }
  func.func @transform_3(%arg0: i32) -> (i32, i32) {
    %c0_i32 = arith.constant 0 : i32
    %c0_i32_0 = arith.constant 0 : i32
    %c0_i32_1 = arith.constant 0 : i32
    return %c0_i32, %c0_i32_0 : i32, i32
  }
  func.func @transform_4(%arg0: i32) -> (i32, i32) {
    %c0_i32 = arith.constant 0 : i32
    %c0_i32_0 = arith.constant 0 : i32
    %c0_i32_1 = arith.constant 0 : i32
    return %c0_i32, %c0_i32_0 : i32, i32
  }
  func.func @transform_5(%arg0: i32) -> (i32, i32) {
    %c0_i32 = arith.constant 0 : i32
    %c0_i32_0 = arith.constant 0 : i32
    %c0_i32_1 = arith.constant 0 : i32
    return %c0_i32, %c0_i32_0 : i32, i32
  }
  func.func @transform_6(%arg0: i32) -> (i32, i32) {
    %c0_i32 = arith.constant 0 : i32
    %c0_i32_0 = arith.constant 0 : i32
    return %arg0, %c0_i32 : i32, i32
  }
}

module attributes {stable_mosaic.version = 11 : i64} {
  func.func @_lstm_kernel(%arg0: i32, %arg1: memref<8x8x40xf32, #tpu.memory_space<vmem>>, %arg2: memref<40x512xf32, #tpu.memory_space<vmem>>, %arg3: memref<128x512xf32, #tpu.memory_space<vmem>>, %arg4: memref<1x512xf32, #tpu.memory_space<vmem>>, %arg5: memref<128x10xf32, #tpu.memory_space<vmem>>, %arg6: memref<1x10xf32, #tpu.memory_space<vmem>>, %arg7: memref<8x10xf32, #tpu.memory_space<vmem>>, %arg8: memref<8x8x512xf32, #tpu.memory_space<vmem>>) attributes {dimension_semantics = [#tpu.dimension_semantics<parallel>], iteration_bounds = array<i64: 2>, scalar_prefetch = 0 : i64, scratch_operands = 1 : i64, tpu.core_type = #tpu.core_type<tc>, window_params = [{transform_indices = @transform_0, window_bounds = array<i64: 8, 8, 40>}, {pipeline_mode = #tpu.pipeline_mode<synchronous>, transform_indices = @transform_1, window_bounds = array<i64: 40, 512>}, {pipeline_mode = #tpu.pipeline_mode<synchronous>, transform_indices = @transform_2, window_bounds = array<i64: 128, 512>}, {pipeline_mode = #tpu.pipeline_mode<synchronous>, transform_indices = @transform_3, window_bounds = array<i64: 1, 512>}, {pipeline_mode = #tpu.pipeline_mode<synchronous>, transform_indices = @transform_4, window_bounds = array<i64: 128, 10>}, {pipeline_mode = #tpu.pipeline_mode<synchronous>, transform_indices = @transform_5, window_bounds = array<i64: 1, 10>}, {transform_indices = @transform_6, window_bounds = array<i64: 8, 10>}]} {
    %c0 = arith.constant 0 : index
    %c0_0 = arith.constant 0 : index
    %c0_1 = arith.constant 0 : index
    %0 = vector.load %arg1[%c0, %c0_0, %c0_1] : memref<8x8x40xf32, #tpu.memory_space<vmem>>, vector<8x8x40xf32>
    %1 = vector.shape_cast %0 : vector<8x8x40xf32> to vector<64x40xf32>
    %c0_2 = arith.constant 0 : index
    %c0_3 = arith.constant 0 : index
    %2 = vector.load %arg2[%c0_2, %c0_3] : memref<40x512xf32, #tpu.memory_space<vmem>>, vector<40x512xf32>
    %cst = arith.constant dense<0.000000e+00> : vector<64x512xf32>
    %3 = tpu.matmul %1, %2, %cst {dimension_numbers = #tpu.dot_dimension_numbers<[1], [0], [0], [1], [0, 0, 1, 1], [], []>} : vector<64x40xf32>, vector<40x512xf32>, vector<64x512xf32> -> vector<64x512xf32>
    %c0_4 = arith.constant 0 : index
    %c0_5 = arith.constant 0 : index
    %4 = vector.load %arg4[%c0_4, %c0_5] : memref<1x512xf32, #tpu.memory_space<vmem>>, vector<1x512xf32>
    %5 = vector.broadcast %4 : vector<1x512xf32> to vector<64x512xf32>
    %6 = arith.addf %3, %5 : vector<64x512xf32>
    %7 = vector.shape_cast %6 : vector<64x512xf32> to vector<8x8x512xf32>
    %c0_6 = arith.constant 0 : index
    %c0_7 = arith.constant 0 : index
    %c0_8 = arith.constant 0 : index
    %8 = vector.load %arg8[%c0_6, %c0_7, %c0_8] : memref<8x8x512xf32, #tpu.memory_space<vmem>>, vector<8x8x512xf32>
    tpu.vector_store %arg8[%c0_6, %c0_7, %c0_8], %7 {strides = array<i32>} : memref<8x8x512xf32, #tpu.memory_space<vmem>>, vector<8x8x512xf32>,
    %cst_9 = arith.constant 0.000000e+00 : f32
    %9 = vector.broadcast %cst_9 : f32 to vector<8x128xf32>
    %cst_10 = arith.constant 0.000000e+00 : f32
    %10 = vector.broadcast %cst_10 : f32 to vector<8x128xf32>
    %c0_11 = arith.constant 0 : index
    %c0_12 = arith.constant 0 : index
    %c0_13 = arith.constant 0 : index
    %11 = vector.load %arg8[%c0_11, %c0_12, %c0_13] : memref<8x8x512xf32, #tpu.memory_space<vmem>>, vector<1x8x512xf32>
    %12 = vector.shape_cast %11 : vector<1x8x512xf32> to vector<8x512xf32>
    %c0_14 = arith.constant 0 : index
    %c0_15 = arith.constant 0 : index
    %13 = vector.load %arg3[%c0_14, %c0_15] : memref<128x512xf32, #tpu.memory_space<vmem>>, vector<128x512xf32>
    %cst_16 = arith.constant dense<0.000000e+00> : vector<8x512xf32>
    %14 = tpu.matmul %9, %13, %cst_16 {dimension_numbers = #tpu.dot_dimension_numbers<[1], [0], [0], [1], [0, 0, 1, 1], [], []>} : vector<8x128xf32>, vector<128x512xf32>, vector<8x512xf32> -> vector<8x512xf32>
    %15 = arith.addf %12, %14 : vector<8x512xf32>
    %16 = vector.extract_strided_slice %15 {offsets = [0, 0], sizes = [8, 384], strides = [1, 1]} : vector<8x512xf32> to vector<8x384xf32>
    %17 = arith.negf %16 : vector<8x384xf32>
    %18 = math.exp %17 : vector<8x384xf32>
    %cst_17 = arith.constant 1.000000e+00 : f32
    %19 = vector.broadcast %cst_17 : f32 to vector<8x384xf32>
    %20 = arith.addf %19, %18 : vector<8x384xf32>
    %21 = arith.divf %19, %20 : vector<8x384xf32>
    %22 = vector.extract_strided_slice %21 {offsets = [0, 0], sizes = [8, 128], strides = [1, 1]} : vector<8x384xf32> to vector<8x128xf32>
    %23 = vector.extract_strided_slice %21 {offsets = [0, 128], sizes = [8, 128], strides = [1, 1]} : vector<8x384xf32> to vector<8x128xf32>
    %24 = vector.extract_strided_slice %21 {offsets = [0, 256], sizes = [8, 128], strides = [1, 1]} : vector<8x384xf32> to vector<8x128xf32>
    %25 = vector.extract_strided_slice %15 {offsets = [0, 384], sizes = [8, 128], strides = [1, 1]} : vector<8x512xf32> to vector<8x128xf32>
    %26 = math.tanh %25 : vector<8x128xf32>
    %27 = arith.mulf %23, %10 : vector<8x128xf32>
    %28 = arith.mulf %22, %26 : vector<8x128xf32>
    %29 = arith.addf %27, %28 : vector<8x128xf32>
    %30 = math.tanh %29 : vector<8x128xf32>
    %31 = arith.mulf %24, %30 : vector<8x128xf32>
    %c1 = arith.constant 1 : index
    %c0_18 = arith.constant 0 : index
    %c0_19 = arith.constant 0 : index
    %32 = vector.load %arg8[%c1, %c0_18, %c0_19] : memref<8x8x512xf32, #tpu.memory_space<vmem>>, vector<1x8x512xf32>
    %33 = vector.shape_cast %32 : vector<1x8x512xf32> to vector<8x512xf32>
    %c0_20 = arith.constant 0 : index
    %c0_21 = arith.constant 0 : index
    %34 = vector.load %arg3[%c0_20, %c0_21] : memref<128x512xf32, #tpu.memory_space<vmem>>, vector<128x512xf32>
    %cst_22 = arith.constant dense<0.000000e+00> : vector<8x512xf32>
    %35 = tpu.matmul %31, %34, %cst_22 {dimension_numbers = #tpu.dot_dimension_numbers<[1], [0], [0], [1], [0, 0, 1, 1], [], []>} : vector<8x128xf32>, vector<128x512xf32>, vector<8x512xf32> -> vector<8x512xf32>
    %36 = arith.addf %33, %35 : vector<8x512xf32>
    %37 = vector.extract_strided_slice %36 {offsets = [0, 0], sizes = [8, 384], strides = [1, 1]} : vector<8x512xf32> to vector<8x384xf32>
    %38 = arith.negf %37 : vector<8x384xf32>
    %39 = math.exp %38 : vector<8x384xf32>
    %cst_23 = arith.constant 1.000000e+00 : f32
    %40 = vector.broadcast %cst_23 : f32 to vector<8x384xf32>
    %41 = arith.addf %40, %39 : vector<8x384xf32>
    %42 = arith.divf %40, %41 : vector<8x384xf32>
    %43 = vector.extract_strided_slice %42 {offsets = [0, 0], sizes = [8, 128], strides = [1, 1]} : vector<8x384xf32> to vector<8x128xf32>
    %44 = vector.extract_strided_slice %42 {offsets = [0, 128], sizes = [8, 128], strides = [1, 1]} : vector<8x384xf32> to vector<8x128xf32>
    %45 = vector.extract_strided_slice %42 {offsets = [0, 256], sizes = [8, 128], strides = [1, 1]} : vector<8x384xf32> to vector<8x128xf32>
    %46 = vector.extract_strided_slice %36 {offsets = [0, 384], sizes = [8, 128], strides = [1, 1]} : vector<8x512xf32> to vector<8x128xf32>
    %47 = math.tanh %46 : vector<8x128xf32>
    %48 = arith.mulf %44, %29 : vector<8x128xf32>
    %49 = arith.mulf %43, %47 : vector<8x128xf32>
    %50 = arith.addf %48, %49 : vector<8x128xf32>
    %51 = math.tanh %50 : vector<8x128xf32>
    %52 = arith.mulf %45, %51 : vector<8x128xf32>
    %c2 = arith.constant 2 : index
    %c0_24 = arith.constant 0 : index
    %c0_25 = arith.constant 0 : index
    %53 = vector.load %arg8[%c2, %c0_24, %c0_25] : memref<8x8x512xf32, #tpu.memory_space<vmem>>, vector<1x8x512xf32>
    %54 = vector.shape_cast %53 : vector<1x8x512xf32> to vector<8x512xf32>
    %c0_26 = arith.constant 0 : index
    %c0_27 = arith.constant 0 : index
    %55 = vector.load %arg3[%c0_26, %c0_27] : memref<128x512xf32, #tpu.memory_space<vmem>>, vector<128x512xf32>
    %cst_28 = arith.constant dense<0.000000e+00> : vector<8x512xf32>
    %56 = tpu.matmul %52, %55, %cst_28 {dimension_numbers = #tpu.dot_dimension_numbers<[1], [0], [0], [1], [0, 0, 1, 1], [], []>} : vector<8x128xf32>, vector<128x512xf32>, vector<8x512xf32> -> vector<8x512xf32>
    %57 = arith.addf %54, %56 : vector<8x512xf32>
    %58 = vector.extract_strided_slice %57 {offsets = [0, 0], sizes = [8, 384], strides = [1, 1]} : vector<8x512xf32> to vector<8x384xf32>
    %59 = arith.negf %58 : vector<8x384xf32>
    %60 = math.exp %59 : vector<8x384xf32>
    %cst_29 = arith.constant 1.000000e+00 : f32
    %61 = vector.broadcast %cst_29 : f32 to vector<8x384xf32>
    %62 = arith.addf %61, %60 : vector<8x384xf32>
    %63 = arith.divf %61, %62 : vector<8x384xf32>
    %64 = vector.extract_strided_slice %63 {offsets = [0, 0], sizes = [8, 128], strides = [1, 1]} : vector<8x384xf32> to vector<8x128xf32>
    %65 = vector.extract_strided_slice %63 {offsets = [0, 128], sizes = [8, 128], strides = [1, 1]} : vector<8x384xf32> to vector<8x128xf32>
    %66 = vector.extract_strided_slice %63 {offsets = [0, 256], sizes = [8, 128], strides = [1, 1]} : vector<8x384xf32> to vector<8x128xf32>
    %67 = vector.extract_strided_slice %57 {offsets = [0, 384], sizes = [8, 128], strides = [1, 1]} : vector<8x512xf32> to vector<8x128xf32>
    %68 = math.tanh %67 : vector<8x128xf32>
    %69 = arith.mulf %65, %50 : vector<8x128xf32>
    %70 = arith.mulf %64, %68 : vector<8x128xf32>
    %71 = arith.addf %69, %70 : vector<8x128xf32>
    %72 = math.tanh %71 : vector<8x128xf32>
    %73 = arith.mulf %66, %72 : vector<8x128xf32>
    %c3 = arith.constant 3 : index
    %c0_30 = arith.constant 0 : index
    %c0_31 = arith.constant 0 : index
    %74 = vector.load %arg8[%c3, %c0_30, %c0_31] : memref<8x8x512xf32, #tpu.memory_space<vmem>>, vector<1x8x512xf32>
    %75 = vector.shape_cast %74 : vector<1x8x512xf32> to vector<8x512xf32>
    %c0_32 = arith.constant 0 : index
    %c0_33 = arith.constant 0 : index
    %76 = vector.load %arg3[%c0_32, %c0_33] : memref<128x512xf32, #tpu.memory_space<vmem>>, vector<128x512xf32>
    %cst_34 = arith.constant dense<0.000000e+00> : vector<8x512xf32>
    %77 = tpu.matmul %73, %76, %cst_34 {dimension_numbers = #tpu.dot_dimension_numbers<[1], [0], [0], [1], [0, 0, 1, 1], [], []>} : vector<8x128xf32>, vector<128x512xf32>, vector<8x512xf32> -> vector<8x512xf32>
    %78 = arith.addf %75, %77 : vector<8x512xf32>
    %79 = vector.extract_strided_slice %78 {offsets = [0, 0], sizes = [8, 384], strides = [1, 1]} : vector<8x512xf32> to vector<8x384xf32>
    %80 = arith.negf %79 : vector<8x384xf32>
    %81 = math.exp %80 : vector<8x384xf32>
    %cst_35 = arith.constant 1.000000e+00 : f32
    %82 = vector.broadcast %cst_35 : f32 to vector<8x384xf32>
    %83 = arith.addf %82, %81 : vector<8x384xf32>
    %84 = arith.divf %82, %83 : vector<8x384xf32>
    %85 = vector.extract_strided_slice %84 {offsets = [0, 0], sizes = [8, 128], strides = [1, 1]} : vector<8x384xf32> to vector<8x128xf32>
    %86 = vector.extract_strided_slice %84 {offsets = [0, 128], sizes = [8, 128], strides = [1, 1]} : vector<8x384xf32> to vector<8x128xf32>
    %87 = vector.extract_strided_slice %84 {offsets = [0, 256], sizes = [8, 128], strides = [1, 1]} : vector<8x384xf32> to vector<8x128xf32>
    %88 = vector.extract_strided_slice %78 {offsets = [0, 384], sizes = [8, 128], strides = [1, 1]} : vector<8x512xf32> to vector<8x128xf32>
    %89 = math.tanh %88 : vector<8x128xf32>
    %90 = arith.mulf %86, %71 : vector<8x128xf32>
    %91 = arith.mulf %85, %89 : vector<8x128xf32>
    %92 = arith.addf %90, %91 : vector<8x128xf32>
    %93 = math.tanh %92 : vector<8x128xf32>
    %94 = arith.mulf %87, %93 : vector<8x128xf32>
    %c4 = arith.constant 4 : index
    %c0_36 = arith.constant 0 : index
    %c0_37 = arith.constant 0 : index
    %95 = vector.load %arg8[%c4, %c0_36, %c0_37] : memref<8x8x512xf32, #tpu.memory_space<vmem>>, vector<1x8x512xf32>
    %96 = vector.shape_cast %95 : vector<1x8x512xf32> to vector<8x512xf32>
    %c0_38 = arith.constant 0 : index
    %c0_39 = arith.constant 0 : index
    %97 = vector.load %arg3[%c0_38, %c0_39] : memref<128x512xf32, #tpu.memory_space<vmem>>, vector<128x512xf32>
    %cst_40 = arith.constant dense<0.000000e+00> : vector<8x512xf32>
    %98 = tpu.matmul %94, %97, %cst_40 {dimension_numbers = #tpu.dot_dimension_numbers<[1], [0], [0], [1], [0, 0, 1, 1], [], []>} : vector<8x128xf32>, vector<128x512xf32>, vector<8x512xf32> -> vector<8x512xf32>
    %99 = arith.addf %96, %98 : vector<8x512xf32>
    %100 = vector.extract_strided_slice %99 {offsets = [0, 0], sizes = [8, 384], strides = [1, 1]} : vector<8x512xf32> to vector<8x384xf32>
    %101 = arith.negf %100 : vector<8x384xf32>
    %102 = math.exp %101 : vector<8x384xf32>
    %cst_41 = arith.constant 1.000000e+00 : f32
    %103 = vector.broadcast %cst_41 : f32 to vector<8x384xf32>
    %104 = arith.addf %103, %102 : vector<8x384xf32>
    %105 = arith.divf %103, %104 : vector<8x384xf32>
    %106 = vector.extract_strided_slice %105 {offsets = [0, 0], sizes = [8, 128], strides = [1, 1]} : vector<8x384xf32> to vector<8x128xf32>
    %107 = vector.extract_strided_slice %105 {offsets = [0, 128], sizes = [8, 128], strides = [1, 1]} : vector<8x384xf32> to vector<8x128xf32>
    %108 = vector.extract_strided_slice %105 {offsets = [0, 256], sizes = [8, 128], strides = [1, 1]} : vector<8x384xf32> to vector<8x128xf32>
    %109 = vector.extract_strided_slice %99 {offsets = [0, 384], sizes = [8, 128], strides = [1, 1]} : vector<8x512xf32> to vector<8x128xf32>
    %110 = math.tanh %109 : vector<8x128xf32>
    %111 = arith.mulf %107, %92 : vector<8x128xf32>
    %112 = arith.mulf %106, %110 : vector<8x128xf32>
    %113 = arith.addf %111, %112 : vector<8x128xf32>
    %114 = math.tanh %113 : vector<8x128xf32>
    %115 = arith.mulf %108, %114 : vector<8x128xf32>
    %c5 = arith.constant 5 : index
    %c0_42 = arith.constant 0 : index
    %c0_43 = arith.constant 0 : index
    %116 = vector.load %arg8[%c5, %c0_42, %c0_43] : memref<8x8x512xf32, #tpu.memory_space<vmem>>, vector<1x8x512xf32>
    %117 = vector.shape_cast %116 : vector<1x8x512xf32> to vector<8x512xf32>
    %c0_44 = arith.constant 0 : index
    %c0_45 = arith.constant 0 : index
    %118 = vector.load %arg3[%c0_44, %c0_45] : memref<128x512xf32, #tpu.memory_space<vmem>>, vector<128x512xf32>
    %cst_46 = arith.constant dense<0.000000e+00> : vector<8x512xf32>
    %119 = tpu.matmul %115, %118, %cst_46 {dimension_numbers = #tpu.dot_dimension_numbers<[1], [0], [0], [1], [0, 0, 1, 1], [], []>} : vector<8x128xf32>, vector<128x512xf32>, vector<8x512xf32> -> vector<8x512xf32>
    %120 = arith.addf %117, %119 : vector<8x512xf32>
    %121 = vector.extract_strided_slice %120 {offsets = [0, 0], sizes = [8, 384], strides = [1, 1]} : vector<8x512xf32> to vector<8x384xf32>
    %122 = arith.negf %121 : vector<8x384xf32>
    %123 = math.exp %122 : vector<8x384xf32>
    %cst_47 = arith.constant 1.000000e+00 : f32
    %124 = vector.broadcast %cst_47 : f32 to vector<8x384xf32>
    %125 = arith.addf %124, %123 : vector<8x384xf32>
    %126 = arith.divf %124, %125 : vector<8x384xf32>
    %127 = vector.extract_strided_slice %126 {offsets = [0, 0], sizes = [8, 128], strides = [1, 1]} : vector<8x384xf32> to vector<8x128xf32>
    %128 = vector.extract_strided_slice %126 {offsets = [0, 128], sizes = [8, 128], strides = [1, 1]} : vector<8x384xf32> to vector<8x128xf32>
    %129 = vector.extract_strided_slice %126 {offsets = [0, 256], sizes = [8, 128], strides = [1, 1]} : vector<8x384xf32> to vector<8x128xf32>
    %130 = vector.extract_strided_slice %120 {offsets = [0, 384], sizes = [8, 128], strides = [1, 1]} : vector<8x512xf32> to vector<8x128xf32>
    %131 = math.tanh %130 : vector<8x128xf32>
    %132 = arith.mulf %128, %113 : vector<8x128xf32>
    %133 = arith.mulf %127, %131 : vector<8x128xf32>
    %134 = arith.addf %132, %133 : vector<8x128xf32>
    %135 = math.tanh %134 : vector<8x128xf32>
    %136 = arith.mulf %129, %135 : vector<8x128xf32>
    %c6 = arith.constant 6 : index
    %c0_48 = arith.constant 0 : index
    %c0_49 = arith.constant 0 : index
    %137 = vector.load %arg8[%c6, %c0_48, %c0_49] : memref<8x8x512xf32, #tpu.memory_space<vmem>>, vector<1x8x512xf32>
    %138 = vector.shape_cast %137 : vector<1x8x512xf32> to vector<8x512xf32>
    %c0_50 = arith.constant 0 : index
    %c0_51 = arith.constant 0 : index
    %139 = vector.load %arg3[%c0_50, %c0_51] : memref<128x512xf32, #tpu.memory_space<vmem>>, vector<128x512xf32>
    %cst_52 = arith.constant dense<0.000000e+00> : vector<8x512xf32>
    %140 = tpu.matmul %136, %139, %cst_52 {dimension_numbers = #tpu.dot_dimension_numbers<[1], [0], [0], [1], [0, 0, 1, 1], [], []>} : vector<8x128xf32>, vector<128x512xf32>, vector<8x512xf32> -> vector<8x512xf32>
    %141 = arith.addf %138, %140 : vector<8x512xf32>
    %142 = vector.extract_strided_slice %141 {offsets = [0, 0], sizes = [8, 384], strides = [1, 1]} : vector<8x512xf32> to vector<8x384xf32>
    %143 = arith.negf %142 : vector<8x384xf32>
    %144 = math.exp %143 : vector<8x384xf32>
    %cst_53 = arith.constant 1.000000e+00 : f32
    %145 = vector.broadcast %cst_53 : f32 to vector<8x384xf32>
    %146 = arith.addf %145, %144 : vector<8x384xf32>
    %147 = arith.divf %145, %146 : vector<8x384xf32>
    %148 = vector.extract_strided_slice %147 {offsets = [0, 0], sizes = [8, 128], strides = [1, 1]} : vector<8x384xf32> to vector<8x128xf32>
    %149 = vector.extract_strided_slice %147 {offsets = [0, 128], sizes = [8, 128], strides = [1, 1]} : vector<8x384xf32> to vector<8x128xf32>
    %150 = vector.extract_strided_slice %147 {offsets = [0, 256], sizes = [8, 128], strides = [1, 1]} : vector<8x384xf32> to vector<8x128xf32>
    %151 = vector.extract_strided_slice %141 {offsets = [0, 384], sizes = [8, 128], strides = [1, 1]} : vector<8x512xf32> to vector<8x128xf32>
    %152 = math.tanh %151 : vector<8x128xf32>
    %153 = arith.mulf %149, %134 : vector<8x128xf32>
    %154 = arith.mulf %148, %152 : vector<8x128xf32>
    %155 = arith.addf %153, %154 : vector<8x128xf32>
    %156 = math.tanh %155 : vector<8x128xf32>
    %157 = arith.mulf %150, %156 : vector<8x128xf32>
    %c7 = arith.constant 7 : index
    %c0_54 = arith.constant 0 : index
    %c0_55 = arith.constant 0 : index
    %158 = vector.load %arg8[%c7, %c0_54, %c0_55] : memref<8x8x512xf32, #tpu.memory_space<vmem>>, vector<1x8x512xf32>
    %159 = vector.shape_cast %158 : vector<1x8x512xf32> to vector<8x512xf32>
    %c0_56 = arith.constant 0 : index
    %c0_57 = arith.constant 0 : index
    %160 = vector.load %arg3[%c0_56, %c0_57] : memref<128x512xf32, #tpu.memory_space<vmem>>, vector<128x512xf32>
    %cst_58 = arith.constant dense<0.000000e+00> : vector<8x512xf32>
    %161 = tpu.matmul %157, %160, %cst_58 {dimension_numbers = #tpu.dot_dimension_numbers<[1], [0], [0], [1], [0, 0, 1, 1], [], []>} : vector<8x128xf32>, vector<128x512xf32>, vector<8x512xf32> -> vector<8x512xf32>
    %162 = arith.addf %159, %161 : vector<8x512xf32>
    %163 = vector.extract_strided_slice %162 {offsets = [0, 0], sizes = [8, 384], strides = [1, 1]} : vector<8x512xf32> to vector<8x384xf32>
    %164 = arith.negf %163 : vector<8x384xf32>
    %165 = math.exp %164 : vector<8x384xf32>
    %cst_59 = arith.constant 1.000000e+00 : f32
    %166 = vector.broadcast %cst_59 : f32 to vector<8x384xf32>
    %167 = arith.addf %166, %165 : vector<8x384xf32>
    %168 = arith.divf %166, %167 : vector<8x384xf32>
    %169 = vector.extract_strided_slice %168 {offsets = [0, 0], sizes = [8, 128], strides = [1, 1]} : vector<8x384xf32> to vector<8x128xf32>
    %170 = vector.extract_strided_slice %168 {offsets = [0, 128], sizes = [8, 128], strides = [1, 1]} : vector<8x384xf32> to vector<8x128xf32>
    %171 = vector.extract_strided_slice %162 {offsets = [0, 384], sizes = [8, 128], strides = [1, 1]} : vector<8x512xf32> to vector<8x128xf32>
    %172 = math.tanh %171 : vector<8x128xf32>
    %173 = arith.mulf %170, %155 : vector<8x128xf32>
    %174 = arith.mulf %169, %172 : vector<8x128xf32>
    %175 = arith.addf %173, %174 : vector<8x128xf32>
    %c0_60 = arith.constant 0 : index
    %c0_61 = arith.constant 0 : index
    %176 = vector.load %arg5[%c0_60, %c0_61] : memref<128x10xf32, #tpu.memory_space<vmem>>, vector<128x10xf32>
    %cst_62 = arith.constant dense<0.000000e+00> : vector<8x10xf32>
    %177 = tpu.matmul %175, %176, %cst_62 {dimension_numbers = #tpu.dot_dimension_numbers<[1], [0], [0], [1], [0, 0, 1, 1], [], []>} : vector<8x128xf32>, vector<128x10xf32>, vector<8x10xf32> -> vector<8x10xf32>
    %c0_63 = arith.constant 0 : index
    %c0_64 = arith.constant 0 : index
    %178 = vector.load %arg6[%c0_63, %c0_64] : memref<1x10xf32, #tpu.memory_space<vmem>>, vector<1x10xf32>
    %179 = vector.broadcast %178 : vector<1x10xf32> to vector<8x10xf32>
    %180 = arith.addf %177, %179 : vector<8x10xf32>
    %cst_65 = arith.constant dense<0xFF800000> : vector<8xf32>
    %181 = vector.multi_reduction <maximumf>, %180, %cst_65 [1] : vector<8x10xf32> to vector<8xf32>
    %182 = vector.shape_cast %181 : vector<8xf32> to vector<8x1xf32>
    %183 = vector.broadcast %182 : vector<8x1xf32> to vector<8x10xf32>
    %184 = arith.subf %180, %183 : vector<8x10xf32>
    %185 = math.exp %184 : vector<8x10xf32>
    %cst_66 = arith.constant dense<0.000000e+00> : vector<8xf32>
    %186 = vector.multi_reduction <add>, %185, %cst_66 [1] : vector<8x10xf32> to vector<8xf32>
    %187 = vector.shape_cast %186 : vector<8xf32> to vector<8x1xf32>
    %188 = math.log %187 : vector<8x1xf32>
    %189 = vector.broadcast %188 : vector<8x1xf32> to vector<8x10xf32>
    %190 = arith.subf %184, %189 : vector<8x10xf32>
    %c0_67 = arith.constant 0 : index
    %c0_68 = arith.constant 0 : index
    %191 = vector.load %arg7[%c0_67, %c0_68] : memref<8x10xf32, #tpu.memory_space<vmem>>, vector<8x10xf32>
    tpu.vector_store %arg7[%c0_67, %c0_68], %190 {strides = array<i32>} : memref<8x10xf32, #tpu.memory_space<vmem>>, vector<8x10xf32>,
    return
  }
  func.func @transform_0(%arg0: i32) -> (i32, i32, i32) {
    %c0_i32 = arith.constant 0 : i32
    %c0_i32_0 = arith.constant 0 : i32
    %c0_i32_1 = arith.constant 0 : i32
    return %c0_i32, %arg0, %c0_i32_0 : i32, i32, i32
  }
  func.func @transform_1(%arg0: i32) -> (i32, i32) {
    %c0_i32 = arith.constant 0 : i32
    %c0_i32_0 = arith.constant 0 : i32
    %c0_i32_1 = arith.constant 0 : i32
    return %c0_i32, %c0_i32_0 : i32, i32
  }
  func.func @transform_2(%arg0: i32) -> (i32, i32) {
    %c0_i32 = arith.constant 0 : i32
    %c0_i32_0 = arith.constant 0 : i32
    %c0_i32_1 = arith.constant 0 : i32
    return %c0_i32, %c0_i32_0 : i32, i32
  }
  func.func @transform_3(%arg0: i32) -> (i32, i32) {
    %c0_i32 = arith.constant 0 : i32
    %c0_i32_0 = arith.constant 0 : i32
    %c0_i32_1 = arith.constant 0 : i32
    return %c0_i32, %c0_i32_0 : i32, i32
  }
  func.func @transform_4(%arg0: i32) -> (i32, i32) {
    %c0_i32 = arith.constant 0 : i32
    %c0_i32_0 = arith.constant 0 : i32
    %c0_i32_1 = arith.constant 0 : i32
    return %c0_i32, %c0_i32_0 : i32, i32
  }
  func.func @transform_5(%arg0: i32) -> (i32, i32) {
    %c0_i32 = arith.constant 0 : i32
    %c0_i32_0 = arith.constant 0 : i32
    %c0_i32_1 = arith.constant 0 : i32
    return %c0_i32, %c0_i32_0 : i32, i32
  }
  func.func @transform_6(%arg0: i32) -> (i32, i32) {
    %c0_i32 = arith.constant 0 : i32
    %c0_i32_0 = arith.constant 0 : i32
    return %arg0, %c0_i32 : i32, i32
  }
}

</mosaic_0001>

<bundles_post_ra>
// kernel: tpu_custom_call.1
= control target key start
LH: loop header
LB: loop body
LE: loop exit
PB: predicated region body
PF: predicated region fallthrough
CT: control target
= control target key end

     0   :  { %11 = vsyncpa [#allocation5], 0  ;;  %s4113_s0 = inlined_call_operand.vmem [shape: f32[8,16,40], index: 0, kind: input, shape index: {}]   ;;  %s4114_s1 = inlined_call_operand.hbm [shape: f32[40,512], index: 1, kind: input, shape index: {}]   ;;  %s4115_s2 = inlined_call_operand.hbm [shape: f32[128,512], index: 2, kind: input, shape index: {}]   ;;  %s4116_s3 = inlined_call_operand.vmem [shape: f32[1,512], index: 3, kind: input, shape index: {}]   ;;  %s4117_s4 = inlined_call_operand.vmem [shape: f32[128,10], index: 4, kind: input, shape index: {}]   ;;  %s4118_s5 = inlined_call_operand.vmem [shape: f32[1,10], index: 5, kind: input, shape index: {}]   ;;  %s4119_s6 = inlined_call_operand.hbm [shape: f32[16,10], index: 6, kind: output, shape index: {}]  }
   0x1   :  { %12 = vsyncpa [#allocation8], 0 }
   0x2   :  { %13 = vsyncpa [#allocation6], 0 }
   0x3   :  { %15 = vsyncpa [#allocation6 + $0x1], 0  ;;  %s3420_s21 = smov 0   ;;  %s3422_s22 = smov 0  }
   0x4   :  { %s3424_s23 = smov 0   ;;  %s3426_s24 = smov 0  }
   0x5 LB: > { %s3441_s25 = sadd.s32 4294967295, %s3375_s24   ;;  %s2335_s26 = sadd.s32 4294967294, %s3375_s24   ;;  %s3375_s24 = sphi %s3426_s24, %s4141_s24   ;;  %s3371_s23 = sphi %s3424_s23, %s4140_s23   ;;  %s3367_s22 = sphi %s3422_s22, %s4139_s22   ;;  %s3363_s21 = sphi %s3420_s21, %s4138_s21  }
   0x6   : > { %s3445_s27 = sadd.s32 1, %s3375_s24   ;;  %s28_s28 = sadd.s32 1, %s3371_s23 }
   0x7   : > { %s25_s29 = ssub.s32 %s3375_s24, %s3445_s27  ;;  %p35_p0 = scmp.ne.s32.totalorder %s3371_s23, %s3367_s22 }
   0x8   : > { %p26_p1 = scmp.eq.s32.totalorder %s25_s29, 0  ;;  %p36_p2 = scmp.eq.s32.totalorder %s3375_s24, 0 }
   0x9   : > { %p170_p3 = scmp.eq.s32.totalorder %s3441_s25, 1  ;;  %p175_p4 = scmp.ne.s32.totalorder %s3367_s22, %s3363_s21 }
   0xa   : > { %s3457_s30 = scalar_select %p26_p1, %s3371_s23, %s28_s28  }
   0xb   : > { %p3459_p5 = por %p36_p2, %p35_p0  ;;  %p3463_p6 = por %p170_p3, %p35_p0 }
   0xc   : > { %4123 = sst [smem:[#allocation13_spill]] %s3457_s30  ;;  %p176_p7 = scmp.eq.s32.totalorder %s2335_s26, 1 }
   0xd   : > { %s4124_s7 = scalar_select %p3459_p5, 1, 0 }
   0xe   : > { %s4125_s8 = scalar_select %p3463_p6, 1, 0 }
   0xf   : > { %p2336_p8 = scmp.ge.s32.totalorder %s3375_s24, 1  ;;  %p183_p9 = scmp.lt.s32.totalorder %s3375_s24, 3 }
  0x10   : > { %p3469_p10 = por %p176_p7, %p175_p4  ;;  %p4120_p11 = scmp.eq.s32.totalorder %s3441_s25, 0 }
  0x11   : > { %p3474_p12 = pnand %p2336_p8, %p183_p9  ;;  %s3377_s11 = smov [#allocation4]  }
  0x12   : > { %s4126_s9 = scalar_select %p3469_p10, 1, 0 }
  0x13   : > { %s4127_s10 = scalar_select %p3474_p12, 1, 0 }
  0x14   : > { %s195_s12 = sshll.u32 %s3377_s11, 4  ;;  %p3068_p13 = pneg %p3474_p12  ;;  %s196_s12 = int_to_ptr.vmem [resolvable:$true] %s195_s12 }
  0x15   : > { %s3378_s14 = smov [#allocation7]   ;;  %s3249_s18 = scalar_lea.hbm %s4114_s1, 2560 }
  0x16   : > { %p3482_p0 = pnand %p4120_p11, %p3068_p13  ;;  %s208_s15 = sshll.u32 %s3378_s14, 4  ;;  %s3486_s15 = int_to_ptr.vmem [resolvable:$true] %s208_s15 }
  0x17   : > { %p3250_p1 = scmp.ne.s32.totalorder %s4114_s1, %s3249_s18  ;;  %p3256_p7 = scmp.lt.u32.totalorder %s3249_s18, %s4114_s1 }
  0x18   : > { %p3251_p2 = pneg %p3482_p0 }
  0x1a   : > { %p3252_p3 = pnand %p3251_p2, %p3250_p1 }
  0x1c   : > { %p3253_p4 = pneg %p3252_p3 }
  0x1e   : > { %p3258_p8 = pnand %p3256_p7, %p3253_p4 }
  0x20   : > { %3261 = shalt.err (!%p3258_p8)
}
  0x21   : > { %s3262_s29 = scalar_lea.vmem %s196_s12, 2560  ;;  %p3270_p10 = scmp.lt.s32.totalorder %s196_s12, %s196_s12 }
  0x22   : > { %p3263_p9 = scmp.ne.s32.totalorder %s196_s12, %s3262_s29  ;;  %p3271_p6 = scmp.lt.s32.totalorder %s3262_s29, %s3262_s29 }
  0x24   : > { %p3265_p13 = pnand %p3263_p9, %p3251_p2  ;;  %p3272_p12 = por %p3271_p6, %p3270_p10 }
  0x26   : > { %p3266_p11 = pneg %p3265_p13 }
  0x28   : > { %p3273_p5 = pnand %p3272_p12, %p3266_p11 }
  0x2a   : > { %3276 = shalt.err (!%p3273_p5)
}
  0x2b   : > { %s3379_s11 = smov 512   ;;  %s3380_s14 = smov 32  }
  0x2c   : > { %3071 = dma.hbm_to_vmem [thread:$0]  (!%p3482_p0), %s4114_s1, 2560, %s196_s12, [#allocation5], %s3379_s11, %s3379_s11, %s3380_s14  }
  0x2d   : > { %s3277_s20 = scalar_lea.hbm %s4115_s2, 8192 }
  0x2e   : > { %p3278_p1 = scmp.ne.s32.totalorder %s4115_s2, %s3277_s20  ;;  %p3284_p10 = scmp.lt.u32.totalorder %s3277_s20, %s4115_s2 }
  0x30   : > { %p3280_p5 = pnand %p3278_p1, %p3251_p2 }
  0x32   : > { %p3281_p6 = pneg %p3280_p5 }
  0x34   : > { %p3286_p11 = pnand %p3284_p10, %p3281_p6 }
  0x36   : > { %3289 = shalt.err (!%p3286_p11)
}
  0x37   : > { %s3290_s12 = scalar_lea.vmem %s3486_s15, 8192  ;;  %p3298_p7 = scmp.lt.s32.totalorder %s3486_s15, %s3486_s15 }
  0x38   : > { %p3291_p12 = scmp.ne.s32.totalorder %s3486_s15, %s3290_s12  ;;  %p3299_p8 = scmp.lt.s32.totalorder %s3290_s12, %s3290_s12 }
  0x3a   : > { %p3293_p3 = pnand %p3291_p12, %p3251_p2  ;;  %p3300_p9 = por %p3299_p8, %p3298_p7 }
  0x3c   : > { %p3294_p4 = pneg %p3293_p3 }
  0x3e   : > { %p3301_p13 = pnand %p3300_p9, %p3294_p4 }
  0x40   : > { %3304 = shalt.err (!%p3301_p13)
}
  0x41   : > { %3074 = dma.hbm_to_vmem [thread:$0]  (!%p3482_p0), %s4115_s2, 8192, %s3486_s15, [#allocation8], %s3379_s11, %s3379_s11, %s3380_s14  }
  0x42   : > { %p2339_p1 = scmp.ge.s32.totalorder %s3375_s24, 2 }
  0x43   : > { %p4129_p2 = scmp.ne.s32.totalorder (!%p2339_p1), %s4124_s7, 0 }
  0x44   : > { %227 = sbr.rel (%p2339_p1) target bundleno = 83 (0x53), region = 36 }
  0x4b   : > { %230 = sbr.rel (!%p4129_p2) target bundleno = 83 (0x53), region = 40  ;;  %s232_s17 = sand.u32 (%p4129_p2), 1, %s3371_s23  }
  0x4c   : > { %s2341_s18 = sshll.u32 (%p4129_p2), %s3375_s24, 3  ;;  %s2340_s19 = sshll.u32 (%p4129_p2), %s232_s17, 6 }
  0x4d   : > { %s236_s26 = scalar_lea.vmem (%p4129_p2), %s4113_s0, %s2341_s18  ;;  %s234_s15 = scalar_lea.vmem (%p4129_p2), [#allocation3], %s2340_s19 }
  0x4e   : > { %v278_v0 = vld [vmem:[%s236_s26] sm:$0xff] (%p4129_p2)  ;;  %v280_v1 = vld [vmem:[%s236_s26 + $0x10] sm:$0xff] (%p4129_p2) }
  0x4f   : > { %v282_v2 = vld [vmem:[%s236_s26 + $0x20] sm:$0xff] (%p4129_p2)  ;;  %279 = vst [vmem:[%s234_s15] sm:$0xff] (%p4129_p2), %v278_v0  ;;  %281 = vst [vmem:[%s234_s15 + $0x8] sm:$0xff] (%p4129_p2), %v280_v1  ;;  %v284_v3 = vld [vmem:[%s236_s26 + $0x30] sm:$0xff] (%p4129_p2) }
  0x50   : > { %283 = vst [vmem:[%s234_s15 + $0x10] sm:$0xff] (%p4129_p2), %v282_v2  ;;  %v286_v4 = vld [vmem:[%s236_s26 + $0x40] sm:$0xff] (%p4129_p2)  ;;  %v288_v5 = vld [vmem:[%s236_s26 + $0x50] sm:$0xff] (%p4129_p2)  ;;  %285 = vst [vmem:[%s234_s15 + $0x18] sm:$0xff] (%p4129_p2), %v284_v3 }
  0x51   : > { %287 = vst [vmem:[%s234_s15 + $0x20] sm:$0xff] (%p4129_p2), %v286_v4  ;;  %289 = vst [vmem:[%s234_s15 + $0x28] sm:$0xff] (%p4129_p2), %v288_v5  ;;  %v290_v6 = vld [vmem:[%s236_s26 + $0x60] sm:$0xff] (%p4129_p2)  ;;  %v292_v7 = vld [vmem:[%s236_s26 + $0x70] sm:$0xff] (%p4129_p2) }
  0x52   : > { %291 = vst [vmem:[%s234_s15 + $0x30] sm:$0xff] %v290_v6  ;;  %293 = vst [vmem:[%s234_s15 + $0x38] sm:$0xff] %v292_v7 }
  0x53 PF: > { %p4130_p0 = scmp.ne.s32.totalorder %s4127_s10, 0 }
  0x54   : > { %s3548_s7 = sand.u32 (!%p4130_p0), 1, %s3367_s22   ;;  %p4131_p5 = scmp.eq.s32.totalorder (!%p4130_p0), %s3441_s25, 0 }
  0x55   : > { %302 = sbr.rel (%p4130_p0) target bundleno = 2738 (0xab2), region = 78  ;;  %s2343_s11 = sshll.u32 (!%p4130_p0), %s3548_s7, 6 }
  0x56   : > { %s3551_s14 = scalar_lea.vmem (!%p4130_p0), [#allocation3], %s2343_s11 }
  0x5c   : > { %3350 = dma.done.wait (%p4131_p5), [#allocation5], 2560   ;;  %p4132_p6 = pmov %p4131_p5 }
  0x5d   : > { %p4133_p10 = pmov %p4131_p5 }
  0x5e   : > { %3352 = vsyncadd (%p4132_p6), [#allocation5], 4294964736 }
  0x5f   : > { %3354 = dma.done.wait (%p4133_p10), [#allocation8], 8192   ;;  %p4134_p11 = pmov %p4131_p5 }
  0x60   : > { %v3381_v8 = vmov 0.0   ;;  %v351_v9 = vld [vmem:[#allocation4 + $0x8] sm:$0xff]  ;;  %v353_v11 = vld [vmem:[#allocation4 + $0x18] sm:$0xff]  ;;  %v350_v14 = vld [vmem:[#allocation4] sm:$0xff]  ;;  %vm392_vm0 = vcmask 326656   ;;  %vm3383_vm1 = vmmov 0  }
  0x61   : > { %3356 = vsyncadd (%p4134_p11), [#allocation8], 4294959104  ;;  %481 = vmatprep.mubr.f32.mxu0 %v3381_v8  ;;  %594 = vmatprep.mubr.f32.mxu1 %v3381_v8  ;;  %v355_v10 = vld [vmem:[#allocation4 + $0x28] sm:$0xff]  ;;  %v357_v13 = vld [vmem:[#allocation4 + $0x38] sm:$0xff]  ;;  %vm2220_vm2 = vcmask 80896   ;;  %s2346_s17 = sshll.u32 %s3548_s7, 3 }
  0x62   : > { %v2443_v12 = vpack.c.bf16 %v355_v10, %v351_v9  ;;  %v354_v15 = vld [vmem:[#allocation4 + $0x20] sm:$0xff]  ;;  %v2451_v16 = vpack.c.bf16 %v357_v13, %v353_v11  ;;  %v352_v18 = vld [vmem:[#allocation4 + $0x10] sm:$0xff]  ;;  %v359_v20 = vld [vmem:[#allocation4 + $0x48] sm:$0xff]  ;;  %s2388_s18 = sshll.u32 %s3441_s25, 7  ;;  %s341_s19 = scalar_lea.vmem [#allocation9], %s2346_s17 }
  0x63   : > { %v2445_v17 = vpack.c.bf16 %v354_v15, %v350_v14  ;;  %v356_v19 = vld [vmem:[#allocation4 + $0x30] sm:$0xff]  ;;  %v363_v22 = vld [vmem:[#allocation4 + $0x68] sm:$0xff]  ;;  %v361_v23 = vld [vmem:[#allocation4 + $0x58] sm:$0xff]  ;;  %s2248_s20 = sshll.u32 %s341_s19, 4  ;;  %s4068_s15 = scalar_lea.hbm %s4119_s6, %s2388_s18  ;;  %s4070_s20 = int_to_ptr.vmem [resolvable:$true] %s2248_s20 }
  0x64   : > { %2444 = vmatprep.subr.bf16.mxu0 %v2443_v12  ;;  %v2453_v21 = vpack.c.bf16 %v356_v19, %v352_v18  ;;  %v365_v24 = vld [vmem:[#allocation4 + $0x78] sm:$0xff]  ;;  %2452 = vmatprep.subr.bf16.mxu1 %v2451_v16  ;;  %v2447_v25 = vpack.c.bf16 %v363_v22, %v359_v20  ;;  %v358_v27 = vld [vmem:[#allocation4 + $0x40] sm:$0xff]  ;;  %v360_v29 = vld [vmem:[#allocation4 + $0x50] sm:$0xff]  ;;  %s2235_s11 = scalar_lea.sflag [#allocation6], %s3548_s7  ;;  %p4135_p3 = scmp.ne.s32.totalorder %s4125_s8, 0 }
  0x65   : > { %2446 = vmatpush1.bf16.msra.mxu0 %v2445_v17  ;;  %v2455_v26 = vpack.c.bf16 %v365_v24, %v361_v23  ;;  %v362_v28 = vld [vmem:[#allocation4 + $0x60] sm:$0xff]  ;;  %v364_v31 = vld [vmem:[#allocation4 + $0x70] sm:$0xff]  ;;  %v367_v33 = vld [vmem:[#allocation4 + $0x88] sm:$0xff]  ;;  %s3384_s25 = smov [#allocation9]  }
  0x66   : > { %2454 = vmatpush1.bf16.msra.mxu1 %v2453_v21  ;;  %v2449_v30 = vpack.c.bf16 %v362_v28, %v358_v27  ;;  %2448 = vmatprep.subr.bf16.mxu0 %v2447_v25  ;;  %v2457_v32 = vpack.c.bf16 %v364_v31, %v360_v29  ;;  %v369_v34 = vld [vmem:[#allocation4 + $0x98] sm:$0xff]  ;;  %v680_v35 = vld [vmem:[#allocation7 + $0x8] sm:$0xff]  ;;  %v679_v39 = vld [vmem:[#allocation7] sm:$0xff]  ;;  %s3309_s10 = sshll.u32 %s3384_s25, 4  ;;  %s3310_s10 = int_to_ptr.vmem [resolvable:$false] %s3309_s10 }
  0x67   : > { %2456 = vmatprep.subr.bf16.mxu1 %v2455_v26  ;;  %v684_v36 = vld [vmem:[#allocation7 + $0x28] sm:$0xff]  ;;  %v682_v37 = vld [vmem:[#allocation7 + $0x18] sm:$0xff]  ;;  %v683_v40 = vld [vmem:[#allocation7 + $0x20] sm:$0xff]  ;;  %s3311_s28 = scalar_lea.vmem %s3310_s10, 256  ;;  %p3312_p8 = scmp.lt.s32.totalorder %s4070_s20, %s3310_s10 }
  0x68   : > { %v686_v38 = vld [vmem:[#allocation7 + $0x38] sm:$0xff]  ;;  %v366_v41 = vld [vmem:[#allocation4 + $0x80] sm:$0xff]  ;;  %v681_v42 = vld [vmem:[#allocation7 + $0x10] sm:$0xff]  ;;  %v3564_v46 = vpack.c.bf16 %v684_v36, %v680_v35  ;;  %v3568_v48 = vpack.c.bf16 %v683_v40, %v679_v39 }
  0x69   : > { %2450 = vmatpush1.bf16.msra.mxu0 %v2449_v30  ;;  %v685_v43 = vld [vmem:[#allocation7 + $0x30] sm:$0xff]  ;;  %v342_v45 = vld [vmem:[%s3551_s14] sm:$0xff]  ;;  %v3566_v47 = vpack.c.bf16 %v686_v38, %v682_v37  ;;  %v688_v49 = vld [vmem:[#allocation7 + $0x48] sm:$0xff] }
  0x6a   : > { %2458 = vmatpush1.bf16.msra.mxu1 %v2457_v32  ;;  %425 = vmatprep.subr.mxu0 %v367_v33  ;;  %v368_v44 = vld [vmem:[#allocation4 + $0x90] sm:$0xff]  ;;  %v692_v50 = vld [vmem:[#allocation7 + $0x68] sm:$0xff]  ;;  %v690_v51 = vld [vmem:[#allocation7 + $0x58] sm:$0xff]  ;;  %v3570_v52 = vpack.c.bf16 %v685_v43, %v681_v42 }
  0x6b   : > { %538 = vmatprep.subr.mxu1 %v369_v34  ;;  %v694_v53 = vld [vmem:[#allocation7 + $0x78] sm:$0xff]  ;;  %v687_v54 = vld [vmem:[#allocation7 + $0x40] sm:$0xff]  ;;  %v689_v56 = vld [vmem:[#allocation7 + $0x50] sm:$0xff]  ;;  %v3576_v59 = vpack.c.bf16 %v692_v50, %v688_v49 }
  0x6c   : > { %v691_v55 = vld [vmem:[#allocation7 + $0x60] sm:$0xff]  ;;  %v693_v57 = vld [vmem:[#allocation7 + $0x70] sm:$0xff]  ;;  %v343_v58 = vld [vmem:[%s3551_s14 + $0x8] sm:$0xff]  ;;  %v3580_v60 = vpack.c.bf16 %v694_v53, %v690_v51 }
  0x6d   : > { %426 = vmatpush1.msra.mxu0 %v366_v41  ;;  %v3582_v61 = vpack.c.bf16 %v691_v55, %v687_v54  ;;  %v696_v62 = vld [vmem:[#allocation7 + $0x88] sm:$0xff]  ;;  %v698_v0 = vld [vmem:[#allocation7 + $0x98] sm:$0xff]  ;;  %v3586_v1 = vpack.c.bf16 %v693_v57, %v689_v56  ;;  %v695_v3 = vld [vmem:[#allocation7 + $0x80] sm:$0xff] }
  0x6e   : > { %539 = vmatpush1.msra.mxu1 %v368_v44  ;;  %2347 = vmatmul.mubr.msk.f32.vlgmr.msra.gmra.mrb[0].mxu0 %vm392_vm0, %v342_v45  ;;  %v700_v63 = vld [vmem:[#allocation7 + $0xa8] sm:$0xff]  ;;  %v702_v2 = vld [vmem:[#allocation7 + $0xb8] sm:$0xff]  ;;  %v699_v4 = vld [vmem:[#allocation7 + $0xa0] sm:$0xff] }
  0x6f   : > { %2355 = vmatmul.mubr.msk.f32.vlgmr.msra.gmra.mrb[0].mxu1 %vm392_vm0, %v342_v45  ;;  %2460 = vmatprep.subr.bf16.mxu0 %v3564_v46  ;;  %v697_v5 = vld [vmem:[#allocation7 + $0x90] sm:$0xff]  ;;  %v3593_v9 = vpack.c.bf16 %v700_v63, %v696_v62  ;;  %v3597_v10 = vpack.c.bf16 %v702_v2, %v698_v0  ;;  %v3599_v11 = vpack.c.bf16 %v699_v4, %v695_v3  ;;  %v704_v12 = vld [vmem:[#allocation7 + $0xc8] sm:$0xff]  ;;  %v706_v14 = vld [vmem:[#allocation7 + $0xd8] sm:$0xff] }
  0x70   : > { %2492 = vmatprep.subr.bf16.mxu1 %v3566_v47  ;;  %2462 = vmatpush1.bf16.msra.mxu0 %v3568_v48  ;;  %v701_v6 = vld [vmem:[#allocation7 + $0xb0] sm:$0xff]  ;;  %v708_v13 = vld [vmem:[#allocation7 + $0xe8] sm:$0xff]  ;;  %v710_v16 = vld [vmem:[#allocation7 + $0xf8] sm:$0xff] }
  0x71   : > { %2494 = vmatpush1.bf16.msra.mxu1 %v3570_v52  ;;  %487 = vmatprep.mubr.f32.mxu0 %v3381_v8  ;;  %v344_v7 = vld [vmem:[%s3551_s14 + $0x10] sm:$0xff]  ;;  %v3603_v15 = vpack.c.bf16 %v701_v6, %v697_v5  ;;  %v703_v17 = vld [vmem:[#allocation7 + $0xc0] sm:$0xff]  ;;  %v345_v21 = vld [vmem:[%s3551_s14 + $0x18] sm:$0xff]  ;;  %v3610_v22 = vpack.c.bf16 %v708_v13, %v704_v12  ;;  %v3614_v23 = vpack.c.bf16 %v710_v16, %v706_v14 }
  0x72   : > { %600 = vmatprep.mubr.f32.mxu1 %v3381_v8  ;;  %2348 = vmatmul.mubr.msk.f32.gmra.mrb[2].mxu0 %vm392_vm0, %v343_v58  ;;  %v707_v18 = vld [vmem:[#allocation7 + $0xe0] sm:$0xff]  ;;  %v705_v19 = vld [vmem:[#allocation7 + $0xd0] sm:$0xff]  ;;  %v712_v25 = vld [vmem:[#allocation7 + $0x108] sm:$0xff] }
  0x73   : > { %2356 = vmatmul.mubr.msk.f32.gmra.mrb[2].mxu1 %vm392_vm0, %v343_v58  ;;  %2464 = vmatprep.subr.bf16.mxu0 %v3576_v59  ;;  %v709_v20 = vld [vmem:[#allocation7 + $0xf0] sm:$0xff]  ;;  %v3616_v24 = vpack.c.bf16 %v707_v18, %v703_v17  ;;  %v716_v26 = vld [vmem:[#allocation7 + $0x128] sm:$0xff]  ;;  %v714_v27 = vld [vmem:[#allocation7 + $0x118] sm:$0xff] }
  0x74   : > { %2496 = vmatprep.subr.bf16.mxu1 %v3580_v60  ;;  %2466 = vmatpush1.bf16.msra.mxu0 %v3582_v61  ;;  %v3620_v28 = vpack.c.bf16 %v709_v20, %v705_v19  ;;  %v718_v29 = vld [vmem:[#allocation7 + $0x138] sm:$0xff]  ;;  %v711_v30 = vld [vmem:[#allocation7 + $0x100] sm:$0xff]  ;;  %v713_v32 = vld [vmem:[#allocation7 + $0x110] sm:$0xff]  ;;  %v3627_v35 = vpack.c.bf16 %v716_v26, %v712_v25 }
  0x75   : > { %2498 = vmatpush1.bf16.msra.mxu1 %v3586_v1  ;;  %493 = vmatprep.mubr.f32.mxu0 %v3381_v8  ;;  %v715_v31 = vld [vmem:[#allocation7 + $0x120] sm:$0xff]  ;;  %v717_v33 = vld [vmem:[#allocation7 + $0x130] sm:$0xff]  ;;  %v3631_v36 = vpack.c.bf16 %v718_v29, %v714_v27  ;;  %v720_v38 = vld [vmem:[#allocation7 + $0x148] sm:$0xff] }
  0x76   : > { %606 = vmatprep.mubr.f32.mxu1 %v3381_v8  ;;  %2349 = vmatmul.mubr.msk.f32.gmra.mrb[4].mxu0 %vm392_vm0, %v344_v7  ;;  %v346_v34 = vld [vmem:[%s3551_s14 + $0x20] sm:$0xff]  ;;  %v3633_v37 = vpack.c.bf16 %v715_v31, %v711_v30  ;;  %v724_v39 = vld [vmem:[#allocation7 + $0x168] sm:$0xff]  ;;  %v722_v40 = vld [vmem:[#allocation7 + $0x158] sm:$0xff]  ;;  %v3637_v41 = vpack.c.bf16 %v717_v33, %v713_v32  ;;  %v372_v31 = vlaneseq }
  0x77   : > { %2357 = vmatmul.mubr.msk.f32.gmra.mrb[4].mxu1 %vm392_vm0, %v344_v7  ;;  %2468 = vmatprep.subr.bf16.mxu0 %v3593_v9  ;;  %v726_v42 = vld [vmem:[#allocation7 + $0x178] sm:$0xff]  ;;  %v719_v43 = vld [vmem:[#allocation7 + $0x140] sm:$0xff]  ;;  %v721_v45 = vld [vmem:[#allocation7 + $0x150] sm:$0xff]  ;;  %v3644_v51 = vpack.c.bf16 %v724_v39, %v720_v38 }
  0x78   : > { %2500 = vmatprep.subr.bf16.mxu1 %v3597_v10  ;;  %2470 = vmatpush1.bf16.msra.mxu0 %v3599_v11  ;;  %v723_v44 = vld [vmem:[#allocation7 + $0x160] sm:$0xff]  ;;  %v725_v49 = vld [vmem:[#allocation7 + $0x170] sm:$0xff]  ;;  %v347_v50 = vld [vmem:[%s3551_s14 + $0x28] sm:$0xff]  ;;  %v3648_v53 = vpack.c.bf16 %v726_v42, %v722_v40  ;;  %v373_v32 = vshrl.u32 %v372_v31, 7 }
  0x79   : > { %2502 = vmatpush1.bf16.msra.mxu1 %v3603_v15  ;;  %499 = vmatprep.mubr.f32.mxu0 %v3381_v8  ;;  %v3650_v54 = vpack.c.bf16 %v723_v44, %v719_v43  ;;  %v728_v55 = vld [vmem:[#allocation7 + $0x188] sm:$0xff]  ;;  %v730_v57 = vld [vmem:[#allocation7 + $0x198] sm:$0xff]  ;;  %v3654_v58 = vpack.c.bf16 %v725_v49, %v721_v45  ;;  %v727_v63 = vld [vmem:[#allocation7 + $0x180] sm:$0xff] }
  0x7a   : > { %612 = vmatprep.mubr.f32.mxu1 %v3381_v8  ;;  %2350 = vmatmul.mubr.msk.f32.gmra.mrb[6].mxu0 %vm392_vm0, %v345_v21  ;;  %v732_v56 = vld [vmem:[#allocation7 + $0x1a8] sm:$0xff]  ;;  %v734_v62 = vld [vmem:[#allocation7 + $0x1b8] sm:$0xff]  ;;  %v731_v0 = vld [vmem:[#allocation7 + $0x1a0] sm:$0xff]  ;;  %v374_v33 = vsub.s32 0, %v373_v32  ;;  %v378_v38 = vsub.s32 1, %v373_v32  ;;  %v382_v43 = vsub.s32 2, %v373_v32 }
  0x7b   : > { %2358 = vmatmul.mubr.msk.f32.gmra.mrb[6].mxu1 %vm392_vm0, %v345_v21  ;;  %2472 = vmatprep.subr.bf16.mxu0 %v3610_v22  ;;  %v729_v2 = vld [vmem:[#allocation7 + $0x190] sm:$0xff]  ;;  %v3661_v5 = vpack.c.bf16 %v732_v56, %v728_v55  ;;  %v3665_v6 = vpack.c.bf16 %v734_v62, %v730_v57  ;;  %v3667_v7 = vpack.c.bf16 %v731_v0, %v727_v63  ;;  %v736_v12 = vld [vmem:[#allocation7 + $0x1c8] sm:$0xff]  ;;  %v738_v14 = vld [vmem:[#allocation7 + $0x1d8] sm:$0xff]  ;;  %v386_v63 = vsub.s32 3, %v373_v32 }
  0x7c   : > { %2504 = vmatprep.subr.bf16.mxu1 %v3614_v23  ;;  %2474 = vmatpush1.bf16.msra.mxu0 %v3616_v24  ;;  %v733_v3 = vld [vmem:[#allocation7 + $0x1b0] sm:$0xff]  ;;  %v740_v13 = vld [vmem:[#allocation7 + $0x1e8] sm:$0xff]  ;;  %v742_v17 = vld [vmem:[#allocation7 + $0x1f8] sm:$0xff] }
  0x7d   : > { %2506 = vmatpush1.bf16.msra.mxu1 %v3620_v28  ;;  %505 = vmatprep.mubr.f32.mxu0 %v3381_v8  ;;  %v348_v4 = vld [vmem:[%s3551_s14 + $0x30] sm:$0xff]  ;;  %v3671_v16 = vpack.c.bf16 %v733_v3, %v729_v2  ;;  %v735_v18 = vld [vmem:[#allocation7 + $0x1c0] sm:$0xff]  ;;  %v349_v25 = vld [vmem:[%s3551_s14 + $0x38] sm:$0xff]  ;;  %v3678_v26 = vpack.c.bf16 %v740_v13, %v736_v12  ;;  %v3682_v27 = vpack.c.bf16 %v742_v17, %v738_v14  ;;  %s3305_s14 = scalar_lea.vmem %s4070_s20, 128 }
  0x7e   : > { %618 = vmatprep.mubr.f32.mxu1 %v3381_v8  ;;  %2351 = vmatmul.mubr.msk.f32.gmra.mrb[8].mxu0 %vm392_vm0, %v346_v34  ;;  %v739_v19 = vld [vmem:[#allocation7 + $0x1e0] sm:$0xff]  ;;  %v737_v20 = vld [vmem:[#allocation7 + $0x1d0] sm:$0xff]  ;;  %p3306_p12 = scmp.ne.s32.totalorder %s4070_s20, %s3305_s14  ;;  %p3313_p9 = scmp.lt.s32.totalorder %s3311_s28, %s3305_s14 }
  0x7f   : > { %2359 = vmatmul.mubr.msk.f32.gmra.mrb[8].mxu1 %vm392_vm0, %v346_v34  ;;  %2476 = vmatprep.subr.bf16.mxu0 %v3627_v35  ;;  %v741_v21 = vld [vmem:[#allocation7 + $0x1f0] sm:$0xff]  ;;  %v3684_v29 = vpack.c.bf16 %v739_v19, %v735_v18  ;;  %v370_v34 = vld [vmem:[%s4116_s3] sm:$0xf] }
  0x80   : > { %2508 = vmatprep.subr.bf16.mxu1 %v3631_v36  ;;  %2478 = vmatpush1.bf16.msra.mxu0 %v3633_v37  ;;  %v3688_v30 = vpack.c.bf16 %v741_v21, %v737_v20  ;;  %v3740_v39 = vrot.slane %v370_v34, %v374_v33  ;;  %v3742_v40 = vrot.slane %v370_v34, %v378_v38  ;;  %p3307_p4 = pnand %p3306_p12, %p4135_p3  ;;  %p3314_p13 = por %p3313_p9, %p3312_p8 }
  0x81   : > { %2510 = vmatpush1.bf16.msra.mxu1 %v3637_v41  ;;  %511 = vmatprep.mubr.f32.mxu0 %v3381_v8  ;;  %v3746_v57 = vrot.slane %v370_v34, %v382_v43  ;;  %v3749_v2 = vrot.slane %v370_v34, %v386_v63 }
  0x82   : > { %624 = vmatprep.mubr.f32.mxu1 %v3381_v8  ;;  %2352 = vmatmul.mubr.msk.f32.gmra.mrb[10].mxu0 %vm392_vm0, %v347_v50  ;;  %p3308_p7 = pneg %p3307_p4 }
  0x83   : > { %2360 = vmatmul.mubr.msk.f32.gmra.mrb[10].mxu1 %vm392_vm0, %v347_v50  ;;  %2480 = vmatprep.subr.bf16.mxu0 %v3644_v51 }
  0x84   : > { %2512 = vmatprep.subr.bf16.mxu1 %v3648_v53  ;;  %2482 = vmatpush1.bf16.msra.mxu0 %v3650_v54  ;;  %p3315_p2 = pnand %p3314_p13, %p3308_p7 }
  0x85   : > { %2514 = vmatpush1.bf16.msra.mxu1 %v3654_v58  ;;  %517 = vmatprep.mubr.f32.mxu0 %v3381_v8 }
  0x86   : > { %630 = vmatprep.mubr.f32.mxu1 %v3381_v8  ;;  %2353 = vmatmul.mubr.msk.f32.gmra.mrb[12].mxu0 %vm392_vm0, %v348_v4 }
  0x87   : > { %2361 = vmatmul.mubr.msk.f32.gmra.mrb[12].mxu1 %vm392_vm0, %v348_v4  ;;  %2484 = vmatprep.subr.bf16.mxu0 %v3661_v5 }
  0x88   : > { %2516 = vmatprep.subr.bf16.mxu1 %v3665_v6  ;;  %2486 = vmatpush1.bf16.msra.mxu0 %v3667_v7 }
  0x89   : > { %2518 = vmatpush1.bf16.msra.mxu1 %v3671_v16  ;;  %523 = vmatprep.mubr.f32.mxu0 %v3381_v8 }
  0x8a   : > { %636 = vmatprep.mubr.f32.mxu1 %v3381_v8  ;;  %2354 = vmatmul.mubr.msk.f32.gmra.mrb[14].mxu0 %vm392_vm0, %v349_v25 }
  0x8b   : > { %2362 = vmatmul.mubr.msk.f32.gmra.mrb[14].mxu1 %vm392_vm0, %v349_v25  ;;  %2488 = vmatprep.subr.bf16.mxu0 %v3678_v26 }
  0x8c   : > { %2520 = vmatprep.subr.bf16.mxu1 %v3682_v27  ;;  %2490 = vmatpush1.bf16.msra.mxu0 %v3684_v29 }
  0x8d   : > { %2522 = vmatpush1.bf16.msra.mxu1 %v3688_v30  ;;  %807 = vmatprep.mubr.f32.mxu0 %v3381_v8 }
  0x8e   : > { %878 = vmatprep.mubr.f32.mxu1 %v3381_v8  ;;  %2524 = vmatprep.subr.bf16.mxu0 %v3564_v46 }
  0x8f   : > { %808 = vmatmul.mubr.f32.vlgmr.msra.gmra.mrb[0].mxu0 %v3381_v8  ;;  %2556 = vmatprep.subr.bf16.mxu1 %v3566_v47 }
  0x90   : > { %879 = vmatmul.mubr.f32.vlgmr.msra.gmra.mrb[0].mxu1 %v3381_v8  ;;  %2526 = vmatpush1.bf16.msra.mxu0 %v3568_v48 }
  0x91   : > { %2558 = vmatpush1.bf16.msra.mxu1 %v3570_v52  ;;  %2528 = vmatprep.subr.bf16.mxu0 %v3576_v59 }
  0x92   : > { %2560 = vmatprep.subr.bf16.mxu1 %v3580_v60  ;;  %982 = vmatprep.mubr.f32.mxu0 %v3381_v8 }
  0x93   : > { %1053 = vmatprep.mubr.f32.mxu1 %v3381_v8 }
  0x94   : > { %2530 = vmatpush1.bf16.msra.mxu0 %v3582_v61 }
  0x95   : > { %2562 = vmatpush1.bf16.msra.mxu1 %v3586_v1  ;;  %2532 = vmatprep.subr.bf16.mxu0 %v3593_v9 }
  0x96   : > { %2564 = vmatprep.subr.bf16.mxu1 %v3597_v10 }
  0x98   : > { %2534 = vmatpush1.bf16.msra.mxu0 %v3599_v11 }
  0x99   : > { %2566 = vmatpush1.bf16.msra.mxu1 %v3603_v15  ;;  %2536 = vmatprep.subr.bf16.mxu0 %v3610_v22 }
  0x9a   : > { %2568 = vmatprep.subr.bf16.mxu1 %v3614_v23 }
  0x9c   : > { %2538 = vmatpush1.bf16.msra.mxu0 %v3616_v24 }
  0x9d   : > { %2570 = vmatpush1.bf16.msra.mxu1 %v3620_v28  ;;  %2540 = vmatprep.subr.bf16.mxu0 %v3627_v35 }
  0x9e   : > { %2572 = vmatprep.subr.bf16.mxu1 %v3631_v36 }
  0xa0   : > { %2542 = vmatpush1.bf16.msra.mxu0 %v3633_v37 }
  0xa1   : > { %2574 = vmatpush1.bf16.msra.mxu1 %v3637_v41  ;;  %2544 = vmatprep.subr.bf16.mxu0 %v3644_v51 }
  0xa2   : > { %2576 = vmatprep.subr.bf16.mxu1 %v3648_v53 }
  0xa4   : > { %2546 = vmatpush1.bf16.msra.mxu0 %v3650_v54 }
  0xa5   : > { %2578 = vmatpush1.bf16.msra.mxu1 %v3654_v58  ;;  %2548 = vmatprep.subr.bf16.mxu0 %v3661_v5 }
  0xa6   : > { %2580 = vmatprep.subr.bf16.mxu1 %v3665_v6 }
  0xa8   : > { %2550 = vmatpush1.bf16.msra.mxu0 %v3667_v7 }
  0xa9   : > { %2582 = vmatpush1.bf16.msra.mxu1 %v3671_v16  ;;  %2552 = vmatprep.subr.bf16.mxu0 %v3678_v26 }
  0xaa   : > { %2584 = vmatprep.subr.bf16.mxu1 %v3682_v27 }
  0xac   : > { %2554 = vmatpush1.bf16.msra.mxu0 %v3684_v29 }
  0xad   : > { %2586 = vmatpush1.bf16.msra.mxu1 %v3688_v30  ;;  %2588 = vmatprep.subr.bf16.mxu0 %v3564_v46 }
  0xae   : > { %2620 = vmatprep.subr.bf16.mxu1 %v3566_v47 }
 0x162   : > { %v809_v42 = vpop.f32.mrb[0].mxu0 }
 0x163   : > { %v2995_v44 = vadd.f32 %v809_v42, %v3740_v39  ;;  %v880_v45 = vpop.f32.mrb[0].mxu1  ;;  %v811_v49 = vpop.f32.mrb[1].mxu0 }
 0x164   : > { %v2996_v50 = vadd.f32 %v811_v49, %v3742_v40  ;;  %v882_v55 = vpop.f32.mrb[1].mxu1  ;;  %v3011_v0 = vadd.f32 %v880_v45, %v3746_v57 }
 0x165   : > { %v2363_v56 = vmul.f32 -1.442695, %v2995_v44  ;;  %v3012_v4 = vadd.f32 %v882_v55, %v3749_v2 }
 0x166   : > { %v2364_v62 = vmul.f32 -1.442695, %v2996_v50  ;;  %v2365_v3 = vmul.f32 -1.442695, %v3011_v0 }
 0x167   : > { %3123 = vpow2.f32 %v2363_v56 }
 0x168   : > { %3125 = vpow2.f32 %v2364_v62 }
 0x169   : > { %3127 = vpow2.f32 %v2365_v3 }
 0x16a   : > { %3129 = vtanh.f32 %v3012_v4 }
 0x171   : > { %v3124_v12 = vpop.eup %3123 }
 0x172   : > { %v898_v13 = vadd.f32 1.0, %v3124_v12  ;;  %v3126_v14 = vpop.eup %3125 }
 0x173   : > { %v899_v17 = vadd.f32 1.0, %v3126_v14  ;;  %v3128_v18 = vpop.eup %3127 }
 0x174   : > { %3131 = vrcp.f32 %v898_v13  ;;  %v3130_v19 = vpop.eup %3129  ;;  %v900_v31 = vadd.f32 1.0, %v3128_v18 }
 0x175   : > { %3133 = vrcp.f32 %v899_v17 }
 0x176   : > { %3135 = vrcp.f32 %v900_v31 }
 0x17e   : > { %v3132_v20 = vpop.eup %3131 }
 0x17f   : > { %v909_v21 = vmul.f32 %v3132_v20, %v3130_v19  ;;  %v3134_v25 = vpop.eup %3133 }
 0x180   : > { %v908_v32 = vmul.f32 0.0, %v3134_v25  ;;  %v3136_v34 = vpop.eup %3135 }
 0x182   : > { %v3752_v33 = vadd.f32 %v909_v21, %v908_v32 }
 0x184   : > { %3137 = vtanh.f32 %v3752_v33 }
 0x18e   : > { %v3138_v38 = vpop.eup %3137 }
 0x18f   : > { %v912_v42 = vmul.f32 %v3138_v38, %v3136_v34 }
 0x191   : > { %983 = vmatmul.mubr.f32.vlgmr.msra.gmra.mrb[2].mxu0 %v912_v42  ;;  %1054 = vmatmul.mubr.f32.vlgmr.msra.gmra.mrb[2].mxu1 %v912_v42 }
 0x192   : > { %2590 = vmatpush1.bf16.msra.mxu0 %v3568_v48  ;;  %2622 = vmatpush1.bf16.msra.mxu1 %v3570_v52 }
 0x193   : > { %2592 = vmatprep.subr.bf16.mxu0 %v3576_v59  ;;  %2624 = vmatprep.subr.bf16.mxu1 %v3580_v60 }
 0x194   : > { %1157 = vmatprep.mubr.f32.mxu0 %v3381_v8  ;;  %1228 = vmatprep.mubr.f32.mxu1 %v3381_v8 }
 0x196   : > { %2594 = vmatpush1.bf16.msra.mxu0 %v3582_v61  ;;  %2626 = vmatpush1.bf16.msra.mxu1 %v3586_v1 }
 0x197   : > { %2596 = vmatprep.subr.bf16.mxu0 %v3593_v9  ;;  %2628 = vmatprep.subr.bf16.mxu1 %v3597_v10 }
 0x19a   : > { %2598 = vmatpush1.bf16.msra.mxu0 %v3599_v11  ;;  %2630 = vmatpush1.bf16.msra.mxu1 %v3603_v15 }
 0x19b   : > { %2600 = vmatprep.subr.bf16.mxu0 %v3610_v22  ;;  %2632 = vmatprep.subr.bf16.mxu1 %v3614_v23 }
 0x19e   : > { %2602 = vmatpush1.bf16.msra.mxu0 %v3616_v24  ;;  %2634 = vmatpush1.bf16.msra.mxu1 %v3620_v28 }
 0x19f   : > { %2604 = vmatprep.subr.bf16.mxu0 %v3627_v35  ;;  %2636 = vmatprep.subr.bf16.mxu1 %v3631_v36 }
 0x1a2   : > { %2606 = vmatpush1.bf16.msra.mxu0 %v3633_v37  ;;  %2638 = vmatpush1.bf16.msra.mxu1 %v3637_v41 }
 0x1a3   : > { %2608 = vmatprep.subr.bf16.mxu0 %v3644_v51  ;;  %2640 = vmatprep.subr.bf16.mxu1 %v3648_v53 }
 0x1a6   : > { %2610 = vmatpush1.bf16.msra.mxu0 %v3650_v54  ;;  %2642 = vmatpush1.bf16.msra.mxu1 %v3654_v58 }
 0x1a7   : > { %2612 = vmatprep.subr.bf16.mxu0 %v3661_v5  ;;  %2644 = vmatprep.subr.bf16.mxu1 %v3665_v6 }
 0x1aa   : > { %2614 = vmatpush1.bf16.msra.mxu0 %v3667_v7  ;;  %2646 = vmatpush1.bf16.msra.mxu1 %v3671_v16 }
 0x1ab   : > { %2616 = vmatprep.subr.bf16.mxu0 %v3678_v26  ;;  %2648 = vmatprep.subr.bf16.mxu1 %v3682_v27 }
 0x1ae   : > { %2618 = vmatpush1.bf16.msra.mxu0 %v3684_v29  ;;  %2650 = vmatpush1.bf16.msra.mxu1 %v3688_v30 }
 0x1af   : > { %2652 = vmatprep.subr.bf16.mxu0 %v3564_v46  ;;  %2684 = vmatprep.subr.bf16.mxu1 %v3566_v47 }
 0x264   : > { %v984_v43 = vpop.f32.mrb[2].mxu0  ;;  %v1055_v44 = vpop.f32.mrb[2].mxu1 }
 0x265   : > { %v2997_v45 = vadd.f32 %v984_v43, %v3740_v39  ;;  %v986_v49 = vpop.f32.mrb[3].mxu0  ;;  %v1057_v50 = vpop.f32.mrb[3].mxu1  ;;  %v3013_v63 = vadd.f32 %v1055_v44, %v3746_v57 }
 0x266   : > { %v2998_v55 = vadd.f32 %v986_v49, %v3742_v40  ;;  %v3014_v0 = vadd.f32 %v1057_v50, %v3749_v2 }
 0x267   : > { %v2366_v56 = vmul.f32 -1.442695, %v2997_v45  ;;  %v2368_v3 = vmul.f32 -1.442695, %v3013_v63 }
 0x268   : > { %v2367_v62 = vmul.f32 -1.442695, %v2998_v55 }
 0x269   : > { %3139 = vpow2.f32 %v2366_v56 }
 0x26a   : > { %3141 = vpow2.f32 %v2367_v62 }
 0x26b   : > { %3143 = vtanh.f32 %v3014_v0 }
 0x26c   : > { %3145 = vpow2.f32 %v2368_v3 }
 0x273   : > { %v3140_v4 = vpop.eup %3139 }
 0x274   : > { %v1073_v12 = vadd.f32 1.0, %v3140_v4  ;;  %v3142_v13 = vpop.eup %3141 }
 0x275   : > { %v1074_v14 = vadd.f32 1.0, %v3142_v13  ;;  %v3144_v17 = vpop.eup %3143 }
 0x276   : > { %3147 = vrcp.f32 %v1073_v12  ;;  %v3146_v18 = vpop.eup %3145 }
 0x277   : > { %3149 = vrcp.f32 %v1074_v14  ;;  %v1075_v25 = vadd.f32 1.0, %v3146_v18 }
 0x279   : > { %3151 = vrcp.f32 %v1075_v25 }
 0x280   : > { %v3148_v19 = vpop.eup %3147 }
 0x281   : > { %v1084_v20 = vmul.f32 %v3148_v19, %v3144_v17  ;;  %v3150_v21 = vpop.eup %3149 }
 0x282   : > { %v1083_v31 = vmul.f32 %v3150_v21, %v3752_v33 }
 0x283   : > { %v3152_v34 = vpop.eup %3151 }
 0x284   : > { %v3794_v32 = vadd.f32 %v1084_v20, %v1083_v31 }
 0x286   : > { %3153 = vtanh.f32 %v3794_v32 }
 0x290   : > { %v3154_v38 = vpop.eup %3153 }
 0x291   : > { %v1087_v42 = vmul.f32 %v3154_v38, %v3152_v34 }
 0x293   : > { %1158 = vmatmul.mubr.f32.vlgmr.msra.gmra.mrb[4].mxu0 %v1087_v42  ;;  %1229 = vmatmul.mubr.f32.vlgmr.msra.gmra.mrb[4].mxu1 %v1087_v42 }
 0x294   : > { %2654 = vmatpush1.bf16.msra.mxu0 %v3568_v48  ;;  %2686 = vmatpush1.bf16.msra.mxu1 %v3570_v52 }
 0x295   : > { %2656 = vmatprep.subr.bf16.mxu0 %v3576_v59  ;;  %2688 = vmatprep.subr.bf16.mxu1 %v3580_v60 }
 0x296   : > { %1332 = vmatprep.mubr.f32.mxu0 %v3381_v8  ;;  %1403 = vmatprep.mubr.f32.mxu1 %v3381_v8 }
 0x298   : > { %2658 = vmatpush1.bf16.msra.mxu0 %v3582_v61  ;;  %2690 = vmatpush1.bf16.msra.mxu1 %v3586_v1 }
 0x299   : > { %2660 = vmatprep.subr.bf16.mxu0 %v3593_v9  ;;  %2692 = vmatprep.subr.bf16.mxu1 %v3597_v10 }
 0x29c   : > { %2662 = vmatpush1.bf16.msra.mxu0 %v3599_v11  ;;  %2694 = vmatpush1.bf16.msra.mxu1 %v3603_v15 }
 0x29d   : > { %2664 = vmatprep.subr.bf16.mxu0 %v3610_v22  ;;  %2696 = vmatprep.subr.bf16.mxu1 %v3614_v23 }
 0x2a0   : > { %2666 = vmatpush1.bf16.msra.mxu0 %v3616_v24  ;;  %2698 = vmatpush1.bf16.msra.mxu1 %v3620_v28 }
 0x2a1   : > { %2668 = vmatprep.subr.bf16.mxu0 %v3627_v35  ;;  %2700 = vmatprep.subr.bf16.mxu1 %v3631_v36 }
 0x2a4   : > { %2670 = vmatpush1.bf16.msra.mxu0 %v3633_v37  ;;  %2702 = vmatpush1.bf16.msra.mxu1 %v3637_v41 }
 0x2a5   : > { %2672 = vmatprep.subr.bf16.mxu0 %v3644_v51  ;;  %2704 = vmatprep.subr.bf16.mxu1 %v3648_v53 }
 0x2a8   : > { %2674 = vmatpush1.bf16.msra.mxu0 %v3650_v54  ;;  %2706 = vmatpush1.bf16.msra.mxu1 %v3654_v58 }
 0x2a9   : > { %2676 = vmatprep.subr.bf16.mxu0 %v3661_v5  ;;  %2708 = vmatprep.subr.bf16.mxu1 %v3665_v6 }
 0x2ac   : > { %2678 = vmatpush1.bf16.msra.mxu0 %v3667_v7  ;;  %2710 = vmatpush1.bf16.msra.mxu1 %v3671_v16 }
 0x2ad   : > { %2680 = vmatprep.subr.bf16.mxu0 %v3678_v26  ;;  %2712 = vmatprep.subr.bf16.mxu1 %v3682_v27 }
 0x2b0   : > { %2682 = vmatpush1.bf16.msra.mxu0 %v3684_v29  ;;  %2714 = vmatpush1.bf16.msra.mxu1 %v3688_v30 }
 0x2b1   : > { %2716 = vmatprep.subr.bf16.mxu0 %v3564_v46  ;;  %2748 = vmatprep.subr.bf16.mxu1 %v3566_v47 }
 0x366   : > { %v1159_v33 = vpop.f32.mrb[4].mxu0  ;;  %v1230_v43 = vpop.f32.mrb[4].mxu1 }
 0x367   : > { %v2999_v44 = vadd.f32 %v1159_v33, %v3740_v39  ;;  %v1161_v45 = vpop.f32.mrb[5].mxu0  ;;  %v1232_v49 = vpop.f32.mrb[5].mxu1  ;;  %v3015_v62 = vadd.f32 %v1230_v43, %v3746_v57 }
 0x368   : > { %v3000_v50 = vadd.f32 %v1161_v45, %v3742_v40  ;;  %v3016_v63 = vadd.f32 %v1232_v49, %v3749_v2 }
 0x369   : > { %v2369_v55 = vmul.f32 -1.442695, %v2999_v44  ;;  %v2371_v0 = vmul.f32 -1.442695, %v3015_v62 }
 0x36a   : > { %v2370_v56 = vmul.f32 -1.442695, %v3000_v50 }
 0x36b   : > { %3155 = vpow2.f32 %v2369_v55 }
 0x36c   : > { %3157 = vpow2.f32 %v2370_v56 }
 0x36d   : > { %3159 = vtanh.f32 %v3016_v63 }
 0x36e   : > { %3161 = vpow2.f32 %v2371_v0 }
 0x375   : > { %v3156_v3 = vpop.eup %3155 }
 0x376   : > { %v1248_v4 = vadd.f32 1.0, %v3156_v3  ;;  %v3158_v12 = vpop.eup %3157 }
 0x377   : > { %v1249_v13 = vadd.f32 1.0, %v3158_v12  ;;  %v3160_v14 = vpop.eup %3159 }
 0x378   : > { %3163 = vrcp.f32 %v1248_v4  ;;  %v3162_v17 = vpop.eup %3161 }
 0x379   : > { %3165 = vrcp.f32 %v1249_v13  ;;  %v1250_v21 = vadd.f32 1.0, %v3162_v17 }
 0x37b   : > { %3167 = vrcp.f32 %v1250_v21 }
 0x382   : > { %v3164_v18 = vpop.eup %3163 }
 0x383   : > { %v1259_v19 = vmul.f32 %v3164_v18, %v3160_v14  ;;  %v3166_v20 = vpop.eup %3165 }
 0x384   : > { %v1258_v25 = vmul.f32 %v3166_v20, %v3794_v32 }
 0x385   : > { %v3168_v34 = vpop.eup %3167 }
 0x386   : > { %v3836_v31 = vadd.f32 %v1259_v19, %v1258_v25 }
 0x388   : > { %3169 = vtanh.f32 %v3836_v31 }
 0x392   : > { %v3170_v38 = vpop.eup %3169 }
 0x393   : > { %v1262_v42 = vmul.f32 %v3170_v38, %v3168_v34 }
 0x395   : > { %1333 = vmatmul.mubr.f32.vlgmr.msra.gmra.mrb[6].mxu0 %v1262_v42  ;;  %1404 = vmatmul.mubr.f32.vlgmr.msra.gmra.mrb[6].mxu1 %v1262_v42 }
 0x396   : > { %2718 = vmatpush1.bf16.msra.mxu0 %v3568_v48  ;;  %2750 = vmatpush1.bf16.msra.mxu1 %v3570_v52 }
 0x397   : > { %2720 = vmatprep.subr.bf16.mxu0 %v3576_v59  ;;  %2752 = vmatprep.subr.bf16.mxu1 %v3580_v60 }
 0x398   : > { %1507 = vmatprep.mubr.f32.mxu0 %v3381_v8  ;;  %1578 = vmatprep.mubr.f32.mxu1 %v3381_v8 }
 0x39a   : > { %2722 = vmatpush1.bf16.msra.mxu0 %v3582_v61  ;;  %2754 = vmatpush1.bf16.msra.mxu1 %v3586_v1 }
 0x39b   : > { %2724 = vmatprep.subr.bf16.mxu0 %v3593_v9  ;;  %2756 = vmatprep.subr.bf16.mxu1 %v3597_v10 }
 0x39e   : > { %2726 = vmatpush1.bf16.msra.mxu0 %v3599_v11  ;;  %2758 = vmatpush1.bf16.msra.mxu1 %v3603_v15 }
 0x39f   : > { %2728 = vmatprep.subr.bf16.mxu0 %v3610_v22  ;;  %2760 = vmatprep.subr.bf16.mxu1 %v3614_v23 }
 0x3a2   : > { %2730 = vmatpush1.bf16.msra.mxu0 %v3616_v24  ;;  %2762 = vmatpush1.bf16.msra.mxu1 %v3620_v28 }
 0x3a3   : > { %2732 = vmatprep.subr.bf16.mxu0 %v3627_v35  ;;  %2764 = vmatprep.subr.bf16.mxu1 %v3631_v36 }
 0x3a6   : > { %2734 = vmatpush1.bf16.msra.mxu0 %v3633_v37  ;;  %2766 = vmatpush1.bf16.msra.mxu1 %v3637_v41 }
 0x3a7   : > { %2736 = vmatprep.subr.bf16.mxu0 %v3644_v51  ;;  %2768 = vmatprep.subr.bf16.mxu1 %v3648_v53 }
 0x3aa   : > { %2738 = vmatpush1.bf16.msra.mxu0 %v3650_v54  ;;  %2770 = vmatpush1.bf16.msra.mxu1 %v3654_v58 }
 0x3ab   : > { %2740 = vmatprep.subr.bf16.mxu0 %v3661_v5  ;;  %2772 = vmatprep.subr.bf16.mxu1 %v3665_v6 }
 0x3ae   : > { %2742 = vmatpush1.bf16.msra.mxu0 %v3667_v7  ;;  %2774 = vmatpush1.bf16.msra.mxu1 %v3671_v16 }
 0x3af   : > { %2744 = vmatprep.subr.bf16.mxu0 %v3678_v26  ;;  %2776 = vmatprep.subr.bf16.mxu1 %v3682_v27 }
 0x3b2   : > { %2746 = vmatpush1.bf16.msra.mxu0 %v3684_v29  ;;  %2778 = vmatpush1.bf16.msra.mxu1 %v3688_v30 }
 0x3b3   : > { %2780 = vmatprep.subr.bf16.mxu0 %v3564_v46  ;;  %2812 = vmatprep.subr.bf16.mxu1 %v3566_v47 }
 0x468   : > { %v1334_v32 = vpop.f32.mrb[6].mxu0  ;;  %v1405_v33 = vpop.f32.mrb[6].mxu1 }
 0x469   : > { %v3001_v43 = vadd.f32 %v1334_v32, %v3740_v39  ;;  %v1336_v44 = vpop.f32.mrb[7].mxu0  ;;  %v1407_v45 = vpop.f32.mrb[7].mxu1  ;;  %v3017_v56 = vadd.f32 %v1405_v33, %v3746_v57 }
 0x46a   : > { %v3002_v49 = vadd.f32 %v1336_v44, %v3742_v40  ;;  %v3018_v62 = vadd.f32 %v1407_v45, %v3749_v2 }
 0x46b   : > { %v2372_v50 = vmul.f32 -1.442695, %v3001_v43  ;;  %v2374_v63 = vmul.f32 -1.442695, %v3017_v56 }
 0x46c   : > { %v2373_v55 = vmul.f32 -1.442695, %v3002_v49 }
 0x46d   : > { %3171 = vpow2.f32 %v2372_v50 }
 0x46e   : > { %3173 = vpow2.f32 %v2373_v55 }
 0x46f   : > { %3175 = vtanh.f32 %v3018_v62 }
 0x470   : > { %3177 = vpow2.f32 %v2374_v63 }
 0x477   : > { %v3172_v0 = vpop.eup %3171 }
 0x478   : > { %v1423_v3 = vadd.f32 1.0, %v3172_v0  ;;  %v3174_v4 = vpop.eup %3173 }
 0x479   : > { %v1424_v12 = vadd.f32 1.0, %v3174_v4  ;;  %v3176_v13 = vpop.eup %3175 }
 0x47a   : > { %3179 = vrcp.f32 %v1423_v3  ;;  %v3178_v14 = vpop.eup %3177 }
 0x47b   : > { %3181 = vrcp.f32 %v1424_v12  ;;  %v1425_v20 = vadd.f32 1.0, %v3178_v14 }
 0x47d   : > { %3183 = vrcp.f32 %v1425_v20 }
 0x484   : > { %v3180_v17 = vpop.eup %3179 }
 0x485   : > { %v1434_v18 = vmul.f32 %v3180_v17, %v3176_v13  ;;  %v3182_v19 = vpop.eup %3181 }
 0x486   : > { %v1433_v21 = vmul.f32 %v3182_v19, %v3836_v31 }
 0x487   : > { %v3184_v34 = vpop.eup %3183 }
 0x488   : > { %v3878_v25 = vadd.f32 %v1434_v18, %v1433_v21 }
 0x48a   : > { %3185 = vtanh.f32 %v3878_v25 }
 0x494   : > { %v3186_v38 = vpop.eup %3185 }
 0x495   : > { %v1437_v42 = vmul.f32 %v3186_v38, %v3184_v34 }
 0x497   : > { %1508 = vmatmul.mubr.f32.vlgmr.msra.gmra.mrb[8].mxu0 %v1437_v42  ;;  %1579 = vmatmul.mubr.f32.vlgmr.msra.gmra.mrb[8].mxu1 %v1437_v42 }
 0x498   : > { %2782 = vmatpush1.bf16.msra.mxu0 %v3568_v48  ;;  %2814 = vmatpush1.bf16.msra.mxu1 %v3570_v52 }
 0x499   : > { %2784 = vmatprep.subr.bf16.mxu0 %v3576_v59  ;;  %2816 = vmatprep.subr.bf16.mxu1 %v3580_v60 }
 0x49a   : > { %1682 = vmatprep.mubr.f32.mxu0 %v3381_v8  ;;  %1753 = vmatprep.mubr.f32.mxu1 %v3381_v8 }
 0x49c   : > { %2786 = vmatpush1.bf16.msra.mxu0 %v3582_v61  ;;  %2818 = vmatpush1.bf16.msra.mxu1 %v3586_v1 }
 0x49d   : > { %2788 = vmatprep.subr.bf16.mxu0 %v3593_v9  ;;  %2820 = vmatprep.subr.bf16.mxu1 %v3597_v10 }
 0x4a0   : > { %2790 = vmatpush1.bf16.msra.mxu0 %v3599_v11  ;;  %2822 = vmatpush1.bf16.msra.mxu1 %v3603_v15 }
 0x4a1   : > { %2792 = vmatprep.subr.bf16.mxu0 %v3610_v22  ;;  %2824 = vmatprep.subr.bf16.mxu1 %v3614_v23 }
 0x4a4   : > { %2794 = vmatpush1.bf16.msra.mxu0 %v3616_v24  ;;  %2826 = vmatpush1.bf16.msra.mxu1 %v3620_v28 }
 0x4a5   : > { %2796 = vmatprep.subr.bf16.mxu0 %v3627_v35  ;;  %2828 = vmatprep.subr.bf16.mxu1 %v3631_v36 }
 0x4a8   : > { %2798 = vmatpush1.bf16.msra.mxu0 %v3633_v37  ;;  %2830 = vmatpush1.bf16.msra.mxu1 %v3637_v41 }
 0x4a9   : > { %2800 = vmatprep.subr.bf16.mxu0 %v3644_v51  ;;  %2832 = vmatprep.subr.bf16.mxu1 %v3648_v53 }
 0x4ac   : > { %2802 = vmatpush1.bf16.msra.mxu0 %v3650_v54  ;;  %2834 = vmatpush1.bf16.msra.mxu1 %v3654_v58 }
 0x4ad   : > { %2804 = vmatprep.subr.bf16.mxu0 %v3661_v5  ;;  %2836 = vmatprep.subr.bf16.mxu1 %v3665_v6 }
 0x4b0   : > { %2806 = vmatpush1.bf16.msra.mxu0 %v3667_v7  ;;  %2838 = vmatpush1.bf16.msra.mxu1 %v3671_v16 }
 0x4b1   : > { %2808 = vmatprep.subr.bf16.mxu0 %v3678_v26  ;;  %2840 = vmatprep.subr.bf16.mxu1 %v3682_v27 }
 0x4b4   : > { %2810 = vmatpush1.bf16.msra.mxu0 %v3684_v29  ;;  %2842 = vmatpush1.bf16.msra.mxu1 %v3688_v30 }
 0x4b5   : > { %2844 = vmatprep.subr.bf16.mxu0 %v3564_v46  ;;  %2876 = vmatprep.subr.bf16.mxu1 %v3566_v47 }
 0x56a   : > { %v1509_v31 = vpop.f32.mrb[8].mxu0  ;;  %v1580_v32 = vpop.f32.mrb[8].mxu1 }
 0x56b   : > { %v3003_v33 = vadd.f32 %v1509_v31, %v3740_v39  ;;  %v1511_v43 = vpop.f32.mrb[9].mxu0  ;;  %v1582_v44 = vpop.f32.mrb[9].mxu1  ;;  %v3019_v55 = vadd.f32 %v1580_v32, %v3746_v57 }
 0x56c   : > { %v3004_v45 = vadd.f32 %v1511_v43, %v3742_v40  ;;  %v3020_v56 = vadd.f32 %v1582_v44, %v3749_v2 }
 0x56d   : > { %v2375_v49 = vmul.f32 -1.442695, %v3003_v33  ;;  %v2377_v62 = vmul.f32 -1.442695, %v3019_v55 }
 0x56e   : > { %v2376_v50 = vmul.f32 -1.442695, %v3004_v45 }
 0x56f   : > { %3187 = vpow2.f32 %v2375_v49 }
 0x570   : > { %3189 = vpow2.f32 %v2376_v50 }
 0x571   : > { %3191 = vtanh.f32 %v3020_v56 }
 0x572   : > { %3193 = vpow2.f32 %v2377_v62 }
 0x579   : > { %v3188_v63 = vpop.eup %3187 }
 0x57a   : > { %v1598_v0 = vadd.f32 1.0, %v3188_v63  ;;  %v3190_v3 = vpop.eup %3189 }
 0x57b   : > { %v1599_v4 = vadd.f32 1.0, %v3190_v3  ;;  %v3192_v12 = vpop.eup %3191 }
 0x57c   : > { %3195 = vrcp.f32 %v1598_v0  ;;  %v3194_v13 = vpop.eup %3193 }
 0x57d   : > { %3197 = vrcp.f32 %v1599_v4  ;;  %v1600_v19 = vadd.f32 1.0, %v3194_v13 }
 0x57f   : > { %3199 = vrcp.f32 %v1600_v19 }
 0x586   : > { %v3196_v14 = vpop.eup %3195 }
 0x587   : > { %v1609_v17 = vmul.f32 %v3196_v14, %v3192_v12  ;;  %v3198_v18 = vpop.eup %3197 }
 0x588   : > { %v1608_v20 = vmul.f32 %v3198_v18, %v3878_v25 }
 0x589   : > { %v3200_v34 = vpop.eup %3199 }
 0x58a   : > { %v3920_v21 = vadd.f32 %v1609_v17, %v1608_v20 }
 0x58c   : > { %3201 = vtanh.f32 %v3920_v21 }
 0x596   : > { %v3202_v38 = vpop.eup %3201 }
 0x597   : > { %v1612_v42 = vmul.f32 %v3202_v38, %v3200_v34 }
 0x599   : > { %1683 = vmatmul.mubr.f32.vlgmr.msra.gmra.mrb[10].mxu0 %v1612_v42  ;;  %1754 = vmatmul.mubr.f32.vlgmr.msra.gmra.mrb[10].mxu1 %v1612_v42  ;;  %v2131_v42 = vld [vmem:[%s4117_s4 + $0x20] sm:$0xff] }
 0x59a   : > { %2846 = vmatpush1.bf16.msra.mxu0 %v3568_v48  ;;  %2878 = vmatpush1.bf16.msra.mxu1 %v3570_v52 }
 0x59b   : > { %2848 = vmatprep.subr.bf16.mxu0 %v3576_v59  ;;  %2880 = vmatprep.subr.bf16.mxu1 %v3580_v60 }
 0x59c   : > { %1857 = vmatprep.mubr.f32.mxu0 %v3381_v8  ;;  %1928 = vmatprep.mubr.f32.mxu1 %v3381_v8 }
 0x59e   : > { %2850 = vmatpush1.bf16.msra.mxu0 %v3582_v61  ;;  %2882 = vmatpush1.bf16.msra.mxu1 %v3586_v1 }
 0x59f   : > { %2852 = vmatprep.subr.bf16.mxu0 %v3593_v9  ;;  %2884 = vmatprep.subr.bf16.mxu1 %v3597_v10 }
 0x5a2   : > { %2854 = vmatpush1.bf16.msra.mxu0 %v3599_v11  ;;  %2886 = vmatpush1.bf16.msra.mxu1 %v3603_v15 }
 0x5a3   : > { %2856 = vmatprep.subr.bf16.mxu0 %v3610_v22  ;;  %2888 = vmatprep.subr.bf16.mxu1 %v3614_v23 }
 0x5a6   : > { %2858 = vmatpush1.bf16.msra.mxu0 %v3616_v24  ;;  %2890 = vmatpush1.bf16.msra.mxu1 %v3620_v28 }
 0x5a7   : > { %2860 = vmatprep.subr.bf16.mxu0 %v3627_v35  ;;  %2892 = vmatprep.subr.bf16.mxu1 %v3631_v36 }
 0x5aa   : > { %2862 = vmatpush1.bf16.msra.mxu0 %v3633_v37  ;;  %2894 = vmatpush1.bf16.msra.mxu1 %v3637_v41 }
 0x5ab   : > { %2864 = vmatprep.subr.bf16.mxu0 %v3644_v51  ;;  %2896 = vmatprep.subr.bf16.mxu1 %v3648_v53 }
 0x5ae   : > { %2866 = vmatpush1.bf16.msra.mxu0 %v3650_v54  ;;  %2898 = vmatpush1.bf16.msra.mxu1 %v3654_v58 }
 0x5af   : > { %2868 = vmatprep.subr.bf16.mxu0 %v3661_v5  ;;  %2900 = vmatprep.subr.bf16.mxu1 %v3665_v6 }
 0x5b2   : > { %2870 = vmatpush1.bf16.msra.mxu0 %v3667_v7  ;;  %2902 = vmatpush1.bf16.msra.mxu1 %v3671_v16 }
 0x5b3   : > { %2872 = vmatprep.subr.bf16.mxu0 %v3678_v26  ;;  %2904 = vmatprep.subr.bf16.mxu1 %v3682_v27 }
 0x5b6   : > { %2874 = vmatpush1.bf16.msra.mxu0 %v3684_v29  ;;  %2906 = vmatpush1.bf16.msra.mxu1 %v3688_v30 }
 0x5b7   : > { %2908 = vmatprep.subr.bf16.mxu0 %v3564_v46  ;;  %2940 = vmatprep.subr.bf16.mxu1 %v3566_v47 }
 0x66c   : > { %v1684_v25 = vpop.f32.mrb[10].mxu0  ;;  %v1755_v31 = vpop.f32.mrb[10].mxu1 }
 0x66d   : > { %v3005_v32 = vadd.f32 %v1684_v25, %v3740_v39  ;;  %v1686_v33 = vpop.f32.mrb[11].mxu0  ;;  %v1757_v43 = vpop.f32.mrb[11].mxu1  ;;  %v3021_v50 = vadd.f32 %v1755_v31, %v3746_v57  ;;  %v2132_v25 = vld [vmem:[%s4117_s4 + $0x28] sm:$0xff] }
 0x66e   : > { %v3006_v44 = vadd.f32 %v1686_v33, %v3742_v40  ;;  %v3022_v55 = vadd.f32 %v1757_v43, %v3749_v2  ;;  %v2978_v31 = vpack.c.bf16 %v2132_v25, %v2131_v42  ;;  %v2134_v33 = vld [vmem:[%s4117_s4 + $0x38] sm:$0xff] }
 0x66f   : > { %v2378_v45 = vmul.f32 -1.442695, %v3005_v32  ;;  %v2380_v56 = vmul.f32 -1.442695, %v3021_v50  ;;  %v2133_v32 = vld [vmem:[%s4117_s4 + $0x30] sm:$0xff] }
 0x670   : > { %v2379_v49 = vmul.f32 -1.442695, %v3006_v44  ;;  %v2981_v43 = vpack.c.bf16 %v2134_v33, %v2133_v32  ;;  %v2135_v44 = vld [vmem:[%s4117_s4 + $0x40] sm:$0xff]  ;;  %v2137_v50 = vld [vmem:[%s4117_s4 + $0x50] sm:$0xff] }
 0x671   : > { %3203 = vpow2.f32 %v2378_v45  ;;  %v2136_v45 = vld [vmem:[%s4117_s4 + $0x48] sm:$0xff] }
 0x672   : > { %3205 = vpow2.f32 %v2379_v49  ;;  %v2984_v49 = vpack.c.bf16 %v2136_v45, %v2135_v44 }
 0x673   : > { %3207 = vtanh.f32 %v3022_v55  ;;  %v2138_v55 = vld [vmem:[%s4117_s4 + $0x58] sm:$0xff] }
 0x674   : > { %3209 = vpow2.f32 %v2380_v56  ;;  %v2987_v56 = vpack.c.bf16 %v2138_v55, %v2137_v50 }
 0x67b   : > { %v3204_v46 = vpop.eup %3203 }
 0x67c   : > { %v1773_v62 = vadd.f32 1.0, %v3204_v46  ;;  %v3206_v47 = vpop.eup %3205  ;;  %v2139_v46 = vld [vmem:[%s4117_s4 + $0x60] sm:$0xff] }
 0x67d   : > { %v1774_v63 = vadd.f32 1.0, %v3206_v47  ;;  %v3208_v0 = vpop.eup %3207 }
 0x67e   : > { %3211 = vrcp.f32 %v1773_v62  ;;  %v3210_v3 = vpop.eup %3209  ;;  %v2140_v62 = vld [vmem:[%s4117_s4 + $0x68] sm:$0xff] }
 0x67f   : > { %3213 = vrcp.f32 %v1774_v63  ;;  %v1775_v14 = vadd.f32 1.0, %v3210_v3  ;;  %v2990_v47 = vpack.c.bf16 %v2140_v62, %v2139_v46  ;;  %v2141_v63 = vld [vmem:[%s4117_s4 + $0x70] sm:$0xff] }
 0x681   : > { %3215 = vrcp.f32 %v1775_v14 }
 0x688   : > { %v3212_v4 = vpop.eup %3211 }
 0x689   : > { %v1784_v12 = vmul.f32 %v3212_v4, %v3208_v0  ;;  %v3214_v13 = vpop.eup %3213  ;;  %v2142_v0 = vld [vmem:[%s4117_s4 + $0x78] sm:$0xff] }
 0x68a   : > { %v1783_v17 = vmul.f32 %v3214_v13, %v3920_v21  ;;  %v2130_v21 = vld [vmem:[%s4117_s4 + $0x18] sm:$0xff]  ;;  %v2993_v3 = vpack.c.bf16 %v2142_v0, %v2141_v63 }
 0x68b   : > { %v3216_v19 = vpop.eup %3215 }
 0x68c   : > { %v3962_v18 = vadd.f32 %v1784_v12, %v1783_v17 }
 0x68e   : > { %3217 = vtanh.f32 %v3962_v18 }
 0x698   : > { %v3218_v20 = vpop.eup %3217 }
 0x699   : > { %v1787_v34 = vmul.f32 %v3218_v20, %v3216_v19 }
 0x69b   : > { %1858 = vmatmul.mubr.f32.vlgmr.msra.gmra.mrb[12].mxu0 %v1787_v34  ;;  %1929 = vmatmul.mubr.f32.vlgmr.msra.gmra.mrb[12].mxu1 %v1787_v34 }
 0x69c   : > { %2910 = vmatpush1.bf16.msra.mxu0 %v3568_v48  ;;  %2942 = vmatpush1.bf16.msra.mxu1 %v3570_v52 }
 0x69d   : > { %2912 = vmatprep.subr.bf16.mxu0 %v3576_v59  ;;  %2944 = vmatprep.subr.bf16.mxu1 %v3580_v60 }
 0x69e   : > { %2031 = vmatprep.mubr.f32.mxu0 %v3381_v8  ;;  %2102 = vmatprep.mubr.f32.mxu1 %v3381_v8 }
 0x6a0   : > { %2914 = vmatpush1.bf16.msra.mxu0 %v3582_v61  ;;  %2946 = vmatpush1.bf16.msra.mxu1 %v3586_v1 }
 0x6a1   : > { %2916 = vmatprep.subr.bf16.mxu0 %v3593_v9  ;;  %2948 = vmatprep.subr.bf16.mxu1 %v3597_v10 }
 0x6a4   : > { %2918 = vmatpush1.bf16.msra.mxu0 %v3599_v11  ;;  %2950 = vmatpush1.bf16.msra.mxu1 %v3603_v15 }
 0x6a5   : > { %2920 = vmatprep.subr.bf16.mxu0 %v3610_v22  ;;  %2952 = vmatprep.subr.bf16.mxu1 %v3614_v23 }
 0x6a8   : > { %2922 = vmatpush1.bf16.msra.mxu0 %v3616_v24  ;;  %2954 = vmatpush1.bf16.msra.mxu1 %v3620_v28 }
 0x6a9   : > { %2924 = vmatprep.subr.bf16.mxu0 %v3627_v35  ;;  %2956 = vmatprep.subr.bf16.mxu1 %v3631_v36 }
 0x6ac   : > { %2926 = vmatpush1.bf16.msra.mxu0 %v3633_v37  ;;  %2958 = vmatpush1.bf16.msra.mxu1 %v3637_v41 }
 0x6ad   : > { %2928 = vmatprep.subr.bf16.mxu0 %v3644_v51  ;;  %2960 = vmatprep.subr.bf16.mxu1 %v3648_v53 }
 0x6b0   : > { %2930 = vmatpush1.bf16.msra.mxu0 %v3650_v54  ;;  %2962 = vmatpush1.bf16.msra.mxu1 %v3654_v58 }
 0x6b1   : > { %2932 = vmatprep.subr.bf16.mxu0 %v3661_v5  ;;  %2964 = vmatprep.subr.bf16.mxu1 %v3665_v6 }
 0x6b4   : > { %2934 = vmatpush1.bf16.msra.mxu0 %v3667_v7  ;;  %2966 = vmatpush1.bf16.msra.mxu1 %v3671_v16 }
 0x6b5   : > { %2936 = vmatprep.subr.bf16.mxu0 %v3678_v26  ;;  %2968 = vmatprep.subr.bf16.mxu1 %v3682_v27  ;;  %v2127_v26 = vld [vmem:[%s4117_s4] sm:$0xff]  ;;  %v2128_v27 = vld [vmem:[%s4117_s4 + $0x8] sm:$0xff] }
 0x6b8   : > { %2938 = vmatpush1.bf16.msra.mxu0 %v3684_v29  ;;  %2970 = vmatpush1.bf16.msra.mxu1 %v3688_v30  ;;  %v2972_v29 = vpack.c.bf16 %v2128_v27, %v2127_v26  ;;  %v3382_v30 = vmov 0.0|0.0  }
 0x6b9   : > { %2971 = vmatprep.subr.bf16.mxu0 %v3382_v30 }
 0x76e   : > { %v1859_v48 = vpop.f32.mrb[12].mxu0  ;;  %v1930_v52 = vpop.f32.mrb[12].mxu1 }
 0x76f   : > { %v3007_v59 = vadd.f32 %v1859_v48, %v3740_v39  ;;  %v1861_v60 = vpop.f32.mrb[13].mxu0  ;;  %v1932_v61 = vpop.f32.mrb[13].mxu1  ;;  %v3023_v11 = vadd.f32 %v1930_v52, %v3746_v57  ;;  %v2129_v57 = vld [vmem:[%s4117_s4 + $0x10] sm:$0xff] }
 0x770   : > { %v3008_v1 = vadd.f32 %v1861_v60, %v3742_v40  ;;  %v3024_v15 = vadd.f32 %v1932_v61, %v3749_v2  ;;  %v2975_v38 = vpack.c.bf16 %v2130_v21, %v2129_v57 }
 0x771   : > { %v2381_v9 = vmul.f32 -1.442695, %v3007_v59  ;;  %v2383_v22 = vmul.f32 -1.442695, %v3023_v11 }
 0x772   : > { %v2382_v10 = vmul.f32 -1.442695, %v3008_v1 }
 0x773   : > { %3219 = vpow2.f32 %v2381_v9 }
 0x774   : > { %3221 = vpow2.f32 %v2382_v10  ;;  %v2386_v10 = vld [vmem:[%s4118_s5] ss:$0 sm:$0xff] }
 0x775   : > { %3223 = vtanh.f32 %v3024_v15 }
 0x776   : > { %3225 = vpow2.f32 %v2383_v22 }
 0x77d   : > { %v3220_v23 = vpop.eup %3219 }
 0x77e   : > { %v1948_v24 = vadd.f32 1.0, %v3220_v23  ;;  %v3222_v28 = vpop.eup %3221 }
 0x77f   : > { %v1949_v35 = vadd.f32 1.0, %v3222_v28  ;;  %v3224_v36 = vpop.eup %3223 }
 0x780   : > { %3227 = vrcp.f32 %v1948_v24  ;;  %v3226_v37 = vpop.eup %3225 }
 0x781   : > { %3229 = vrcp.f32 %v1949_v35  ;;  %v1950_v54 = vadd.f32 1.0, %v3226_v37 }
 0x783   : > { %3231 = vrcp.f32 %v1950_v54 }
 0x78a   : > { %v3228_v41 = vpop.eup %3227 }
 0x78b   : > { %v1959_v51 = vmul.f32 %v3228_v41, %v3224_v36  ;;  %v3230_v53 = vpop.eup %3229 }
 0x78c   : > { %v1958_v58 = vmul.f32 %v3230_v53, %v3962_v18 }
 0x78d   : > { %v3232_v6 = vpop.eup %3231 }
 0x78e   : > { %v4002_v5 = vadd.f32 %v1959_v51, %v1958_v58 }
 0x790   : > { %3233 = vtanh.f32 %v4002_v5 }
 0x79a   : > { %v3234_v7 = vpop.eup %3233 }
 0x79b   : > { %v1962_v16 = vmul.f32 %v3234_v7, %v3232_v6 }
 0x79d   : > { %2032 = vmatmul.mubr.f32.vlgmr.msra.gmra.mrb[14].mxu0 %v1962_v16  ;;  %2103 = vmatmul.mubr.f32.vlgmr.msra.gmra.mrb[14].mxu1 %v1962_v16 }
 0x79e   : > { %2973 = vmatpush3.bf16.msra.mxu0 %v2972_v29  ;;  %2440 = vmatprep.mubr.msk.f32.mxu0 %vm3383_vm1, %v3381_v8 }
 0x79f   : > { %2974 = vmatprep.subr.bf16.mxu0 %v3382_v30 }
 0x7a2   : > { %2976 = vmatpush3.bf16.msra.mxu0 %v2975_v38 }
 0x7a3   : > { %2977 = vmatprep.subr.bf16.mxu0 %v3382_v30 }
 0x7a6   : > { %2979 = vmatpush3.bf16.msra.mxu0 %v2978_v31 }
 0x7a7   : > { %2980 = vmatprep.subr.bf16.mxu0 %v3382_v30 }
 0x7aa   : > { %2982 = vmatpush3.bf16.msra.mxu0 %v2981_v43 }
 0x7ab   : > { %2983 = vmatprep.subr.bf16.mxu0 %v3382_v30 }
 0x7ae   : > { %2985 = vmatpush3.bf16.msra.mxu0 %v2984_v49 }
 0x7af   : > { %2986 = vmatprep.subr.bf16.mxu0 %v3382_v30 }
 0x7b2   : > { %2988 = vmatpush3.bf16.msra.mxu0 %v2987_v56 }
 0x7b3   : > { %2989 = vmatprep.subr.bf16.mxu0 %v3382_v30 }
 0x7b6   : > { %2991 = vmatpush3.bf16.msra.mxu0 %v2990_v47 }
 0x7b7   : > { %2992 = vmatprep.subr.bf16.mxu0 %v3382_v30 }
 0x7ba   : > { %2994 = vmatpush3.bf16.msra.mxu0 %v2993_v3 }
 0x870   : > { %v2033_v4 = vpop.f32.mrb[14].mxu0  ;;  %v2104_v12 = vpop.f32.mrb[14].mxu1 }
 0x871   : > { %v3009_v13 = vadd.f32 %v2033_v4, %v3740_v39  ;;  %v2035_v8 = vpop.f32.mrb[15].mxu0  ;;  %v2105_v14 = vpop.f32.mrb[15].mxu1 }
 0x872   : > { %v3010_v17 = vadd.f32 %v2035_v8, %v3742_v40  ;;  %v3025_v20 = vadd.f32 %v2105_v14, %v3749_v2 }
 0x873   : > { %v2384_v18 = vmul.f32 -1.442695, %v3009_v13 }
 0x874   : > { %v2385_v19 = vmul.f32 -1.442695, %v3010_v17 }
 0x875   : > { %3235 = vpow2.f32 %v2384_v18 }
 0x876   : > { %3237 = vpow2.f32 %v2385_v19 }
 0x877   : > { %3239 = vtanh.f32 %v3025_v20 }
 0x87f   : > { %v3236_v34 = vpop.eup %3235 }
 0x880   : > { %v3238_v48 = vpop.eup %3237  ;;  %v2117_v52 = vadd.f32 1.0, %v3236_v34 }
 0x881   : > { %v2118_v59 = vadd.f32 1.0, %v3238_v48  ;;  %v3240_v60 = vpop.eup %3239 }
 0x882   : > { %3241 = vrcp.f32 %v2117_v52 }
 0x883   : > { %3243 = vrcp.f32 %v2118_v59 }
 0x88c   : > { %v3242_v61 = vpop.eup %3241 }
 0x88d   : > { %v3244_v39 = vpop.eup %3243  ;;  %v2125_v1 = vmul.f32 %v3242_v61, %v3240_v60 }
 0x88e   : > { %v2124_v9 = vmul.f32 %v3244_v39, %v4002_v5 }
 0x890   : > { %v2126_v40 = vadd.f32 %v2125_v1, %v2124_v9 }
 0x892   : > { %2441 = vmatmul.mubr.f32.vlgmr.msra.gmra.mrb[16].mxu0 %v2126_v40 }
 0x965   : > { %v2216_v2 = vpop.f32.mrb[16].mxu0 }
 0x966   : > { %v2217_v11 = vadd.f32 %v2386_v10, %v2216_v2  ;;  %v2442_v15 = vpop.f32.mrb[17].mxu0 }
 0x968   : > { %v2221_v22 = vsel %vm2220_vm2, %v2217_v11, -inf }
 0x969   : > { %2222 = vmax.xlane.f32.xlu0 %v2221_v22 }
 0x9f6   : > { %v2223_v23 = vpop.xlane.xlu0 %2222 }
 0x9f7   : > { %v2224_v24 = vsub.f32 %v2217_v11, %v2223_v23 }
 0x9f9   : > { %v2225_v28 = vmul.f32 1.442695, %v2224_v24 }
 0x9fb   : > { %3245 = vpow2.f32 %v2225_v28 }
 0xa05   : > { %v3246_v35 = vpop.eup %3245 }
 0xa06   : > { %v2227_v36 = vsel %vm2220_vm2, %v3246_v35, 0.0 }
 0xa07   : > { %2228 = vadd.xlane.f32.xlu0 %v2227_v36 }
 0xa94   : > { %v2229_v37 = vpop.xlane.xlu0 %2228 }
 0xa95   : > { %3247 = vlog2.f32 %v2229_v37 }
 0xa9f   : > { %v3248_v41 = vpop.eup %3247 }
 0xaa0   : > { %v2231_v51 = vmul.f32 0.6931472, %v3248_v41 }
 0xaa2   : > { %v2232_v53 = vsub.f32 %v2224_v24, %v2231_v51 }
 0xaa4   : > { %2233 = vst.msk [vmem:[%s341_s19] sm:$0xff] %vm2220_vm2, %v2232_v53 }
 0xaa5   : > { %3318 = shalt.err (!%p3315_p2)
}
 0xaa6   : > { %s3319_s7 = scalar_lea.hbm %s4068_s15, 128  ;;  %s3323_s30 = scalar_lea.hbm %s4119_s6, 256 }
 0xaa7   : > { %p3320_p0 = scmp.ne.s32.totalorder %s4068_s15, %s3319_s7  ;;  %p3324_p10 = scmp.lt.u32.totalorder %s4068_s15, %s4119_s6 }
 0xaa8   : > { %p3325_p11 = scmp.lt.u32.totalorder %s3323_s30, %s3319_s7  ;;  %p3327_p4 = scmp.lt.u32.totalorder %s3319_s7, %s4068_s15 }
 0xaa9   : > { %p3321_p5 = pnand %p3320_p0, %p4135_p3 }
 0xaaa   : > { %p3326_p12 = por %p3325_p11, %p3324_p10 }
 0xaab   : > { %p3322_p6 = pneg %p3321_p5 }
 0xaac   : > { %p3328_p7 = por %p3327_p4, %p3326_p12 }
 0xaae   : > { %p3329_p8 = pnand %p3328_p7, %p3322_p6 }
 0xab0   : > { %3332 = shalt.err (!%p3329_p8)
}
 0xab1   : > { %3066 = dma.vmem_to_hbm [thread:$0]  (%p4135_p3), %s4070_s20, 128, %s4068_s15, %s2235_s11  }
 0xab2 PF: > { %s2260_s18 = sand.u32 1, %s3363_s21   ;;  %p4136_p9 = scmp.ne.s32.totalorder %s4126_s9, 0 }
 0xab3   : > { %s2261_s19 = scalar_lea.sflag [#allocation6], %s2260_s18 }
 0xab4   : > { %p3076_p13 = pnand %p2339_p1, %p4136_p9 }
 0xab6   : > { %3358 = dma.done.wait (!%p3076_p13), %s2261_s19, 128  }
 0xab7   : > { %3360 = vsyncadd (!%p3076_p13), %s2261_s19, 4294967168  ;;  %s4137_s13 = sld [smem:[#allocation13_spill]]  ;;  %p18_p2 = scmp.ge.s32.totalorder %s3445_s27, 4  }
 0xab8   : > { %s4138_s21 = smov %s3367_s22  ;;  %s4139_s22 = smov %s3371_s23 }
 0xab9   : > { %s4141_s24 = smov %s3445_s27  ;;  %20 = sbr.rel (!%p18_p2) target bundleno = 5 (0x5), region = 138 }
 0xabd   : > { %s4140_s23 = smov %s4137_s13 }
 0xac0   :  { %2266 = vsyncpa [#allocation5], 1 }
 0xac1   :  { %2268 = vsyncpa [#allocation5 + $0x1], 1 }
 0xac2   :  { %2269 = vsyncpa [#allocation8], 1 }
 0xac3   :  { %2270 = vsyncpa [#allocation6], 1 }
 0xac4   :  { %2272 = vsyncpa [#allocation6 + $0x1], 1 }

// kernel: tpu_custom_call.1
= control target key start
LH: loop header
LB: loop body
LE: loop exit
PB: predicated region body
PF: predicated region fallthrough
CT: control target
= control target key end

     0   :  { %11 = vsyncpa [#allocation5], 0  ;;  %s4113_s0 = inlined_call_operand.vmem [shape: f32[8,16,40], index: 0, kind: input, shape index: {}]   ;;  %s4114_s1 = inlined_call_operand.hbm [shape: f32[40,512], index: 1, kind: input, shape index: {}]   ;;  %s4115_s2 = inlined_call_operand.hbm [shape: f32[128,512], index: 2, kind: input, shape index: {}]   ;;  %s4116_s3 = inlined_call_operand.vmem [shape: f32[1,512], index: 3, kind: input, shape index: {}]   ;;  %s4117_s4 = inlined_call_operand.vmem [shape: f32[128,10], index: 4, kind: input, shape index: {}]   ;;  %s4118_s5 = inlined_call_operand.vmem [shape: f32[1,10], index: 5, kind: input, shape index: {}]   ;;  %s4119_s6 = inlined_call_operand.hbm [shape: f32[16,10], index: 6, kind: output, shape index: {}]  }
   0x1   :  { %12 = vsyncpa [#allocation8], 0 }
   0x2   :  { %13 = vsyncpa [#allocation6], 0 }
   0x3   :  { %15 = vsyncpa [#allocation6 + $0x1], 0  ;;  %s3420_s21 = smov 0   ;;  %s3422_s22 = smov 0  }
   0x4   :  { %s3424_s23 = smov 0   ;;  %s3426_s24 = smov 0  }
   0x5 LB: > { %s3441_s25 = sadd.s32 4294967295, %s3375_s24   ;;  %s2335_s26 = sadd.s32 4294967294, %s3375_s24   ;;  %s3375_s24 = sphi %s3426_s24, %s4141_s24   ;;  %s3371_s23 = sphi %s3424_s23, %s4140_s23   ;;  %s3367_s22 = sphi %s3422_s22, %s4139_s22   ;;  %s3363_s21 = sphi %s3420_s21, %s4138_s21  }
   0x6   : > { %s3445_s27 = sadd.s32 1, %s3375_s24   ;;  %s28_s28 = sadd.s32 1, %s3371_s23 }
   0x7   : > { %s25_s29 = ssub.s32 %s3375_s24, %s3445_s27  ;;  %p35_p0 = scmp.ne.s32.totalorder %s3371_s23, %s3367_s22 }
   0x8   : > { %p26_p1 = scmp.eq.s32.totalorder %s25_s29, 0  ;;  %p36_p2 = scmp.eq.s32.totalorder %s3375_s24, 0 }
   0x9   : > { %p170_p3 = scmp.eq.s32.totalorder %s3441_s25, 1  ;;  %p175_p4 = scmp.ne.s32.totalorder %s3367_s22, %s3363_s21 }
   0xa   : > { %s3457_s30 = scalar_select %p26_p1, %s3371_s23, %s28_s28  }
   0xb   : > { %p3459_p5 = por %p36_p2, %p35_p0  ;;  %p3463_p6 = por %p170_p3, %p35_p0 }
   0xc   : > { %4123 = sst [smem:[#allocation13_spill]] %s3457_s30  ;;  %p176_p7 = scmp.eq.s32.totalorder %s2335_s26, 1 }
   0xd   : > { %s4124_s7 = scalar_select %p3459_p5, 1, 0 }
   0xe   : > { %s4125_s8 = scalar_select %p3463_p6, 1, 0 }
   0xf   : > { %p2336_p8 = scmp.ge.s32.totalorder %s3375_s24, 1  ;;  %p183_p9 = scmp.lt.s32.totalorder %s3375_s24, 3 }
  0x10   : > { %p3469_p10 = por %p176_p7, %p175_p4  ;;  %p4120_p11 = scmp.eq.s32.totalorder %s3441_s25, 0 }
  0x11   : > { %p3474_p12 = pnand %p2336_p8, %p183_p9  ;;  %s3377_s11 = smov [#allocation4]  }
  0x12   : > { %s4126_s9 = scalar_select %p3469_p10, 1, 0 }
  0x13   : > { %s4127_s10 = scalar_select %p3474_p12, 1, 0 }
  0x14   : > { %s195_s12 = sshll.u32 %s3377_s11, 4  ;;  %p3068_p13 = pneg %p3474_p12  ;;  %s196_s12 = int_to_ptr.vmem [resolvable:$true] %s195_s12 }
  0x15   : > { %s3378_s14 = smov [#allocation7]   ;;  %s3249_s18 = scalar_lea.hbm %s4114_s1, 2560 }
  0x16   : > { %p3482_p0 = pnand %p4120_p11, %p3068_p13  ;;  %s208_s15 = sshll.u32 %s3378_s14, 4  ;;  %s3486_s15 = int_to_ptr.vmem [resolvable:$true] %s208_s15 }
  0x17   : > { %p3250_p1 = scmp.ne.s32.totalorder %s4114_s1, %s3249_s18  ;;  %p3256_p7 = scmp.lt.u32.totalorder %s3249_s18, %s4114_s1 }
  0x18   : > { %p3251_p2 = pneg %p3482_p0 }
  0x1a   : > { %p3252_p3 = pnand %p3251_p2, %p3250_p1 }
  0x1c   : > { %p3253_p4 = pneg %p3252_p3 }
  0x1e   : > { %p3258_p8 = pnand %p3256_p7, %p3253_p4 }
  0x20   : > { %3261 = shalt.err (!%p3258_p8)
}
  0x21   : > { %s3262_s29 = scalar_lea.vmem %s196_s12, 2560  ;;  %p3270_p10 = scmp.lt.s32.totalorder %s196_s12, %s196_s12 }
  0x22   : > { %p3263_p9 = scmp.ne.s32.totalorder %s196_s12, %s3262_s29  ;;  %p3271_p6 = scmp.lt.s32.totalorder %s3262_s29, %s3262_s29 }
  0x24   : > { %p3265_p13 = pnand %p3263_p9, %p3251_p2  ;;  %p3272_p12 = por %p3271_p6, %p3270_p10 }
  0x26   : > { %p3266_p11 = pneg %p3265_p13 }
  0x28   : > { %p3273_p5 = pnand %p3272_p12, %p3266_p11 }
  0x2a   : > { %3276 = shalt.err (!%p3273_p5)
}
  0x2b   : > { %s3379_s11 = smov 512   ;;  %s3380_s14 = smov 32  }
  0x2c   : > { %3071 = dma.hbm_to_vmem [thread:$0]  (!%p3482_p0), %s4114_s1, 2560, %s196_s12, [#allocation5], %s3379_s11, %s3379_s11, %s3380_s14  }
  0x2d   : > { %s3277_s20 = scalar_lea.hbm %s4115_s2, 8192 }
  0x2e   : > { %p3278_p1 = scmp.ne.s32.totalorder %s4115_s2, %s3277_s20  ;;  %p3284_p10 = scmp.lt.u32.totalorder %s3277_s20, %s4115_s2 }
  0x30   : > { %p3280_p5 = pnand %p3278_p1, %p3251_p2 }
  0x32   : > { %p3281_p6 = pneg %p3280_p5 }
  0x34   : > { %p3286_p11 = pnand %p3284_p10, %p3281_p6 }
  0x36   : > { %3289 = shalt.err (!%p3286_p11)
}
  0x37   : > { %s3290_s12 = scalar_lea.vmem %s3486_s15, 8192  ;;  %p3298_p7 = scmp.lt.s32.totalorder %s3486_s15, %s3486_s15 }
  0x38   : > { %p3291_p12 = scmp.ne.s32.totalorder %s3486_s15, %s3290_s12  ;;  %p3299_p8 = scmp.lt.s32.totalorder %s3290_s12, %s3290_s12 }
  0x3a   : > { %p3293_p3 = pnand %p3291_p12, %p3251_p2  ;;  %p3300_p9 = por %p3299_p8, %p3298_p7 }
  0x3c   : > { %p3294_p4 = pneg %p3293_p3 }
  0x3e   : > { %p3301_p13 = pnand %p3300_p9, %p3294_p4 }
  0x40   : > { %3304 = shalt.err (!%p3301_p13)
}
  0x41   : > { %3074 = dma.hbm_to_vmem [thread:$0]  (!%p3482_p0), %s4115_s2, 8192, %s3486_s15, [#allocation8], %s3379_s11, %s3379_s11, %s3380_s14  }
  0x42   : > { %p2339_p1 = scmp.ge.s32.totalorder %s3375_s24, 2 }
  0x43   : > { %p4129_p2 = scmp.ne.s32.totalorder (!%p2339_p1), %s4124_s7, 0 }
  0x44   : > { %227 = sbr.rel (%p2339_p1) target bundleno = 83 (0x53), region = 36 }
  0x4b   : > { %230 = sbr.rel (!%p4129_p2) target bundleno = 83 (0x53), region = 40  ;;  %s232_s17 = sand.u32 (%p4129_p2), 1, %s3371_s23  }
  0x4c   : > { %s2341_s18 = sshll.u32 (%p4129_p2), %s3375_s24, 3  ;;  %s2340_s19 = sshll.u32 (%p4129_p2), %s232_s17, 6 }
  0x4d   : > { %s236_s26 = scalar_lea.vmem (%p4129_p2), %s4113_s0, %s2341_s18  ;;  %s234_s15 = scalar_lea.vmem (%p4129_p2), [#allocation3], %s2340_s19 }
  0x4e   : > { %v278_v0 = vld [vmem:[%s236_s26] sm:$0xff] (%p4129_p2)  ;;  %v280_v1 = vld [vmem:[%s236_s26 + $0x10] sm:$0xff] (%p4129_p2) }
  0x4f   : > { %v282_v2 = vld [vmem:[%s236_s26 + $0x20] sm:$0xff] (%p4129_p2)  ;;  %279 = vst [vmem:[%s234_s15] sm:$0xff] (%p4129_p2), %v278_v0  ;;  %281 = vst [vmem:[%s234_s15 + $0x8] sm:$0xff] (%p4129_p2), %v280_v1  ;;  %v284_v3 = vld [vmem:[%s236_s26 + $0x30] sm:$0xff] (%p4129_p2) }
  0x50   : > { %283 = vst [vmem:[%s234_s15 + $0x10] sm:$0xff] (%p4129_p2), %v282_v2  ;;  %v286_v4 = vld [vmem:[%s236_s26 + $0x40] sm:$0xff] (%p4129_p2)  ;;  %v288_v5 = vld [vmem:[%s236_s26 + $0x50] sm:$0xff] (%p4129_p2)  ;;  %285 = vst [vmem:[%s234_s15 + $0x18] sm:$0xff] (%p4129_p2), %v284_v3 }
  0x51   : > { %287 = vst [vmem:[%s234_s15 + $0x20] sm:$0xff] (%p4129_p2), %v286_v4  ;;  %289 = vst [vmem:[%s234_s15 + $0x28] sm:$0xff] (%p4129_p2), %v288_v5  ;;  %v290_v6 = vld [vmem:[%s236_s26 + $0x60] sm:$0xff] (%p4129_p2)  ;;  %v292_v7 = vld [vmem:[%s236_s26 + $0x70] sm:$0xff] (%p4129_p2) }
  0x52   : > { %291 = vst [vmem:[%s234_s15 + $0x30] sm:$0xff] %v290_v6  ;;  %293 = vst [vmem:[%s234_s15 + $0x38] sm:$0xff] %v292_v7 }
  0x53 PF: > { %p4130_p0 = scmp.ne.s32.totalorder %s4127_s10, 0 }
  0x54   : > { %s3548_s7 = sand.u32 (!%p4130_p0), 1, %s3367_s22   ;;  %p4131_p5 = scmp.eq.s32.totalorder (!%p4130_p0), %s3441_s25, 0 }
  0x55   : > { %302 = sbr.rel (%p4130_p0) target bundleno = 2738 (0xab2), region = 78  ;;  %s2343_s11 = sshll.u32 (!%p4130_p0), %s3548_s7, 6 }
  0x56   : > { %s3551_s14 = scalar_lea.vmem (!%p4130_p0), [#allocation3], %s2343_s11 }
  0x5c   : > { %3350 = dma.done.wait (%p4131_p5), [#allocation5], 2560   ;;  %p4132_p6 = pmov %p4131_p5 }
  0x5d   : > { %p4133_p10 = pmov %p4131_p5 }
  0x5e   : > { %3352 = vsyncadd (%p4132_p6), [#allocation5], 4294964736 }
  0x5f   : > { %3354 = dma.done.wait (%p4133_p10), [#allocation8], 8192   ;;  %p4134_p11 = pmov %p4131_p5 }
  0x60   : > { %v3381_v8 = vmov 0.0   ;;  %v351_v9 = vld [vmem:[#allocation4 + $0x8] sm:$0xff]  ;;  %v353_v11 = vld [vmem:[#allocation4 + $0x18] sm:$0xff]  ;;  %v350_v14 = vld [vmem:[#allocation4] sm:$0xff]  ;;  %vm392_vm0 = vcmask 326656   ;;  %vm3383_vm1 = vmmov 0  }
  0x61   : > { %3356 = vsyncadd (%p4134_p11), [#allocation8], 4294959104  ;;  %481 = vmatprep.mubr.f32.mxu0 %v3381_v8  ;;  %594 = vmatprep.mubr.f32.mxu1 %v3381_v8  ;;  %v355_v10 = vld [vmem:[#allocation4 + $0x28] sm:$0xff]  ;;  %v357_v13 = vld [vmem:[#allocation4 + $0x38] sm:$0xff]  ;;  %vm2220_vm2 = vcmask 80896   ;;  %s2346_s17 = sshll.u32 %s3548_s7, 3 }
  0x62   : > { %v2443_v12 = vpack.c.bf16 %v355_v10, %v351_v9  ;;  %v354_v15 = vld [vmem:[#allocation4 + $0x20] sm:$0xff]  ;;  %v2451_v16 = vpack.c.bf16 %v357_v13, %v353_v11  ;;  %v352_v18 = vld [vmem:[#allocation4 + $0x10] sm:$0xff]  ;;  %v359_v20 = vld [vmem:[#allocation4 + $0x48] sm:$0xff]  ;;  %s2388_s18 = sshll.u32 %s3441_s25, 7  ;;  %s341_s19 = scalar_lea.vmem [#allocation9], %s2346_s17 }
  0x63   : > { %v2445_v17 = vpack.c.bf16 %v354_v15, %v350_v14  ;;  %v356_v19 = vld [vmem:[#allocation4 + $0x30] sm:$0xff]  ;;  %v363_v22 = vld [vmem:[#allocation4 + $0x68] sm:$0xff]  ;;  %v361_v23 = vld [vmem:[#allocation4 + $0x58] sm:$0xff]  ;;  %s2248_s20 = sshll.u32 %s341_s19, 4  ;;  %s4068_s15 = scalar_lea.hbm %s4119_s6, %s2388_s18  ;;  %s4070_s20 = int_to_ptr.vmem [resolvable:$true] %s2248_s20 }
  0x64   : > { %2444 = vmatprep.subr.bf16.mxu0 %v2443_v12  ;;  %v2453_v21 = vpack.c.bf16 %v356_v19, %v352_v18  ;;  %v365_v24 = vld [vmem:[#allocation4 + $0x78] sm:$0xff]  ;;  %2452 = vmatprep.subr.bf16.mxu1 %v2451_v16  ;;  %v2447_v25 = vpack.c.bf16 %v363_v22, %v359_v20  ;;  %v358_v27 = vld [vmem:[#allocation4 + $0x40] sm:$0xff]  ;;  %v360_v29 = vld [vmem:[#allocation4 + $0x50] sm:$0xff]  ;;  %s2235_s11 = scalar_lea.sflag [#allocation6], %s3548_s7  ;;  %p4135_p3 = scmp.ne.s32.totalorder %s4125_s8, 0 }
  0x65   : > { %2446 = vmatpush1.bf16.msra.mxu0 %v2445_v17  ;;  %v2455_v26 = vpack.c.bf16 %v365_v24, %v361_v23  ;;  %v362_v28 = vld [vmem:[#allocation4 + $0x60] sm:$0xff]  ;;  %v364_v31 = vld [vmem:[#allocation4 + $0x70] sm:$0xff]  ;;  %v367_v33 = vld [vmem:[#allocation4 + $0x88] sm:$0xff]  ;;  %s3384_s25 = smov [#allocation9]  }
  0x66   : > { %2454 = vmatpush1.bf16.msra.mxu1 %v2453_v21  ;;  %v2449_v30 = vpack.c.bf16 %v362_v28, %v358_v27  ;;  %2448 = vmatprep.subr.bf16.mxu0 %v2447_v25  ;;  %v2457_v32 = vpack.c.bf16 %v364_v31, %v360_v29  ;;  %v369_v34 = vld [vmem:[#allocation4 + $0x98] sm:$0xff]  ;;  %v680_v35 = vld [vmem:[#allocation7 + $0x8] sm:$0xff]  ;;  %v679_v39 = vld [vmem:[#allocation7] sm:$0xff]  ;;  %s3309_s10 = sshll.u32 %s3384_s25, 4  ;;  %s3310_s10 = int_to_ptr.vmem [resolvable:$false] %s3309_s10 }
  0x67   : > { %2456 = vmatprep.subr.bf16.mxu1 %v2455_v26  ;;  %v684_v36 = vld [vmem:[#allocation7 + $0x28] sm:$0xff]  ;;  %v682_v37 = vld [vmem:[#allocation7 + $0x18] sm:$0xff]  ;;  %v683_v40 = vld [vmem:[#allocation7 + $0x20] sm:$0xff]  ;;  %s3311_s28 = scalar_lea.vmem %s3310_s10, 256  ;;  %p3312_p8 = scmp.lt.s32.totalorder %s4070_s20, %s3310_s10 }
  0x68   : > { %v686_v38 = vld [vmem:[#allocation7 + $0x38] sm:$0xff]  ;;  %v366_v41 = vld [vmem:[#allocation4 + $0x80] sm:$0xff]  ;;  %v681_v42 = vld [vmem:[#allocation7 + $0x10] sm:$0xff]  ;;  %v3564_v46 = vpack.c.bf16 %v684_v36, %v680_v35  ;;  %v3568_v48 = vpack.c.bf16 %v683_v40, %v679_v39 }
  0x69   : > { %2450 = vmatpush1.bf16.msra.mxu0 %v2449_v30  ;;  %v685_v43 = vld [vmem:[#allocation7 + $0x30] sm:$0xff]  ;;  %v342_v45 = vld [vmem:[%s3551_s14] sm:$0xff]  ;;  %v3566_v47 = vpack.c.bf16 %v686_v38, %v682_v37  ;;  %v688_v49 = vld [vmem:[#allocation7 + $0x48] sm:$0xff] }
  0x6a   : > { %2458 = vmatpush1.bf16.msra.mxu1 %v2457_v32  ;;  %425 = vmatprep.subr.mxu0 %v367_v33  ;;  %v368_v44 = vld [vmem:[#allocation4 + $0x90] sm:$0xff]  ;;  %v692_v50 = vld [vmem:[#allocation7 + $0x68] sm:$0xff]  ;;  %v690_v51 = vld [vmem:[#allocation7 + $0x58] sm:$0xff]  ;;  %v3570_v52 = vpack.c.bf16 %v685_v43, %v681_v42 }
  0x6b   : > { %538 = vmatprep.subr.mxu1 %v369_v34  ;;  %v694_v53 = vld [vmem:[#allocation7 + $0x78] sm:$0xff]  ;;  %v687_v54 = vld [vmem:[#allocation7 + $0x40] sm:$0xff]  ;;  %v689_v56 = vld [vmem:[#allocation7 + $0x50] sm:$0xff]  ;;  %v3576_v59 = vpack.c.bf16 %v692_v50, %v688_v49 }
  0x6c   : > { %v691_v55 = vld [vmem:[#allocation7 + $0x60] sm:$0xff]  ;;  %v693_v57 = vld [vmem:[#allocation7 + $0x70] sm:$0xff]  ;;  %v343_v58 = vld [vmem:[%s3551_s14 + $0x8] sm:$0xff]  ;;  %v3580_v60 = vpack.c.bf16 %v694_v53, %v690_v51 }
  0x6d   : > { %426 = vmatpush1.msra.mxu0 %v366_v41  ;;  %v3582_v61 = vpack.c.bf16 %v691_v55, %v687_v54  ;;  %v696_v62 = vld [vmem:[#allocation7 + $0x88] sm:$0xff]  ;;  %v698_v0 = vld [vmem:[#allocation7 + $0x98] sm:$0xff]  ;;  %v3586_v1 = vpack.c.bf16 %v693_v57, %v689_v56  ;;  %v695_v3 = vld [vmem:[#allocation7 + $0x80] sm:$0xff] }
  0x6e   : > { %539 = vmatpush1.msra.mxu1 %v368_v44  ;;  %2347 = vmatmul.mubr.msk.f32.vlgmr.msra.gmra.mrb[0].mxu0 %vm392_vm0, %v342_v45  ;;  %v700_v63 = vld [vmem:[#allocation7 + $0xa8] sm:$0xff]  ;;  %v702_v2 = vld [vmem:[#allocation7 + $0xb8] sm:$0xff]  ;;  %v699_v4 = vld [vmem:[#allocation7 + $0xa0] sm:$0xff] }
  0x6f   : > { %2355 = vmatmul.mubr.msk.f32.vlgmr.msra.gmra.mrb[0].mxu1 %vm392_vm0, %v342_v45  ;;  %2460 = vmatprep.subr.bf16.mxu0 %v3564_v46  ;;  %v697_v5 = vld [vmem:[#allocation7 + $0x90] sm:$0xff]  ;;  %v3593_v9 = vpack.c.bf16 %v700_v63, %v696_v62  ;;  %v3597_v10 = vpack.c.bf16 %v702_v2, %v698_v0  ;;  %v3599_v11 = vpack.c.bf16 %v699_v4, %v695_v3  ;;  %v704_v12 = vld [vmem:[#allocation7 + $0xc8] sm:$0xff]  ;;  %v706_v14 = vld [vmem:[#allocation7 + $0xd8] sm:$0xff] }
  0x70   : > { %2492 = vmatprep.subr.bf16.mxu1 %v3566_v47  ;;  %2462 = vmatpush1.bf16.msra.mxu0 %v3568_v48  ;;  %v701_v6 = vld [vmem:[#allocation7 + $0xb0] sm:$0xff]  ;;  %v708_v13 = vld [vmem:[#allocation7 + $0xe8] sm:$0xff]  ;;  %v710_v16 = vld [vmem:[#allocation7 + $0xf8] sm:$0xff] }
  0x71   : > { %2494 = vmatpush1.bf16.msra.mxu1 %v3570_v52  ;;  %487 = vmatprep.mubr.f32.mxu0 %v3381_v8  ;;  %v344_v7 = vld [vmem:[%s3551_s14 + $0x10] sm:$0xff]  ;;  %v3603_v15 = vpack.c.bf16 %v701_v6, %v697_v5  ;;  %v703_v17 = vld [vmem:[#allocation7 + $0xc0] sm:$0xff]  ;;  %v345_v21 = vld [vmem:[%s3551_s14 + $0x18] sm:$0xff]  ;;  %v3610_v22 = vpack.c.bf16 %v708_v13, %v704_v12  ;;  %v3614_v23 = vpack.c.bf16 %v710_v16, %v706_v14 }
  0x72   : > { %600 = vmatprep.mubr.f32.mxu1 %v3381_v8  ;;  %2348 = vmatmul.mubr.msk.f32.gmra.mrb[2].mxu0 %vm392_vm0, %v343_v58  ;;  %v707_v18 = vld [vmem:[#allocation7 + $0xe0] sm:$0xff]  ;;  %v705_v19 = vld [vmem:[#allocation7 + $0xd0] sm:$0xff]  ;;  %v712_v25 = vld [vmem:[#allocation7 + $0x108] sm:$0xff] }
  0x73   : > { %2356 = vmatmul.mubr.msk.f32.gmra.mrb[2].mxu1 %vm392_vm0, %v343_v58  ;;  %2464 = vmatprep.subr.bf16.mxu0 %v3576_v59  ;;  %v709_v20 = vld [vmem:[#allocation7 + $0xf0] sm:$0xff]  ;;  %v3616_v24 = vpack.c.bf16 %v707_v18, %v703_v17  ;;  %v716_v26 = vld [vmem:[#allocation7 + $0x128] sm:$0xff]  ;;  %v714_v27 = vld [vmem:[#allocation7 + $0x118] sm:$0xff] }
  0x74   : > { %2496 = vmatprep.subr.bf16.mxu1 %v3580_v60  ;;  %2466 = vmatpush1.bf16.msra.mxu0 %v3582_v61  ;;  %v3620_v28 = vpack.c.bf16 %v709_v20, %v705_v19  ;;  %v718_v29 = vld [vmem:[#allocation7 + $0x138] sm:$0xff]  ;;  %v711_v30 = vld [vmem:[#allocation7 + $0x100] sm:$0xff]  ;;  %v713_v32 = vld [vmem:[#allocation7 + $0x110] sm:$0xff]  ;;  %v3627_v35 = vpack.c.bf16 %v716_v26, %v712_v25 }
  0x75   : > { %2498 = vmatpush1.bf16.msra.mxu1 %v3586_v1  ;;  %493 = vmatprep.mubr.f32.mxu0 %v3381_v8  ;;  %v715_v31 = vld [vmem:[#allocation7 + $0x120] sm:$0xff]  ;;  %v717_v33 = vld [vmem:[#allocation7 + $0x130] sm:$0xff]  ;;  %v3631_v36 = vpack.c.bf16 %v718_v29, %v714_v27  ;;  %v720_v38 = vld [vmem:[#allocation7 + $0x148] sm:$0xff] }
  0x76   : > { %606 = vmatprep.mubr.f32.mxu1 %v3381_v8  ;;  %2349 = vmatmul.mubr.msk.f32.gmra.mrb[4].mxu0 %vm392_vm0, %v344_v7  ;;  %v346_v34 = vld [vmem:[%s3551_s14 + $0x20] sm:$0xff]  ;;  %v3633_v37 = vpack.c.bf16 %v715_v31, %v711_v30  ;;  %v724_v39 = vld [vmem:[#allocation7 + $0x168] sm:$0xff]  ;;  %v722_v40 = vld [vmem:[#allocation7 + $0x158] sm:$0xff]  ;;  %v3637_v41 = vpack.c.bf16 %v717_v33, %v713_v32  ;;  %v372_v31 = vlaneseq }
  0x77   : > { %2357 = vmatmul.mubr.msk.f32.gmra.mrb[4].mxu1 %vm392_vm0, %v344_v7  ;;  %2468 = vmatprep.subr.bf16.mxu0 %v3593_v9  ;;  %v726_v42 = vld [vmem:[#allocation7 + $0x178] sm:$0xff]  ;;  %v719_v43 = vld [vmem:[#allocation7 + $0x140] sm:$0xff]  ;;  %v721_v45 = vld [vmem:[#allocation7 + $0x150] sm:$0xff]  ;;  %v3644_v51 = vpack.c.bf16 %v724_v39, %v720_v38 }
  0x78   : > { %2500 = vmatprep.subr.bf16.mxu1 %v3597_v10  ;;  %2470 = vmatpush1.bf16.msra.mxu0 %v3599_v11  ;;  %v723_v44 = vld [vmem:[#allocation7 + $0x160] sm:$0xff]  ;;  %v725_v49 = vld [vmem:[#allocation7 + $0x170] sm:$0xff]  ;;  %v347_v50 = vld [vmem:[%s3551_s14 + $0x28] sm:$0xff]  ;;  %v3648_v53 = vpack.c.bf16 %v726_v42, %v722_v40  ;;  %v373_v32 = vshrl.u32 %v372_v31, 7 }
  0x79   : > { %2502 = vmatpush1.bf16.msra.mxu1 %v3603_v15  ;;  %499 = vmatprep.mubr.f32.mxu0 %v3381_v8  ;;  %v3650_v54 = vpack.c.bf16 %v723_v44, %v719_v43  ;;  %v728_v55 = vld [vmem:[#allocation7 + $0x188] sm:$0xff]  ;;  %v730_v57 = vld [vmem:[#allocation7 + $0x198] sm:$0xff]  ;;  %v3654_v58 = vpack.c.bf16 %v725_v49, %v721_v45  ;;  %v727_v63 = vld [vmem:[#allocation7 + $0x180] sm:$0xff] }
  0x7a   : > { %612 = vmatprep.mubr.f32.mxu1 %v3381_v8  ;;  %2350 = vmatmul.mubr.msk.f32.gmra.mrb[6].mxu0 %vm392_vm0, %v345_v21  ;;  %v732_v56 = vld [vmem:[#allocation7 + $0x1a8] sm:$0xff]  ;;  %v734_v62 = vld [vmem:[#allocation7 + $0x1b8] sm:$0xff]  ;;  %v731_v0 = vld [vmem:[#allocation7 + $0x1a0] sm:$0xff]  ;;  %v374_v33 = vsub.s32 0, %v373_v32  ;;  %v378_v38 = vsub.s32 1, %v373_v32  ;;  %v382_v43 = vsub.s32 2, %v373_v32 }
  0x7b   : > { %2358 = vmatmul.mubr.msk.f32.gmra.mrb[6].mxu1 %vm392_vm0, %v345_v21  ;;  %2472 = vmatprep.subr.bf16.mxu0 %v3610_v22  ;;  %v729_v2 = vld [vmem:[#allocation7 + $0x190] sm:$0xff]  ;;  %v3661_v5 = vpack.c.bf16 %v732_v56, %v728_v55  ;;  %v3665_v6 = vpack.c.bf16 %v734_v62, %v730_v57  ;;  %v3667_v7 = vpack.c.bf16 %v731_v0, %v727_v63  ;;  %v736_v12 = vld [vmem:[#allocation7 + $0x1c8] sm:$0xff]  ;;  %v738_v14 = vld [vmem:[#allocation7 + $0x1d8] sm:$0xff]  ;;  %v386_v63 = vsub.s32 3, %v373_v32 }
  0x7c   : > { %2504 = vmatprep.subr.bf16.mxu1 %v3614_v23  ;;  %2474 = vmatpush1.bf16.msra.mxu0 %v3616_v24  ;;  %v733_v3 = vld [vmem:[#allocation7 + $0x1b0] sm:$0xff]  ;;  %v740_v13 = vld [vmem:[#allocation7 + $0x1e8] sm:$0xff]  ;;  %v742_v17 = vld [vmem:[#allocation7 + $0x1f8] sm:$0xff] }
  0x7d   : > { %2506 = vmatpush1.bf16.msra.mxu1 %v3620_v28  ;;  %505 = vmatprep.mubr.f32.mxu0 %v3381_v8  ;;  %v348_v4 = vld [vmem:[%s3551_s14 + $0x30] sm:$0xff]  ;;  %v3671_v16 = vpack.c.bf16 %v733_v3, %v729_v2  ;;  %v735_v18 = vld [vmem:[#allocation7 + $0x1c0] sm:$0xff]  ;;  %v349_v25 = vld [vmem:[%s3551_s14 + $0x38] sm:$0xff]  ;;  %v3678_v26 = vpack.c.bf16 %v740_v13, %v736_v12  ;;  %v3682_v27 = vpack.c.bf16 %v742_v17, %v738_v14  ;;  %s3305_s14 = scalar_lea.vmem %s4070_s20, 128 }
  0x7e   : > { %618 = vmatprep.mubr.f32.mxu1 %v3381_v8  ;;  %2351 = vmatmul.mubr.msk.f32.gmra.mrb[8].mxu0 %vm392_vm0, %v346_v34  ;;  %v739_v19 = vld [vmem:[#allocation7 + $0x1e0] sm:$0xff]  ;;  %v737_v20 = vld [vmem:[#allocation7 + $0x1d0] sm:$0xff]  ;;  %p3306_p12 = scmp.ne.s32.totalorder %s4070_s20, %s3305_s14  ;;  %p3313_p9 = scmp.lt.s32.totalorder %s3311_s28, %s3305_s14 }
  0x7f   : > { %2359 = vmatmul.mubr.msk.f32.gmra.mrb[8].mxu1 %vm392_vm0, %v346_v34  ;;  %2476 = vmatprep.subr.bf16.mxu0 %v3627_v35  ;;  %v741_v21 = vld [vmem:[#allocation7 + $0x1f0] sm:$0xff]  ;;  %v3684_v29 = vpack.c.bf16 %v739_v19, %v735_v18  ;;  %v370_v34 = vld [vmem:[%s4116_s3] sm:$0xf] }
  0x80   : > { %2508 = vmatprep.subr.bf16.mxu1 %v3631_v36  ;;  %2478 = vmatpush1.bf16.msra.mxu0 %v3633_v37  ;;  %v3688_v30 = vpack.c.bf16 %v741_v21, %v737_v20  ;;  %v3740_v39 = vrot.slane %v370_v34, %v374_v33  ;;  %v3742_v40 = vrot.slane %v370_v34, %v378_v38  ;;  %p3307_p4 = pnand %p3306_p12, %p4135_p3  ;;  %p3314_p13 = por %p3313_p9, %p3312_p8 }
  0x81   : > { %2510 = vmatpush1.bf16.msra.mxu1 %v3637_v41  ;;  %511 = vmatprep.mubr.f32.mxu0 %v3381_v8  ;;  %v3746_v57 = vrot.slane %v370_v34, %v382_v43  ;;  %v3749_v2 = vrot.slane %v370_v34, %v386_v63 }
  0x82   : > { %624 = vmatprep.mubr.f32.mxu1 %v3381_v8  ;;  %2352 = vmatmul.mubr.msk.f32.gmra.mrb[10].mxu0 %vm392_vm0, %v347_v50  ;;  %p3308_p7 = pneg %p3307_p4 }
  0x83   : > { %2360 = vmatmul.mubr.msk.f32.gmra.mrb[10].mxu1 %vm392_vm0, %v347_v50  ;;  %2480 = vmatprep.subr.bf16.mxu0 %v3644_v51 }
  0x84   : > { %2512 = vmatprep.subr.bf16.mxu1 %v3648_v53  ;;  %2482 = vmatpush1.bf16.msra.mxu0 %v3650_v54  ;;  %p3315_p2 = pnand %p3314_p13, %p3308_p7 }
  0x85   : > { %2514 = vmatpush1.bf16.msra.mxu1 %v3654_v58  ;;  %517 = vmatprep.mubr.f32.mxu0 %v3381_v8 }
  0x86   : > { %630 = vmatprep.mubr.f32.mxu1 %v3381_v8  ;;  %2353 = vmatmul.mubr.msk.f32.gmra.mrb[12].mxu0 %vm392_vm0, %v348_v4 }
  0x87   : > { %2361 = vmatmul.mubr.msk.f32.gmra.mrb[12].mxu1 %vm392_vm0, %v348_v4  ;;  %2484 = vmatprep.subr.bf16.mxu0 %v3661_v5 }
  0x88   : > { %2516 = vmatprep.subr.bf16.mxu1 %v3665_v6  ;;  %2486 = vmatpush1.bf16.msra.mxu0 %v3667_v7 }
  0x89   : > { %2518 = vmatpush1.bf16.msra.mxu1 %v3671_v16  ;;  %523 = vmatprep.mubr.f32.mxu0 %v3381_v8 }
  0x8a   : > { %636 = vmatprep.mubr.f32.mxu1 %v3381_v8  ;;  %2354 = vmatmul.mubr.msk.f32.gmra.mrb[14].mxu0 %vm392_vm0, %v349_v25 }
  0x8b   : > { %2362 = vmatmul.mubr.msk.f32.gmra.mrb[14].mxu1 %vm392_vm0, %v349_v25  ;;  %2488 = vmatprep.subr.bf16.mxu0 %v3678_v26 }
  0x8c   : > { %2520 = vmatprep.subr.bf16.mxu1 %v3682_v27  ;;  %2490 = vmatpush1.bf16.msra.mxu0 %v3684_v29 }
  0x8d   : > { %2522 = vmatpush1.bf16.msra.mxu1 %v3688_v30  ;;  %807 = vmatprep.mubr.f32.mxu0 %v3381_v8 }
  0x8e   : > { %878 = vmatprep.mubr.f32.mxu1 %v3381_v8  ;;  %2524 = vmatprep.subr.bf16.mxu0 %v3564_v46 }
  0x8f   : > { %808 = vmatmul.mubr.f32.vlgmr.msra.gmra.mrb[0].mxu0 %v3381_v8  ;;  %2556 = vmatprep.subr.bf16.mxu1 %v3566_v47 }
  0x90   : > { %879 = vmatmul.mubr.f32.vlgmr.msra.gmra.mrb[0].mxu1 %v3381_v8  ;;  %2526 = vmatpush1.bf16.msra.mxu0 %v3568_v48 }
  0x91   : > { %2558 = vmatpush1.bf16.msra.mxu1 %v3570_v52  ;;  %2528 = vmatprep.subr.bf16.mxu0 %v3576_v59 }
  0x92   : > { %2560 = vmatprep.subr.bf16.mxu1 %v3580_v60  ;;  %982 = vmatprep.mubr.f32.mxu0 %v3381_v8 }
  0x93   : > { %1053 = vmatprep.mubr.f32.mxu1 %v3381_v8 }
  0x94   : > { %2530 = vmatpush1.bf16.msra.mxu0 %v3582_v61 }
  0x95   : > { %2562 = vmatpush1.bf16.msra.mxu1 %v3586_v1  ;;  %2532 = vmatprep.subr.bf16.mxu0 %v3593_v9 }
  0x96   : > { %2564 = vmatprep.subr.bf16.mxu1 %v3597_v10 }
  0x98   : > { %2534 = vmatpush1.bf16.msra.mxu0 %v3599_v11 }
  0x99   : > { %2566 = vmatpush1.bf16.msra.mxu1 %v3603_v15  ;;  %2536 = vmatprep.subr.bf16.mxu0 %v3610_v22 }
  0x9a   : > { %2568 = vmatprep.subr.bf16.mxu1 %v3614_v23 }
  0x9c   : > { %2538 = vmatpush1.bf16.msra.mxu0 %v3616_v24 }
  0x9d   : > { %2570 = vmatpush1.bf16.msra.mxu1 %v3620_v28  ;;  %2540 = vmatprep.subr.bf16.mxu0 %v3627_v35 }
  0x9e   : > { %2572 = vmatprep.subr.bf16.mxu1 %v3631_v36 }
  0xa0   : > { %2542 = vmatpush1.bf16.msra.mxu0 %v3633_v37 }
  0xa1   : > { %2574 = vmatpush1.bf16.msra.mxu1 %v3637_v41  ;;  %2544 = vmatprep.subr.bf16.mxu0 %v3644_v51 }
  0xa2   : > { %2576 = vmatprep.subr.bf16.mxu1 %v3648_v53 }
  0xa4   : > { %2546 = vmatpush1.bf16.msra.mxu0 %v3650_v54 }
  0xa5   : > { %2578 = vmatpush1.bf16.msra.mxu1 %v3654_v58  ;;  %2548 = vmatprep.subr.bf16.mxu0 %v3661_v5 }
  0xa6   : > { %2580 = vmatprep.subr.bf16.mxu1 %v3665_v6 }
  0xa8   : > { %2550 = vmatpush1.bf16.msra.mxu0 %v3667_v7 }
  0xa9   : > { %2582 = vmatpush1.bf16.msra.mxu1 %v3671_v16  ;;  %2552 = vmatprep.subr.bf16.mxu0 %v3678_v26 }
  0xaa   : > { %2584 = vmatprep.subr.bf16.mxu1 %v3682_v27 }
  0xac   : > { %2554 = vmatpush1.bf16.msra.mxu0 %v3684_v29 }
  0xad   : > { %2586 = vmatpush1.bf16.msra.mxu1 %v3688_v30  ;;  %2588 = vmatprep.subr.bf16.mxu0 %v3564_v46 }
  0xae   : > { %2620 = vmatprep.subr.bf16.mxu1 %v3566_v47 }
 0x162   : > { %v809_v42 = vpop.f32.mrb[0].mxu0 }
 0x163   : > { %v2995_v44 = vadd.f32 %v809_v42, %v3740_v39  ;;  %v880_v45 = vpop.f32.mrb[0].mxu1  ;;  %v811_v49 = vpop.f32.mrb[1].mxu0 }
 0x164   : > { %v2996_v50 = vadd.f32 %v811_v49, %v3742_v40  ;;  %v882_v55 = vpop.f32.mrb[1].mxu1  ;;  %v3011_v0 = vadd.f32 %v880_v45, %v3746_v57 }
 0x165   : > { %v2363_v56 = vmul.f32 -1.442695, %v2995_v44  ;;  %v3012_v4 = vadd.f32 %v882_v55, %v3749_v2 }
 0x166   : > { %v2364_v62 = vmul.f32 -1.442695, %v2996_v50  ;;  %v2365_v3 = vmul.f32 -1.442695, %v3011_v0 }
 0x167   : > { %3123 = vpow2.f32 %v2363_v56 }
 0x168   : > { %3125 = vpow2.f32 %v2364_v62 }
 0x169   : > { %3127 = vpow2.f32 %v2365_v3 }
 0x16a   : > { %3129 = vtanh.f32 %v3012_v4 }
 0x171   : > { %v3124_v12 = vpop.eup %3123 }
 0x172   : > { %v898_v13 = vadd.f32 1.0, %v3124_v12  ;;  %v3126_v14 = vpop.eup %3125 }
 0x173   : > { %v899_v17 = vadd.f32 1.0, %v3126_v14  ;;  %v3128_v18 = vpop.eup %3127 }
 0x174   : > { %3131 = vrcp.f32 %v898_v13  ;;  %v3130_v19 = vpop.eup %3129  ;;  %v900_v31 = vadd.f32 1.0, %v3128_v18 }
 0x175   : > { %3133 = vrcp.f32 %v899_v17 }
 0x176   : > { %3135 = vrcp.f32 %v900_v31 }
 0x17e   : > { %v3132_v20 = vpop.eup %3131 }
 0x17f   : > { %v909_v21 = vmul.f32 %v3132_v20, %v3130_v19  ;;  %v3134_v25 = vpop.eup %3133 }
 0x180   : > { %v908_v32 = vmul.f32 0.0, %v3134_v25  ;;  %v3136_v34 = vpop.eup %3135 }
 0x182   : > { %v3752_v33 = vadd.f32 %v909_v21, %v908_v32 }
 0x184   : > { %3137 = vtanh.f32 %v3752_v33 }
 0x18e   : > { %v3138_v38 = vpop.eup %3137 }
 0x18f   : > { %v912_v42 = vmul.f32 %v3138_v38, %v3136_v34 }
 0x191   : > { %983 = vmatmul.mubr.f32.vlgmr.msra.gmra.mrb[2].mxu0 %v912_v42  ;;  %1054 = vmatmul.mubr.f32.vlgmr.msra.gmra.mrb[2].mxu1 %v912_v42 }
 0x192   : > { %2590 = vmatpush1.bf16.msra.mxu0 %v3568_v48  ;;  %2622 = vmatpush1.bf16.msra.mxu1 %v3570_v52 }
 0x193   : > { %2592 = vmatprep.subr.bf16.mxu0 %v3576_v59  ;;  %2624 = vmatprep.subr.bf16.mxu1 %v3580_v60 }
 0x194   : > { %1157 = vmatprep.mubr.f32.mxu0 %v3381_v8  ;;  %1228 = vmatprep.mubr.f32.mxu1 %v3381_v8 }
 0x196   : > { %2594 = vmatpush1.bf16.msra.mxu0 %v3582_v61  ;;  %2626 = vmatpush1.bf16.msra.mxu1 %v3586_v1 }
 0x197   : > { %2596 = vmatprep.subr.bf16.mxu0 %v3593_v9  ;;  %2628 = vmatprep.subr.bf16.mxu1 %v3597_v10 }
 0x19a   : > { %2598 = vmatpush1.bf16.msra.mxu0 %v3599_v11  ;;  %2630 = vmatpush1.bf16.msra.mxu1 %v3603_v15 }
 0x19b   : > { %2600 = vmatprep.subr.bf16.mxu0 %v3610_v22  ;;  %2632 = vmatprep.subr.bf16.mxu1 %v3614_v23 }
 0x19e   : > { %2602 = vmatpush1.bf16.msra.mxu0 %v3616_v24  ;;  %2634 = vmatpush1.bf16.msra.mxu1 %v3620_v28 }
 0x19f   : > { %2604 = vmatprep.subr.bf16.mxu0 %v3627_v35  ;;  %2636 = vmatprep.subr.bf16.mxu1 %v3631_v36 }
 0x1a2   : > { %2606 = vmatpush1.bf16.msra.mxu0 %v3633_v37  ;;  %2638 = vmatpush1.bf16.msra.mxu1 %v3637_v41 }
 0x1a3   : > { %2608 = vmatprep.subr.bf16.mxu0 %v3644_v51  ;;  %2640 = vmatprep.subr.bf16.mxu1 %v3648_v53 }
 0x1a6   : > { %2610 = vmatpush1.bf16.msra.mxu0 %v3650_v54  ;;  %2642 = vmatpush1.bf16.msra.mxu1 %v3654_v58 }
 0x1a7   : > { %2612 = vmatprep.subr.bf16.mxu0 %v3661_v5  ;;  %2644 = vmatprep.subr.bf16.mxu1 %v3665_v6 }
 0x1aa   : > { %2614 = vmatpush1.bf16.msra.mxu0 %v3667_v7  ;;  %2646 = vmatpush1.bf16.msra.mxu1 %v3671_v16 }
 0x1ab   : > { %2616 = vmatprep.subr.bf16.mxu0 %v3678_v26  ;;  %2648 = vmatprep.subr.bf16.mxu1 %v3682_v27 }
 0x1ae   : > { %2618 = vmatpush1.bf16.msra.mxu0 %v3684_v29  ;;  %2650 = vmatpush1.bf16.msra.mxu1 %v3688_v30 }
 0x1af   : > { %2652 = vmatprep.subr.bf16.mxu0 %v3564_v46  ;;  %2684 = vmatprep.subr.bf16.mxu1 %v3566_v47 }
 0x264   : > { %v984_v43 = vpop.f32.mrb[2].mxu0  ;;  %v1055_v44 = vpop.f32.mrb[2].mxu1 }
 0x265   : > { %v2997_v45 = vadd.f32 %v984_v43, %v3740_v39  ;;  %v986_v49 = vpop.f32.mrb[3].mxu0  ;;  %v1057_v50 = vpop.f32.mrb[3].mxu1  ;;  %v3013_v63 = vadd.f32 %v1055_v44, %v3746_v57 }
 0x266   : > { %v2998_v55 = vadd.f32 %v986_v49, %v3742_v40  ;;  %v3014_v0 = vadd.f32 %v1057_v50, %v3749_v2 }
 0x267   : > { %v2366_v56 = vmul.f32 -1.442695, %v2997_v45  ;;  %v2368_v3 = vmul.f32 -1.442695, %v3013_v63 }
 0x268   : > { %v2367_v62 = vmul.f32 -1.442695, %v2998_v55 }
 0x269   : > { %3139 = vpow2.f32 %v2366_v56 }
 0x26a   : > { %3141 = vpow2.f32 %v2367_v62 }
 0x26b   : > { %3143 = vtanh.f32 %v3014_v0 }
 0x26c   : > { %3145 = vpow2.f32 %v2368_v3 }
 0x273   : > { %v3140_v4 = vpop.eup %3139 }
 0x274   : > { %v1073_v12 = vadd.f32 1.0, %v3140_v4  ;;  %v3142_v13 = vpop.eup %3141 }
 0x275   : > { %v1074_v14 = vadd.f32 1.0, %v3142_v13  ;;  %v3144_v17 = vpop.eup %3143 }
 0x276   : > { %3147 = vrcp.f32 %v1073_v12  ;;  %v3146_v18 = vpop.eup %3145 }
 0x277   : > { %3149 = vrcp.f32 %v1074_v14  ;;  %v1075_v25 = vadd.f32 1.0, %v3146_v18 }
 0x279   : > { %3151 = vrcp.f32 %v1075_v25 }
 0x280   : > { %v3148_v19 = vpop.eup %3147 }
 0x281   : > { %v1084_v20 = vmul.f32 %v3148_v19, %v3144_v17  ;;  %v3150_v21 = vpop.eup %3149 }
 0x282   : > { %v1083_v31 = vmul.f32 %v3150_v21, %v3752_v33 }
 0x283   : > { %v3152_v34 = vpop.eup %3151 }
 0x284   : > { %v3794_v32 = vadd.f32 %v1084_v20, %v1083_v31 }
 0x286   : > { %3153 = vtanh.f32 %v3794_v32 }
 0x290   : > { %v3154_v38 = vpop.eup %3153 }
 0x291   : > { %v1087_v42 = vmul.f32 %v3154_v38, %v3152_v34 }
 0x293   : > { %1158 = vmatmul.mubr.f32.vlgmr.msra.gmra.mrb[4].mxu0 %v1087_v42  ;;  %1229 = vmatmul.mubr.f32.vlgmr.msra.gmra.mrb[4].mxu1 %v1087_v42 }
 0x294   : > { %2654 = vmatpush1.bf16.msra.mxu0 %v3568_v48  ;;  %2686 = vmatpush1.bf16.msra.mxu1 %v3570_v52 }
 0x295   : > { %2656 = vmatprep.subr.bf16.mxu0 %v3576_v59  ;;  %2688 = vmatprep.subr.bf16.mxu1 %v3580_v60 }
 0x296   : > { %1332 = vmatprep.mubr.f32.mxu0 %v3381_v8  ;;  %1403 = vmatprep.mubr.f32.mxu1 %v3381_v8 }
 0x298   : > { %2658 = vmatpush1.bf16.msra.mxu0 %v3582_v61  ;;  %2690 = vmatpush1.bf16.msra.mxu1 %v3586_v1 }
 0x299   : > { %2660 = vmatprep.subr.bf16.mxu0 %v3593_v9  ;;  %2692 = vmatprep.subr.bf16.mxu1 %v3597_v10 }
 0x29c   : > { %2662 = vmatpush1.bf16.msra.mxu0 %v3599_v11  ;;  %2694 = vmatpush1.bf16.msra.mxu1 %v3603_v15 }
 0x29d   : > { %2664 = vmatprep.subr.bf16.mxu0 %v3610_v22  ;;  %2696 = vmatprep.subr.bf16.mxu1 %v3614_v23 }
 0x2a0   : > { %2666 = vmatpush1.bf16.msra.mxu0 %v3616_v24  ;;  %2698 = vmatpush1.bf16.msra.mxu1 %v3620_v28 }
 0x2a1   : > { %2668 = vmatprep.subr.bf16.mxu0 %v3627_v35  ;;  %2700 = vmatprep.subr.bf16.mxu1 %v3631_v36 }
 0x2a4   : > { %2670 = vmatpush1.bf16.msra.mxu0 %v3633_v37  ;;  %2702 = vmatpush1.bf16.msra.mxu1 %v3637_v41 }
 0x2a5   : > { %2672 = vmatprep.subr.bf16.mxu0 %v3644_v51  ;;  %2704 = vmatprep.subr.bf16.mxu1 %v3648_v53 }
 0x2a8   : > { %2674 = vmatpush1.bf16.msra.mxu0 %v3650_v54  ;;  %2706 = vmatpush1.bf16.msra.mxu1 %v3654_v58 }
 0x2a9   : > { %2676 = vmatprep.subr.bf16.mxu0 %v3661_v5  ;;  %2708 = vmatprep.subr.bf16.mxu1 %v3665_v6 }
 0x2ac   : > { %2678 = vmatpush1.bf16.msra.mxu0 %v3667_v7  ;;  %2710 = vmatpush1.bf16.msra.mxu1 %v3671_v16 }
 0x2ad   : > { %2680 = vmatprep.subr.bf16.mxu0 %v3678_v26  ;;  %2712 = vmatprep.subr.bf16.mxu1 %v3682_v27 }
 0x2b0   : > { %2682 = vmatpush1.bf16.msra.mxu0 %v3684_v29  ;;  %2714 = vmatpush1.bf16.msra.mxu1 %v3688_v30 }
 0x2b1   : > { %2716 = vmatprep.subr.bf16.mxu0 %v3564_v46  ;;  %2748 = vmatprep.subr.bf16.mxu1 %v3566_v47 }
 0x366   : > { %v1159_v33 = vpop.f32.mrb[4].mxu0  ;;  %v1230_v43 = vpop.f32.mrb[4].mxu1 }
 0x367   : > { %v2999_v44 = vadd.f32 %v1159_v33, %v3740_v39  ;;  %v1161_v45 = vpop.f32.mrb[5].mxu0  ;;  %v1232_v49 = vpop.f32.mrb[5].mxu1  ;;  %v3015_v62 = vadd.f32 %v1230_v43, %v3746_v57 }
 0x368   : > { %v3000_v50 = vadd.f32 %v1161_v45, %v3742_v40  ;;  %v3016_v63 = vadd.f32 %v1232_v49, %v3749_v2 }
 0x369   : > { %v2369_v55 = vmul.f32 -1.442695, %v2999_v44  ;;  %v2371_v0 = vmul.f32 -1.442695, %v3015_v62 }
 0x36a   : > { %v2370_v56 = vmul.f32 -1.442695, %v3000_v50 }
 0x36b   : > { %3155 = vpow2.f32 %v2369_v55 }
 0x36c   : > { %3157 = vpow2.f32 %v2370_v56 }
 0x36d   : > { %3159 = vtanh.f32 %v3016_v63 }
 0x36e   : > { %3161 = vpow2.f32 %v2371_v0 }
 0x375   : > { %v3156_v3 = vpop.eup %3155 }
 0x376   : > { %v1248_v4 = vadd.f32 1.0, %v3156_v3  ;;  %v3158_v12 = vpop.eup %3157 }
 0x377   : > { %v1249_v13 = vadd.f32 1.0, %v3158_v12  ;;  %v3160_v14 = vpop.eup %3159 }
 0x378   : > { %3163 = vrcp.f32 %v1248_v4  ;;  %v3162_v17 = vpop.eup %3161 }
 0x379   : > { %3165 = vrcp.f32 %v1249_v13  ;;  %v1250_v21 = vadd.f32 1.0, %v3162_v17 }
 0x37b   : > { %3167 = vrcp.f32 %v1250_v21 }
 0x382   : > { %v3164_v18 = vpop.eup %3163 }
 0x383   : > { %v1259_v19 = vmul.f32 %v3164_v18, %v3160_v14  ;;  %v3166_v20 = vpop.eup %3165 }
 0x384   : > { %v1258_v25 = vmul.f32 %v3166_v20, %v3794_v32 }
 0x385   : > { %v3168_v34 = vpop.eup %3167 }
 0x386   : > { %v3836_v31 = vadd.f32 %v1259_v19, %v1258_v25 }
 0x388   : > { %3169 = vtanh.f32 %v3836_v31 }
 0x392   : > { %v3170_v38 = vpop.eup %3169 }
 0x393   : > { %v1262_v42 = vmul.f32 %v3170_v38, %v3168_v34 }
 0x395   : > { %1333 = vmatmul.mubr.f32.vlgmr.msra.gmra.mrb[6].mxu0 %v1262_v42  ;;  %1404 = vmatmul.mubr.f32.vlgmr.msra.gmra.mrb[6].mxu1 %v1262_v42 }
 0x396   : > { %2718 = vmatpush1.bf16.msra.mxu0 %v3568_v48  ;;  %2750 = vmatpush1.bf16.msra.mxu1 %v3570_v52 }
 0x397   : > { %2720 = vmatprep.subr.bf16.mxu0 %v3576_v59  ;;  %2752 = vmatprep.subr.bf16.mxu1 %v3580_v60 }
 0x398   : > { %1507 = vmatprep.mubr.f32.mxu0 %v3381_v8  ;;  %1578 = vmatprep.mubr.f32.mxu1 %v3381_v8 }
 0x39a   : > { %2722 = vmatpush1.bf16.msra.mxu0 %v3582_v61  ;;  %2754 = vmatpush1.bf16.msra.mxu1 %v3586_v1 }
 0x39b   : > { %2724 = vmatprep.subr.bf16.mxu0 %v3593_v9  ;;  %2756 = vmatprep.subr.bf16.mxu1 %v3597_v10 }
 0x39e   : > { %2726 = vmatpush1.bf16.msra.mxu0 %v3599_v11  ;;  %2758 = vmatpush1.bf16.msra.mxu1 %v3603_v15 }
 0x39f   : > { %2728 = vmatprep.subr.bf16.mxu0 %v3610_v22  ;;  %2760 = vmatprep.subr.bf16.mxu1 %v3614_v23 }
 0x3a2   : > { %2730 = vmatpush1.bf16.msra.mxu0 %v3616_v24  ;;  %2762 = vmatpush1.bf16.msra.mxu1 %v3620_v28 }
 0x3a3   : > { %2732 = vmatprep.subr.bf16.mxu0 %v3627_v35  ;;  %2764 = vmatprep.subr.bf16.mxu1 %v3631_v36 }
 0x3a6   : > { %2734 = vmatpush1.bf16.msra.mxu0 %v3633_v37  ;;  %2766 = vmatpush1.bf16.msra.mxu1 %v3637_v41 }
 0x3a7   : > { %2736 = vmatprep.subr.bf16.mxu0 %v3644_v51  ;;  %2768 = vmatprep.subr.bf16.mxu1 %v3648_v53 }
 0x3aa   : > { %2738 = vmatpush1.bf16.msra.mxu0 %v3650_v54  ;;  %2770 = vmatpush1.bf16.msra.mxu1 %v3654_v58 }
 0x3ab   : > { %2740 = vmatprep.subr.bf16.mxu0 %v3661_v5  ;;  %2772 = vmatprep.subr.bf16.mxu1 %v3665_v6 }
 0x3ae   : > { %2742 = vmatpush1.bf16.msra.mxu0 %v3667_v7  ;;  %2774 = vmatpush1.bf16.msra.mxu1 %v3671_v16 }
 0x3af   : > { %2744 = vmatprep.subr.bf16.mxu0 %v3678_v26  ;;  %2776 = vmatprep.subr.bf16.mxu1 %v3682_v27 }
 0x3b2   : > { %2746 = vmatpush1.bf16.msra.mxu0 %v3684_v29  ;;  %2778 = vmatpush1.bf16.msra.mxu1 %v3688_v30 }
 0x3b3   : > { %2780 = vmatprep.subr.bf16.mxu0 %v3564_v46  ;;  %2812 = vmatprep.subr.bf16.mxu1 %v3566_v47 }
 0x468   : > { %v1334_v32 = vpop.f32.mrb[6].mxu0  ;;  %v1405_v33 = vpop.f32.mrb[6].mxu1 }
 0x469   : > { %v3001_v43 = vadd.f32 %v1334_v32, %v3740_v39  ;;  %v1336_v44 = vpop.f32.mrb[7].mxu0  ;;  %v1407_v45 = vpop.f32.mrb[7].mxu1  ;;  %v3017_v56 = vadd.f32 %v1405_v33, %v3746_v57 }
 0x46a   : > { %v3002_v49 = vadd.f32 %v1336_v44, %v3742_v40  ;;  %v3018_v62 = vadd.f32 %v1407_v45, %v3749_v2 }
 0x46b   : > { %v2372_v50 = vmul.f32 -1.442695, %v3001_v43  ;;  %v2374_v63 = vmul.f32 -1.442695, %v3017_v56 }
 0x46c   : > { %v2373_v55 = vmul.f32 -1.442695, %v3002_v49 }
 0x46d   : > { %3171 = vpow2.f32 %v2372_v50 }
 0x46e   : > { %3173 = vpow2.f32 %v2373_v55 }
 0x46f   : > { %3175 = vtanh.f32 %v3018_v62 }
 0x470   : > { %3177 = vpow2.f32 %v2374_v63 }
 0x477   : > { %v3172_v0 = vpop.eup %3171 }
 0x478   : > { %v1423_v3 = vadd.f32 1.0, %v3172_v0  ;;  %v3174_v4 = vpop.eup %3173 }
 0x479   : > { %v1424_v12 = vadd.f32 1.0, %v3174_v4  ;;  %v3176_v13 = vpop.eup %3175 }
 0x47a   : > { %3179 = vrcp.f32 %v1423_v3  ;;  %v3178_v14 = vpop.eup %3177 }
 0x47b   : > { %3181 = vrcp.f32 %v1424_v12  ;;  %v1425_v20 = vadd.f32 1.0, %v3178_v14 }
 0x47d   : > { %3183 = vrcp.f32 %v1425_v20 }
 0x484   : > { %v3180_v17 = vpop.eup %3179 }
 0x485   : > { %v1434_v18 = vmul.f32 %v3180_v17, %v3176_v13  ;;  %v3182_v19 = vpop.eup %3181 }
 0x486   : > { %v1433_v21 = vmul.f32 %v3182_v19, %v3836_v31 }
 0x487   : > { %v3184_v34 = vpop.eup %3183 }
 0x488   : > { %v3878_v25 = vadd.f32 %v1434_v18, %v1433_v21 }
 0x48a   : > { %3185 = vtanh.f32 %v3878_v25 }
 0x494   : > { %v3186_v38 = vpop.eup %3185 }
 0x495   : > { %v1437_v42 = vmul.f32 %v3186_v38, %v3184_v34 }
 0x497   : > { %1508 = vmatmul.mubr.f32.vlgmr.msra.gmra.mrb[8].mxu0 %v1437_v42  ;;  %1579 = vmatmul.mubr.f32.vlgmr.msra.gmra.mrb[8].mxu1 %v1437_v42 }
 0x498   : > { %2782 = vmatpush1.bf16.msra.mxu0 %v3568_v48  ;;  %2814 = vmatpush1.bf16.msra.mxu1 %v3570_v52 }
 0x499   : > { %2784 = vmatprep.subr.bf16.mxu0 %v3576_v59  ;;  %2816 = vmatprep.subr.bf16.mxu1 %v3580_v60 }
 0x49a   : > { %1682 = vmatprep.mubr.f32.mxu0 %v3381_v8  ;;  %1753 = vmatprep.mubr.f32.mxu1 %v3381_v8 }
 0x49c   : > { %2786 = vmatpush1.bf16.msra.mxu0 %v3582_v61  ;;  %2818 = vmatpush1.bf16.msra.mxu1 %v3586_v1 }
 0x49d   : > { %2788 = vmatprep.subr.bf16.mxu0 %v3593_v9  ;;  %2820 = vmatprep.subr.bf16.mxu1 %v3597_v10 }
 0x4a0   : > { %2790 = vmatpush1.bf16.msra.mxu0 %v3599_v11  ;;  %2822 = vmatpush1.bf16.msra.mxu1 %v3603_v15 }
 0x4a1   : > { %2792 = vmatprep.subr.bf16.mxu0 %v3610_v22  ;;  %2824 = vmatprep.subr.bf16.mxu1 %v3614_v23 }
 0x4a4   : > { %2794 = vmatpush1.bf16.msra.mxu0 %v3616_v24  ;;  %2826 = vmatpush1.bf16.msra.mxu1 %v3620_v28 }
 0x4a5   : > { %2796 = vmatprep.subr.bf16.mxu0 %v3627_v35  ;;  %2828 = vmatprep.subr.bf16.mxu1 %v3631_v36 }
 0x4a8   : > { %2798 = vmatpush1.bf16.msra.mxu0 %v3633_v37  ;;  %2830 = vmatpush1.bf16.msra.mxu1 %v3637_v41 }
 0x4a9   : > { %2800 = vmatprep.subr.bf16.mxu0 %v3644_v51  ;;  %2832 = vmatprep.subr.bf16.mxu1 %v3648_v53 }
 0x4ac   : > { %2802 = vmatpush1.bf16.msra.mxu0 %v3650_v54  ;;  %2834 = vmatpush1.bf16.msra.mxu1 %v3654_v58 }
 0x4ad   : > { %2804 = vmatprep.subr.bf16.mxu0 %v3661_v5  ;;  %2836 = vmatprep.subr.bf16.mxu1 %v3665_v6 }
 0x4b0   : > { %2806 = vmatpush1.bf16.msra.mxu0 %v3667_v7  ;;  %2838 = vmatpush1.bf16.msra.mxu1 %v3671_v16 }
 0x4b1   : > { %2808 = vmatprep.subr.bf16.mxu0 %v3678_v26  ;;  %2840 = vmatprep.subr.bf16.mxu1 %v3682_v27 }
 0x4b4   : > { %2810 = vmatpush1.bf16.msra.mxu0 %v3684_v29  ;;  %2842 = vmatpush1.bf16.msra.mxu1 %v3688_v30 }
 0x4b5   : > { %2844 = vmatprep.subr.bf16.mxu0 %v3564_v46  ;;  %2876 = vmatprep.subr.bf16.mxu1 %v3566_v47 }
 0x56a   : > { %v1509_v31 = vpop.f32.mrb[8].mxu0  ;;  %v1580_v32 = vpop.f32.mrb[8].mxu1 }
 0x56b   : > { %v3003_v33 = vadd.f32 %v1509_v31, %v3740_v39  ;;  %v1511_v43 = vpop.f32.mrb[9].mxu0  ;;  %v1582_v44 = vpop.f32.mrb[9].mxu1  ;;  %v3019_v55 = vadd.f32 %v1580_v32, %v3746_v57 }
 0x56c   : > { %v3004_v45 = vadd.f32 %v1511_v43, %v3742_v40  ;;  %v3020_v56 = vadd.f32 %v1582_v44, %v3749_v2 }
 0x56d   : > { %v2375_v49 = vmul.f32 -1.442695, %v3003_v33  ;;  %v2377_v62 = vmul.f32 -1.442695, %v3019_v55 }
 0x56e   : > { %v2376_v50 = vmul.f32 -1.442695, %v3004_v45 }
 0x56f   : > { %3187 = vpow2.f32 %v2375_v49 }
 0x570   : > { %3189 = vpow2.f32 %v2376_v50 }
 0x571   : > { %3191 = vtanh.f32 %v3020_v56 }
 0x572   : > { %3193 = vpow2.f32 %v2377_v62 }
 0x579   : > { %v3188_v63 = vpop.eup %3187 }
 0x57a   : > { %v1598_v0 = vadd.f32 1.0, %v3188_v63  ;;  %v3190_v3 = vpop.eup %3189 }
 0x57b   : > { %v1599_v4 = vadd.f32 1.0, %v3190_v3  ;;  %v3192_v12 = vpop.eup %3191 }
 0x57c   : > { %3195 = vrcp.f32 %v1598_v0  ;;  %v3194_v13 = vpop.eup %3193 }
 0x57d   : > { %3197 = vrcp.f32 %v1599_v4  ;;  %v1600_v19 = vadd.f32 1.0, %v3194_v13 }
 0x57f   : > { %3199 = vrcp.f32 %v1600_v19 }
 0x586   : > { %v3196_v14 = vpop.eup %3195 }
 0x587   : > { %v1609_v17 = vmul.f32 %v3196_v14, %v3192_v12  ;;  %v3198_v18 = vpop.eup %3197 }
 0x588   : > { %v1608_v20 = vmul.f32 %v3198_v18, %v3878_v25 }
 0x589   : > { %v3200_v34 = vpop.eup %3199 }
 0x58a   : > { %v3920_v21 = vadd.f32 %v1609_v17, %v1608_v20 }
 0x58c   : > { %3201 = vtanh.f32 %v3920_v21 }
 0x596   : > { %v3202_v38 = vpop.eup %3201 }
 0x597   : > { %v1612_v42 = vmul.f32 %v3202_v38, %v3200_v34 }
 0x599   : > { %1683 = vmatmul.mubr.f32.vlgmr.msra.gmra.mrb[10].mxu0 %v1612_v42  ;;  %1754 = vmatmul.mubr.f32.vlgmr.msra.gmra.mrb[10].mxu1 %v1612_v42  ;;  %v2131_v42 = vld [vmem:[%s4117_s4 + $0x20] sm:$0xff] }
 0x59a   : > { %2846 = vmatpush1.bf16.msra.mxu0 %v3568_v48  ;;  %2878 = vmatpush1.bf16.msra.mxu1 %v3570_v52 }
 0x59b   : > { %2848 = vmatprep.subr.bf16.mxu0 %v3576_v59  ;;  %2880 = vmatprep.subr.bf16.mxu1 %v3580_v60 }
 0x59c   : > { %1857 = vmatprep.mubr.f32.mxu0 %v3381_v8  ;;  %1928 = vmatprep.mubr.f32.mxu1 %v3381_v8 }
 0x59e   : > { %2850 = vmatpush1.bf16.msra.mxu0 %v3582_v61  ;;  %2882 = vmatpush1.bf16.msra.mxu1 %v3586_v1 }
 0x59f   : > { %2852 = vmatprep.subr.bf16.mxu0 %v3593_v9  ;;  %2884 = vmatprep.subr.bf16.mxu1 %v3597_v10 }
 0x5a2   : > { %2854 = vmatpush1.bf16.msra.mxu0 %v3599_v11  ;;  %2886 = vmatpush1.bf16.msra.mxu1 %v3603_v15 }
 0x5a3   : > { %2856 = vmatprep.subr.bf16.mxu0 %v3610_v22  ;;  %2888 = vmatprep.subr.bf16.mxu1 %v3614_v23 }
 0x5a6   : > { %2858 = vmatpush1.bf16.msra.mxu0 %v3616_v24  ;;  %2890 = vmatpush1.bf16.msra.mxu1 %v3620_v28 }
 0x5a7   : > { %2860 = vmatprep.subr.bf16.mxu0 %v3627_v35  ;;  %2892 = vmatprep.subr.bf16.mxu1 %v3631_v36 }
 0x5aa   : > { %2862 = vmatpush1.bf16.msra.mxu0 %v3633_v37  ;;  %2894 = vmatpush1.bf16.msra.mxu1 %v3637_v41 }
 0x5ab   : > { %2864 = vmatprep.subr.bf16.mxu0 %v3644_v51  ;;  %2896 = vmatprep.subr.bf16.mxu1 %v3648_v53 }
 0x5ae   : > { %2866 = vmatpush1.bf16.msra.mxu0 %v3650_v54  ;;  %2898 = vmatpush1.bf16.msra.mxu1 %v3654_v58 }
 0x5af   : > { %2868 = vmatprep.subr.bf16.mxu0 %v3661_v5  ;;  %2900 = vmatprep.subr.bf16.mxu1 %v3665_v6 }
 0x5b2   : > { %2870 = vmatpush1.bf16.msra.mxu0 %v3667_v7  ;;  %2902 = vmatpush1.bf16.msra.mxu1 %v3671_v16 }
 0x5b3   : > { %2872 = vmatprep.subr.bf16.mxu0 %v3678_v26  ;;  %2904 = vmatprep.subr.bf16.mxu1 %v3682_v27 }
 0x5b6   : > { %2874 = vmatpush1.bf16.msra.mxu0 %v3684_v29  ;;  %2906 = vmatpush1.bf16.msra.mxu1 %v3688_v30 }
 0x5b7   : > { %2908 = vmatprep.subr.bf16.mxu0 %v3564_v46  ;;  %2940 = vmatprep.subr.bf16.mxu1 %v3566_v47 }
 0x66c   : > { %v1684_v25 = vpop.f32.mrb[10].mxu0  ;;  %v1755_v31 = vpop.f32.mrb[10].mxu1 }
 0x66d   : > { %v3005_v32 = vadd.f32 %v1684_v25, %v3740_v39  ;;  %v1686_v33 = vpop.f32.mrb[11].mxu0  ;;  %v1757_v43 = vpop.f32.mrb[11].mxu1  ;;  %v3021_v50 = vadd.f32 %v1755_v31, %v3746_v57  ;;  %v2132_v25 = vld [vmem:[%s4117_s4 + $0x28] sm:$0xff] }
 0x66e   : > { %v3006_v44 = vadd.f32 %v1686_v33, %v3742_v40  ;;  %v3022_v55 = vadd.f32 %v1757_v43, %v3749_v2  ;;  %v2978_v31 = vpack.c.bf16 %v2132_v25, %v2131_v42  ;;  %v2134_v33 = vld [vmem:[%s4117_s4 + $0x38] sm:$0xff] }
 0x66f   : > { %v2378_v45 = vmul.f32 -1.442695, %v3005_v32  ;;  %v2380_v56 = vmul.f32 -1.442695, %v3021_v50  ;;  %v2133_v32 = vld [vmem:[%s4117_s4 + $0x30] sm:$0xff] }
 0x670   : > { %v2379_v49 = vmul.f32 -1.442695, %v3006_v44  ;;  %v2981_v43 = vpack.c.bf16 %v2134_v33, %v2133_v32  ;;  %v2135_v44 = vld [vmem:[%s4117_s4 + $0x40] sm:$0xff]  ;;  %v2137_v50 = vld [vmem:[%s4117_s4 + $0x50] sm:$0xff] }
 0x671   : > { %3203 = vpow2.f32 %v2378_v45  ;;  %v2136_v45 = vld [vmem:[%s4117_s4 + $0x48] sm:$0xff] }
 0x672   : > { %3205 = vpow2.f32 %v2379_v49  ;;  %v2984_v49 = vpack.c.bf16 %v2136_v45, %v2135_v44 }
 0x673   : > { %3207 = vtanh.f32 %v3022_v55  ;;  %v2138_v55 = vld [vmem:[%s4117_s4 + $0x58] sm:$0xff] }
 0x674   : > { %3209 = vpow2.f32 %v2380_v56  ;;  %v2987_v56 = vpack.c.bf16 %v2138_v55, %v2137_v50 }
 0x67b   : > { %v3204_v46 = vpop.eup %3203 }
 0x67c   : > { %v1773_v62 = vadd.f32 1.0, %v3204_v46  ;;  %v3206_v47 = vpop.eup %3205  ;;  %v2139_v46 = vld [vmem:[%s4117_s4 + $0x60] sm:$0xff] }
 0x67d   : > { %v1774_v63 = vadd.f32 1.0, %v3206_v47  ;;  %v3208_v0 = vpop.eup %3207 }
 0x67e   : > { %3211 = vrcp.f32 %v1773_v62  ;;  %v3210_v3 = vpop.eup %3209  ;;  %v2140_v62 = vld [vmem:[%s4117_s4 + $0x68] sm:$0xff] }
 0x67f   : > { %3213 = vrcp.f32 %v1774_v63  ;;  %v1775_v14 = vadd.f32 1.0, %v3210_v3  ;;  %v2990_v47 = vpack.c.bf16 %v2140_v62, %v2139_v46  ;;  %v2141_v63 = vld [vmem:[%s4117_s4 + $0x70] sm:$0xff] }
 0x681   : > { %3215 = vrcp.f32 %v1775_v14 }
 0x688   : > { %v3212_v4 = vpop.eup %3211 }
 0x689   : > { %v1784_v12 = vmul.f32 %v3212_v4, %v3208_v0  ;;  %v3214_v13 = vpop.eup %3213  ;;  %v2142_v0 = vld [vmem:[%s4117_s4 + $0x78] sm:$0xff] }
 0x68a   : > { %v1783_v17 = vmul.f32 %v3214_v13, %v3920_v21  ;;  %v2130_v21 = vld [vmem:[%s4117_s4 + $0x18] sm:$0xff]  ;;  %v2993_v3 = vpack.c.bf16 %v2142_v0, %v2141_v63 }
 0x68b   : > { %v3216_v19 = vpop.eup %3215 }
 0x68c   : > { %v3962_v18 = vadd.f32 %v1784_v12, %v1783_v17 }
 0x68e   : > { %3217 = vtanh.f32 %v3962_v18 }
 0x698   : > { %v3218_v20 = vpop.eup %3217 }
 0x699   : > { %v1787_v34 = vmul.f32 %v3218_v20, %v3216_v19 }
 0x69b   : > { %1858 = vmatmul.mubr.f32.vlgmr.msra.gmra.mrb[12].mxu0 %v1787_v34  ;;  %1929 = vmatmul.mubr.f32.vlgmr.msra.gmra.mrb[12].mxu1 %v1787_v34 }
 0x69c   : > { %2910 = vmatpush1.bf16.msra.mxu0 %v3568_v48  ;;  %2942 = vmatpush1.bf16.msra.mxu1 %v3570_v52 }
 0x69d   : > { %2912 = vmatprep.subr.bf16.mxu0 %v3576_v59  ;;  %2944 = vmatprep.subr.bf16.mxu1 %v3580_v60 }
 0x69e   : > { %2031 = vmatprep.mubr.f32.mxu0 %v3381_v8  ;;  %2102 = vmatprep.mubr.f32.mxu1 %v3381_v8 }
 0x6a0   : > { %2914 = vmatpush1.bf16.msra.mxu0 %v3582_v61  ;;  %2946 = vmatpush1.bf16.msra.mxu1 %v3586_v1 }
 0x6a1   : > { %2916 = vmatprep.subr.bf16.mxu0 %v3593_v9  ;;  %2948 = vmatprep.subr.bf16.mxu1 %v3597_v10 }
 0x6a4   : > { %2918 = vmatpush1.bf16.msra.mxu0 %v3599_v11  ;;  %2950 = vmatpush1.bf16.msra.mxu1 %v3603_v15 }
 0x6a5   : > { %2920 = vmatprep.subr.bf16.mxu0 %v3610_v22  ;;  %2952 = vmatprep.subr.bf16.mxu1 %v3614_v23 }
 0x6a8   : > { %2922 = vmatpush1.bf16.msra.mxu0 %v3616_v24  ;;  %2954 = vmatpush1.bf16.msra.mxu1 %v3620_v28 }
 0x6a9   : > { %2924 = vmatprep.subr.bf16.mxu0 %v3627_v35  ;;  %2956 = vmatprep.subr.bf16.mxu1 %v3631_v36 }
 0x6ac   : > { %2926 = vmatpush1.bf16.msra.mxu0 %v3633_v37  ;;  %2958 = vmatpush1.bf16.msra.mxu1 %v3637_v41 }
 0x6ad   : > { %2928 = vmatprep.subr.bf16.mxu0 %v3644_v51  ;;  %2960 = vmatprep.subr.bf16.mxu1 %v3648_v53 }
 0x6b0   : > { %2930 = vmatpush1.bf16.msra.mxu0 %v3650_v54  ;;  %2962 = vmatpush1.bf16.msra.mxu1 %v3654_v58 }
 0x6b1   : > { %2932 = vmatprep.subr.bf16.mxu0 %v3661_v5  ;;  %2964 = vmatprep.subr.bf16.mxu1 %v3665_v6 }
 0x6b4   : > { %2934 = vmatpush1.bf16.msra.mxu0 %v3667_v7  ;;  %2966 = vmatpush1.bf16.msra.mxu1 %v3671_v16 }
 0x6b5   : > { %2936 = vmatprep.subr.bf16.mxu0 %v3678_v26  ;;  %2968 = vmatprep.subr.bf16.mxu1 %v3682_v27  ;;  %v2127_v26 = vld [vmem:[%s4117_s4] sm:$0xff]  ;;  %v2128_v27 = vld [vmem:[%s4117_s4 + $0x8] sm:$0xff] }
 0x6b8   : > { %2938 = vmatpush1.bf16.msra.mxu0 %v3684_v29  ;;  %2970 = vmatpush1.bf16.msra.mxu1 %v3688_v30  ;;  %v2972_v29 = vpack.c.bf16 %v2128_v27, %v2127_v26  ;;  %v3382_v30 = vmov 0.0|0.0  }
 0x6b9   : > { %2971 = vmatprep.subr.bf16.mxu0 %v3382_v30 }
 0x76e   : > { %v1859_v48 = vpop.f32.mrb[12].mxu0  ;;  %v1930_v52 = vpop.f32.mrb[12].mxu1 }
 0x76f   : > { %v3007_v59 = vadd.f32 %v1859_v48, %v3740_v39  ;;  %v1861_v60 = vpop.f32.mrb[13].mxu0  ;;  %v1932_v61 = vpop.f32.mrb[13].mxu1  ;;  %v3023_v11 = vadd.f32 %v1930_v52, %v3746_v57  ;;  %v2129_v57 = vld [vmem:[%s4117_s4 + $0x10] sm:$0xff] }
 0x770   : > { %v3008_v1 = vadd.f32 %v1861_v60, %v3742_v40  ;;  %v3024_v15 = vadd.f32 %v1932_v61, %v3749_v2  ;;  %v2975_v38 = vpack.c.bf16 %v2130_v21, %v2129_v57 }
 0x771   : > { %v2381_v9 = vmul.f32 -1.442695, %v3007_v59  ;;  %v2383_v22 = vmul.f32 -1.442695, %v3023_v11 }
 0x772   : > { %v2382_v10 = vmul.f32 -1.442695, %v3008_v1 }
 0x773   : > { %3219 = vpow2.f32 %v2381_v9 }
 0x774   : > { %3221 = vpow2.f32 %v2382_v10  ;;  %v2386_v10 = vld [vmem:[%s4118_s5] ss:$0 sm:$0xff] }
 0x775   : > { %3223 = vtanh.f32 %v3024_v15 }
 0x776   : > { %3225 = vpow2.f32 %v2383_v22 }
 0x77d   : > { %v3220_v23 = vpop.eup %3219 }
 0x77e   : > { %v1948_v24 = vadd.f32 1.0, %v3220_v23  ;;  %v3222_v28 = vpop.eup %3221 }
 0x77f   : > { %v1949_v35 = vadd.f32 1.0, %v3222_v28  ;;  %v3224_v36 = vpop.eup %3223 }
 0x780   : > { %3227 = vrcp.f32 %v1948_v24  ;;  %v3226_v37 = vpop.eup %3225 }
 0x781   : > { %3229 = vrcp.f32 %v1949_v35  ;;  %v1950_v54 = vadd.f32 1.0, %v3226_v37 }
 0x783   : > { %3231 = vrcp.f32 %v1950_v54 }
 0x78a   : > { %v3228_v41 = vpop.eup %3227 }
 0x78b   : > { %v1959_v51 = vmul.f32 %v3228_v41, %v3224_v36  ;;  %v3230_v53 = vpop.eup %3229 }
 0x78c   : > { %v1958_v58 = vmul.f32 %v3230_v53, %v3962_v18 }
 0x78d   : > { %v3232_v6 = vpop.eup %3231 }
 0x78e   : > { %v4002_v5 = vadd.f32 %v1959_v51, %v1958_v58 }
 0x790   : > { %3233 = vtanh.f32 %v4002_v5 }
 0x79a   : > { %v3234_v7 = vpop.eup %3233 }
 0x79b   : > { %v1962_v16 = vmul.f32 %v3234_v7, %v3232_v6 }
 0x79d   : > { %2032 = vmatmul.mubr.f32.vlgmr.msra.gmra.mrb[14].mxu0 %v1962_v16  ;;  %2103 = vmatmul.mubr.f32.vlgmr.msra.gmra.mrb[14].mxu1 %v1962_v16 }
 0x79e   : > { %2973 = vmatpush3.bf16.msra.mxu0 %v2972_v29  ;;  %2440 = vmatprep.mubr.msk.f32.mxu0 %vm3383_vm1, %v3381_v8 }
 0x79f   : > { %2974 = vmatprep.subr.bf16.mxu0 %v3382_v30 }
 0x7a2   : > { %2976 = vmatpush3.bf16.msra.mxu0 %v2975_v38 }
 0x7a3   : > { %2977 = vmatprep.subr.bf16.mxu0 %v3382_v30 }
 0x7a6   : > { %2979 = vmatpush3.bf16.msra.mxu0 %v2978_v31 }
 0x7a7   : > { %2980 = vmatprep.subr.bf16.mxu0 %v3382_v30 }
 0x7aa   : > { %2982 = vmatpush3.bf16.msra.mxu0 %v2981_v43 }
 0x7ab   : > { %2983 = vmatprep.subr.bf16.mxu0 %v3382_v30 }
 0x7ae   : > { %2985 = vmatpush3.bf16.msra.mxu0 %v2984_v49 }
 0x7af   : > { %2986 = vmatprep.subr.bf16.mxu0 %v3382_v30 }
 0x7b2   : > { %2988 = vmatpush3.bf16.msra.mxu0 %v2987_v56 }
 0x7b3   : > { %2989 = vmatprep.subr.bf16.mxu0 %v3382_v30 }
 0x7b6   : > { %2991 = vmatpush3.bf16.msra.mxu0 %v2990_v47 }
 0x7b7   : > { %2992 = vmatprep.subr.bf16.mxu0 %v3382_v30 }
 0x7ba   : > { %2994 = vmatpush3.bf16.msra.mxu0 %v2993_v3 }
 0x870   : > { %v2033_v4 = vpop.f32.mrb[14].mxu0  ;;  %v2104_v12 = vpop.f32.mrb[14].mxu1 }
 0x871   : > { %v3009_v13 = vadd.f32 %v2033_v4, %v3740_v39  ;;  %v2035_v8 = vpop.f32.mrb[15].mxu0  ;;  %v2105_v14 = vpop.f32.mrb[15].mxu1 }
 0x872   : > { %v3010_v17 = vadd.f32 %v2035_v8, %v3742_v40  ;;  %v3025_v20 = vadd.f32 %v2105_v14, %v3749_v2 }
 0x873   : > { %v2384_v18 = vmul.f32 -1.442695, %v3009_v13 }
 0x874   : > { %v2385_v19 = vmul.f32 -1.442695, %v3010_v17 }
 0x875   : > { %3235 = vpow2.f32 %v2384_v18 }
 0x876   : > { %3237 = vpow2.f32 %v2385_v19 }
 0x877   : > { %3239 = vtanh.f32 %v3025_v20 }
 0x87f   : > { %v3236_v34 = vpop.eup %3235 }
 0x880   : > { %v3238_v48 = vpop.eup %3237  ;;  %v2117_v52 = vadd.f32 1.0, %v3236_v34 }
 0x881   : > { %v2118_v59 = vadd.f32 1.0, %v3238_v48  ;;  %v3240_v60 = vpop.eup %3239 }
 0x882   : > { %3241 = vrcp.f32 %v2117_v52 }
 0x883   : > { %3243 = vrcp.f32 %v2118_v59 }
 0x88c   : > { %v3242_v61 = vpop.eup %3241 }
 0x88d   : > { %v3244_v39 = vpop.eup %3243  ;;  %v2125_v1 = vmul.f32 %v3242_v61, %v3240_v60 }
 0x88e   : > { %v2124_v9 = vmul.f32 %v3244_v39, %v4002_v5 }
 0x890   : > { %v2126_v40 = vadd.f32 %v2125_v1, %v2124_v9 }
 0x892   : > { %2441 = vmatmul.mubr.f32.vlgmr.msra.gmra.mrb[16].mxu0 %v2126_v40 }
 0x965   : > { %v2216_v2 = vpop.f32.mrb[16].mxu0 }
 0x966   : > { %v2217_v11 = vadd.f32 %v2386_v10, %v2216_v2  ;;  %v2442_v15 = vpop.f32.mrb[17].mxu0 }
 0x968   : > { %v2221_v22 = vsel %vm2220_vm2, %v2217_v11, -inf }
 0x969   : > { %2222 = vmax.xlane.f32.xlu0 %v2221_v22 }
 0x9f6   : > { %v2223_v23 = vpop.xlane.xlu0 %2222 }
 0x9f7   : > { %v2224_v24 = vsub.f32 %v2217_v11, %v2223_v23 }
 0x9f9   : > { %v2225_v28 = vmul.f32 1.442695, %v2224_v24 }
 0x9fb   : > { %3245 = vpow2.f32 %v2225_v28 }
 0xa05   : > { %v3246_v35 = vpop.eup %3245 }
 0xa06   : > { %v2227_v36 = vsel %vm2220_vm2, %v3246_v35, 0.0 }
 0xa07   : > { %2228 = vadd.xlane.f32.xlu0 %v2227_v36 }
 0xa94   : > { %v2229_v37 = vpop.xlane.xlu0 %2228 }
 0xa95   : > { %3247 = vlog2.f32 %v2229_v37 }
 0xa9f   : > { %v3248_v41 = vpop.eup %3247 }
 0xaa0   : > { %v2231_v51 = vmul.f32 0.6931472, %v3248_v41 }
 0xaa2   : > { %v2232_v53 = vsub.f32 %v2224_v24, %v2231_v51 }
 0xaa4   : > { %2233 = vst.msk [vmem:[%s341_s19] sm:$0xff] %vm2220_vm2, %v2232_v53 }
 0xaa5   : > { %3318 = shalt.err (!%p3315_p2)
}
 0xaa6   : > { %s3319_s7 = scalar_lea.hbm %s4068_s15, 128  ;;  %s3323_s30 = scalar_lea.hbm %s4119_s6, 256 }
 0xaa7   : > { %p3320_p0 = scmp.ne.s32.totalorder %s4068_s15, %s3319_s7  ;;  %p3324_p10 = scmp.lt.u32.totalorder %s4068_s15, %s4119_s6 }
 0xaa8   : > { %p3325_p11 = scmp.lt.u32.totalorder %s3323_s30, %s3319_s7  ;;  %p3327_p4 = scmp.lt.u32.totalorder %s3319_s7, %s4068_s15 }
 0xaa9   : > { %p3321_p5 = pnand %p3320_p0, %p4135_p3 }
 0xaaa   : > { %p3326_p12 = por %p3325_p11, %p3324_p10 }
 0xaab   : > { %p3322_p6 = pneg %p3321_p5 }
 0xaac   : > { %p3328_p7 = por %p3327_p4, %p3326_p12 }
 0xaae   : > { %p3329_p8 = pnand %p3328_p7, %p3322_p6 }
 0xab0   : > { %3332 = shalt.err (!%p3329_p8)
}
 0xab1   : > { %3066 = dma.vmem_to_hbm [thread:$0]  (%p4135_p3), %s4070_s20, 128, %s4068_s15, %s2235_s11  }
 0xab2 PF: > { %s2260_s18 = sand.u32 1, %s3363_s21   ;;  %p4136_p9 = scmp.ne.s32.totalorder %s4126_s9, 0 }
 0xab3   : > { %s2261_s19 = scalar_lea.sflag [#allocation6], %s2260_s18 }
 0xab4   : > { %p3076_p13 = pnand %p2339_p1, %p4136_p9 }
 0xab6   : > { %3358 = dma.done.wait (!%p3076_p13), %s2261_s19, 128  }
 0xab7   : > { %3360 = vsyncadd (!%p3076_p13), %s2261_s19, 4294967168  ;;  %s4137_s13 = sld [smem:[#allocation13_spill]]  ;;  %p18_p2 = scmp.ge.s32.totalorder %s3445_s27, 4  }
 0xab8   : > { %s4138_s21 = smov %s3367_s22  ;;  %s4139_s22 = smov %s3371_s23 }
 0xab9   : > { %s4141_s24 = smov %s3445_s27  ;;  %20 = sbr.rel (!%p18_p2) target bundleno = 5 (0x5), region = 138 }
 0xabd   : > { %s4140_s23 = smov %s4137_s13 }
 0xac0   :  { %2266 = vsyncpa [#allocation5], 1 }
 0xac1   :  { %2268 = vsyncpa [#allocation5 + $0x1], 1 }
 0xac2   :  { %2269 = vsyncpa [#allocation8], 1 }
 0xac3   :  { %2270 = vsyncpa [#allocation6], 1 }
 0xac4   :  { %2272 = vsyncpa [#allocation6 + $0x1], 1 }

</bundles_post_ra>
